<compile_context>
chip_gen: v7x
topology: tpu7x:2x2x1
jax: 0.10.0
libtpu: 0.0.40
codegen_flags: <defaults>
</compile_context>

<pallas_src>
import functools

import jax
import jax.numpy as jnp
from jax.experimental import pallas as pl
from jax.experimental.pallas import tpu as pltpu


def _round_up(x, m):
    return (x + m - 1) // m * m


def _vmem_capacity_bytes():
    try:
        return int(pltpu.get_tpu_info().vmem_capacity_bytes)
    except Exception:
        return 64 << 20  # conservative (v7x per-TensorCore VMEM)


def _conv_bias_relu_kernel(x_ref, w_ref, b_ref, o_ref, *, tap_offsets,
                           tile_len, apply_relu, fold_taps, precision):
    # x_ref: (1, Lbuf, C_in)      padded + flattened input, resident per batch
    # w_ref: (K*K*C_in, C_out_p)  tap-folded weights (C_out zero-padded)
    # b_ref: (1, C_out_p)         f32 bias
    # o_ref: (1, tile_len, C_out_p)
    c_in = x_ref.shape[-1]
    j0 = pl.multiple_of(pl.program_id(1) * tile_len, 8)  # tile_len % 8 == 0

    if fold_taps:
        # One MXU matmul over the K*K*C_in folded contraction axis.
        patch = jnp.concatenate(
            [x_ref[0, pl.ds(j0 + off, tile_len), :] for off in tap_offsets],
            axis=-1)                                        # (TL, K*K*C_in)
        acc = jnp.dot(patch, w_ref[...],
                      preferred_element_type=jnp.float32,
                      precision=precision)
    else:
        # Large-C_in fallback: per-tap matmuls, f32 accumulate.
        acc = jnp.zeros((tile_len, o_ref.shape[-1]), jnp.float32)
        for t, off in enumerate(tap_offsets):
            acc = acc + jnp.dot(
                x_ref[0, pl.ds(j0 + off, tile_len), :],
                w_ref[t * c_in:(t + 1) * c_in, :],
                preferred_element_type=jnp.float32,
                precision=precision)

    acc = acc + b_ref[...]                                   # (1, C) broadcast
    if apply_relu:
        acc = jnp.maximum(acc, 0.0)
    o_ref[0] = acc.astype(o_ref.dtype)


@functools.partial(
    jax.jit, static_argnames=("relu", "tile_len", "fold_taps", "precision"))
def conv_with_mask_forward_nhwc(x, weight, bias, *, relu=True, tile_len=None,
                                fold_taps=None, precision=None):
    """Conv_with_mask forward, NHWC layout (no transposes).

    x:      (B, H, W, C_in)
    weight: (C_out, C_in, K, K)   (PyTorch OIHW)
    bias:   (C_out,)
    returns (B, H, W, C_out), dtype of x.
    """
    B, H, W, C_in = x.shape
    C_out, C_in_w, K, K2 = weight.shape
    assert C_in == C_in_w and K == K2 and K % 2 == 1
    # TODO(synk): stride > 1 and the bn=True (BatchNorm2d) branch of the module
    # are not implemented; the module defaults (stride=1, bn=False) are.
    P = (K - 1) // 2
    Hp = H + 2 * P
    Wp = W + 2 * P
    Wf = _round_up(Wp, 8)        # sublane-aligned flattened row stride
    L = H * Wf                   # output positions computed (pad cols cropped)
    KKC = K * K * C_in

    if x.dtype not in (jnp.float32, jnp.bfloat16):
        x = x.astype(jnp.float32)
    cdt = x.dtype                # compute / IO dtype (bf16 stays bf16)
    out_dtype = cdt

    # Lane-dense output: pad C_out up to a multiple of 128 when the write
    # inflation is at most 2x; tiny C_out keeps its natural width.
    C_out_p = _round_up(C_out, 128) if C_out >= 64 else C_out

    if fold_taps is None:
        fold_taps = KKC <= 1024  # fold unless the in-VMEM patch copy dominates

    in_isz = jnp.dtype(cdt).itemsize
    out_isz = jnp.dtype(out_dtype).itemsize

    # ---- tiling / VMEM budget --------------------------------------------
    vmem_phys = _vmem_capacity_bytes()
    slab_guess = _round_up(P + Hp * Wf + (K - 1) * (Wf + 1), 8) * C_in * in_isz
    w_bytes = KKC * C_out_p * in_isz
    fixed_bytes = 2 * slab_guess + 2 * w_bytes + 2 * 4 * C_out_p + (1 << 20)
    per_elem = (2 * C_out_p * out_isz        # double-buffered output block
                + 2 * KKC * in_isz           # tap slices + folded patch
                + 8 * C_out_p)               # f32 accumulator (+ slack)
    vmem_target = max(min(vmem_phys - (16 << 20), 48 << 20), 16 << 20)

    if tile_len is None:
        budget = max(vmem_target - fixed_bytes, 8 * per_elem)
        tile_len = min(budget // per_elem, 2048, _round_up(L, 8))
        tile_len = max(8, int(tile_len) // 8 * 8)
    else:
        tile_len = max(8, _round_up(int(tile_len), 8))
    n_tiles = -(-L // tile_len)              # cdiv; ragged tail handled below
    L_pad = n_tiles * tile_len

    # ---- layout plumbing (fused under this jit) ----------------------------
    max_off = (K - 1) * Wf + (K - 1)
    back_pad = max(L_pad + max_off - P - Hp * Wf, 0)
    Lbuf = _round_up(P + Hp * Wf + back_pad, 8)
    back_pad = Lbuf - P - Hp * Wf

    # Zero-pad spatially (conv pad + lane-stride alignment), flatten, and pad
    # the flat axis so every shifted tap slice (and the ragged overhang tile)
    # stays in bounds.
    x_sp = jnp.pad(x, ((0, 0), (P, P), (P, Wf - Wp + P), (0, 0)))
    x_flat = x_sp.reshape(B, Hp * Wf, C_in)
    x_flat = jnp.pad(x_flat, ((0, 0), (P, back_pad), (0, 0)))  # (B, Lbuf, C_in)

    # weights -> (K*K*C_in, C_out_p); row t*C_in + c pairs with patch column
    # t*C_in + c, where tap t = ky*K + kx reads flat offset ky*Wf + kx.
    w_fold = jnp.transpose(weight.astype(cdt), (2, 3, 1, 0)).reshape(KKC, C_out)
    w_fold = jnp.pad(w_fold, ((0, 0), (0, C_out_p - C_out)))
    b_row = jnp.pad(bias.astype(jnp.float32),
                    (0, C_out_p - C_out)).reshape(1, C_out_p)

    tap_offsets = tuple(ky * Wf + kx for ky in range(K) for kx in range(K))

    kernel = functools.partial(
        _conv_bias_relu_kernel, tap_offsets=tap_offsets, tile_len=tile_len,
        apply_relu=relu, fold_taps=fold_taps, precision=precision)

    needed = fixed_bytes + tile_len * per_elem
    vmem_limit = int(max(min(needed * 5 // 4, vmem_phys - (4 << 20)), 32 << 20))
    cost = pl.CostEstimate(
        flops=2 * B * n_tiles * tile_len * KKC * C_out_p,
        transcendentals=0,
        bytes_accessed=int(B * Lbuf * C_in * in_isz + KKC * C_out_p * in_isz
                           + B * L_pad * C_out_p * out_isz))

    y = pl.pallas_call(
        kernel,
        out_shape=jax.ShapeDtypeStruct((B, L_pad, C_out_p), out_dtype),
        grid_spec=pltpu.PrefetchScalarGridSpec(
            num_scalar_prefetch=0,
            grid=(B, n_tiles),
            in_specs=[
                # Per-batch padded slab: constant block index across the
                # spatial-tile axis -> stays resident in VMEM across tiles.
                # TODO(synk): for very large images (slab >~ 20 MiB) switch to
                # halo-tiled manual DMA (memory_space=pl.ANY + make_async_copy)
                # so the kernel is input-size independent on v7x's 64 MiB VMEM.
                pl.BlockSpec((1, Lbuf, C_in), lambda b, s: (b, 0, 0)),
                pl.BlockSpec((KKC, C_out_p), lambda b, s: (0, 0)),
                pl.BlockSpec((1, C_out_p), lambda b, s: (0, 0)),
            ],
            out_specs=pl.BlockSpec((1, tile_len, C_out_p),
                                   lambda b, s: (b, s, 0)),
        ),
        compiler_params=pltpu.CompilerParams(
            dimension_semantics=("parallel", "parallel"),
            vmem_limit_bytes=vmem_limit),
        cost_estimate=cost,
    )(x_flat, w_fold, b_row)

    # Crop the ragged-tile overhang, the alignment/conv pad columns, and the
    # zero-padded output channels.
    y = y[:, :L, :].reshape(B, H, Wf, C_out_p)[:, :, P:P + W, :C_out]
    return y


@functools.partial(
    jax.jit, static_argnames=("relu", "tile_len", "fold_taps", "precision"))
def conv_with_mask_forward(x, weight, bias, *, relu=True, tile_len=None,
                           fold_taps=None, precision=None):
    """PyTorch-layout entry point: x (B, C_in, H, W) -> (B, C_out, H, W)."""
    y = conv_with_mask_forward_nhwc(
        jnp.transpose(x, (0, 2, 3, 1)), weight, bias, relu=relu,
        tile_len=tile_len, fold_taps=fold_taps, precision=precision)
    return jnp.transpose(y, (0, 3, 1, 2))


if __name__ == "__main__":
    key = jax.random.PRNGKey(0)

    def reference(x, w, b, relu=True):
        y = jax.lax.conv_general_dilated(
            x, w, window_strides=(1, 1), padding=[(1, 1), (1, 1)],
            dimension_numbers=("NCHW", "OIHW", "NCHW"),
            precision=jax.lax.Precision.HIGHEST)
        y = y + b[None, :, None, None]
        return jnp.maximum(y, 0.0) if relu else y

    def run_case(case_key, B, C_in, C_out, H, W, tile_len):
        K = 3
        kx_, kw_, kb_ = jax.random.split(case_key, 3)
        x = jax.random.normal(kx_, (B, C_in, H, W), jnp.float32)
        bound = 1.0 / ((C_in * K * K) ** 0.5)
        w = jax.random.uniform(kw_, (C_out, C_in, K, K), jnp.float32,
                               -bound, bound)
        b = jax.random.uniform(kb_, (C_out,), jnp.float32, -0.1, 0.1)

        out = jax.block_until_ready(conv_with_mask_forward(
            x, w, b, relu=True, tile_len=tile_len,
            precision=jax.lax.Precision.HIGHEST))
        ref = jax.block_until_ready(reference(x, w, b))

        assert out.shape == ref.shape, (out.shape, ref.shape)
        assert bool(jnp.all(jnp.isfinite(out))), "non-finite output"
        err = float(jnp.max(jnp.abs(out - ref)))
        assert err < 5e-3, f"mismatch vs reference: max abs err = {err}"
        return err

    k1, k2 = jax.random.split(key)
    # Module-default small config: auto tile -> one spatial tile per batch.
    run_case(k1, B=2, C_in=4, C_out=8, H=16, W=16, tile_len=None)
    # Exercise the multi-tile + ragged-tail path (3 tiles of 160 over L=384)
    # and the lane-dense padded-C_out path (64 -> 128, cropped in the wrapper).
    run_case(k2, B=2, C_in=4, C_out=64, H=16, W=16, tile_len=160)

    print("KERNEL_OK")
</pallas_src>

<mosaic_0001>
module attributes {stable_mosaic.version = 11 : i64} {
  func.func @_conv_bias_relu_kernel(%arg0: i32, %arg1: i32, %arg2: memref<1x440x4xf32, #tpu.memory_space<vmem>>, %arg3: memref<36x8xf32, #tpu.memory_space<vmem>>, %arg4: memref<1x8xf32, #tpu.memory_space<vmem>>, %arg5: memref<1x384x8xf32, #tpu.memory_space<vmem>>) attributes {dimension_semantics = [#tpu.dimension_semantics<parallel>, #tpu.dimension_semantics<parallel>], iteration_bounds = array<i64: 2, 1>, scalar_prefetch = 0 : i64, scratch_operands = 0 : i64, tpu.core_type = #tpu.core_type<tc>, window_params = [{transform_indices = @transform_0, window_bounds = array<i64: 1, 440, 4>}, {pipeline_mode = #tpu.pipeline_mode<synchronous>, transform_indices = @transform_1, window_bounds = array<i64: 36, 8>}, {pipeline_mode = #tpu.pipeline_mode<synchronous>, transform_indices = @transform_2, window_bounds = array<i64: 1, 8>}, {transform_indices = @transform_3, window_bounds = array<i64: 1, 384, 8>}]} {
    %c384_i32 = arith.constant 384 : i32
    %0 = arith.muli %arg1, %c384_i32 : i32
    %1 = tpu.assume_multiple %0, 8 : i32
    %c0_i32 = arith.constant 0 : i32
    %2 = arith.addi %1, %c0_i32 : i32
    %c0 = arith.constant 0 : index
    %3 = arith.index_cast %2 : i32 to index
    %c0_0 = arith.constant 0 : index
    %4 = vector.load %arg2[%c0, %3, %c0_0] : memref<1x440x4xf32, #tpu.memory_space<vmem>>, vector<1x384x4xf32>
    %5 = vector.shape_cast %4 : vector<1x384x4xf32> to vector<384x4xf32>
    %c1_i32 = arith.constant 1 : i32
    %6 = arith.addi %1, %c1_i32 : i32
    %c0_1 = arith.constant 0 : index
    %7 = arith.index_cast %6 : i32 to index
    %c0_2 = arith.constant 0 : index
    %8 = vector.load %arg2[%c0_1, %7, %c0_2] : memref<1x440x4xf32, #tpu.memory_space<vmem>>, vector<1x384x4xf32>
    %9 = vector.shape_cast %8 : vector<1x384x4xf32> to vector<384x4xf32>
    %c2_i32 = arith.constant 2 : i32
    %10 = arith.addi %1, %c2_i32 : i32
    %c0_3 = arith.constant 0 : index
    %11 = arith.index_cast %10 : i32 to index
    %c0_4 = arith.constant 0 : index
    %12 = vector.load %arg2[%c0_3, %11, %c0_4] : memref<1x440x4xf32, #tpu.memory_space<vmem>>, vector<1x384x4xf32>
    %13 = vector.shape_cast %12 : vector<1x384x4xf32> to vector<384x4xf32>
    %c24_i32 = arith.constant 24 : i32
    %14 = arith.addi %1, %c24_i32 : i32
    %c0_5 = arith.constant 0 : index
    %15 = arith.index_cast %14 : i32 to index
    %c0_6 = arith.constant 0 : index
    %16 = vector.load %arg2[%c0_5, %15, %c0_6] : memref<1x440x4xf32, #tpu.memory_space<vmem>>, vector<1x384x4xf32>
    %17 = vector.shape_cast %16 : vector<1x384x4xf32> to vector<384x4xf32>
    %c25_i32 = arith.constant 25 : i32
    %18 = arith.addi %1, %c25_i32 : i32
    %c0_7 = arith.constant 0 : index
    %19 = arith.index_cast %18 : i32 to index
    %c0_8 = arith.constant 0 : index
    %20 = vector.load %arg2[%c0_7, %19, %c0_8] : memref<1x440x4xf32, #tpu.memory_space<vmem>>, vector<1x384x4xf32>
    %21 = vector.shape_cast %20 : vector<1x384x4xf32> to vector<384x4xf32>
    %c26_i32 = arith.constant 26 : i32
    %22 = arith.addi %1, %c26_i32 : i32
    %c0_9 = arith.constant 0 : index
    %23 = arith.index_cast %22 : i32 to index
    %c0_10 = arith.constant 0 : index
    %24 = vector.load %arg2[%c0_9, %23, %c0_10] : memref<1x440x4xf32, #tpu.memory_space<vmem>>, vector<1x384x4xf32>
    %25 = vector.shape_cast %24 : vector<1x384x4xf32> to vector<384x4xf32>
    %c48_i32 = arith.constant 48 : i32
    %26 = arith.addi %1, %c48_i32 : i32
    %c0_11 = arith.constant 0 : index
    %27 = arith.index_cast %26 : i32 to index
    %c0_12 = arith.constant 0 : index
    %28 = vector.load %arg2[%c0_11, %27, %c0_12] : memref<1x440x4xf32, #tpu.memory_space<vmem>>, vector<1x384x4xf32>
    %29 = vector.shape_cast %28 : vector<1x384x4xf32> to vector<384x4xf32>
    %c49_i32 = arith.constant 49 : i32
    %30 = arith.addi %1, %c49_i32 : i32
    %c0_13 = arith.constant 0 : index
    %31 = arith.index_cast %30 : i32 to index
    %c0_14 = arith.constant 0 : index
    %32 = vector.load %arg2[%c0_13, %31, %c0_14] : memref<1x440x4xf32, #tpu.memory_space<vmem>>, vector<1x384x4xf32>
    %33 = vector.shape_cast %32 : vector<1x384x4xf32> to vector<384x4xf32>
    %c50_i32 = arith.constant 50 : i32
    %34 = arith.addi %1, %c50_i32 : i32
    %c0_15 = arith.constant 0 : index
    %35 = arith.index_cast %34 : i32 to index
    %c0_16 = arith.constant 0 : index
    %36 = vector.load %arg2[%c0_15, %35, %c0_16] : memref<1x440x4xf32, #tpu.memory_space<vmem>>, vector<1x384x4xf32>
    %37 = vector.shape_cast %36 : vector<1x384x4xf32> to vector<384x4xf32>
    %38 = tpu.concatenate %5, %9, %13, %17, %21, %25, %29, %33, %37 in 1 : vector<384x4xf32>, vector<384x4xf32>, vector<384x4xf32>, vector<384x4xf32>, vector<384x4xf32>, vector<384x4xf32>, vector<384x4xf32>, vector<384x4xf32>, vector<384x4xf32> -> vector<384x36xf32>
    %c0_17 = arith.constant 0 : index
    %c0_18 = arith.constant 0 : index
    %39 = vector.load %arg3[%c0_17, %c0_18] : memref<36x8xf32, #tpu.memory_space<vmem>>, vector<36x8xf32>
    %cst = arith.constant dense<0.000000e+00> : vector<384x8xf32>
    %40 = tpu.matmul %38, %39, %cst {dimension_numbers = #tpu.dot_dimension_numbers<[1], [0], [0], [1], [0, 0, 1, 1], [], []>, precision = #tpu.contract_precision<fp32>} : vector<384x36xf32>, vector<36x8xf32>, vector<384x8xf32> -> vector<384x8xf32>
    %c0_19 = arith.constant 0 : index
    %c0_20 = arith.constant 0 : index
    %41 = vector.load %arg4[%c0_19, %c0_20] : memref<1x8xf32, #tpu.memory_space<vmem>>, vector<1x8xf32>
    %42 = vector.broadcast %41 : vector<1x8xf32> to vector<384x8xf32>
    %43 = arith.addf %40, %42 : vector<384x8xf32>
    %cst_21 = arith.constant 0.000000e+00 : f32
    %44 = vector.broadcast %cst_21 : f32 to vector<384x8xf32>
    %45 = arith.maximumf %43, %44 : vector<384x8xf32>
    %c0_22 = arith.constant 0 : index
    %c0_23 = arith.constant 0 : index
    %c0_24 = arith.constant 0 : index
    %46 = vector.load %arg5[%c0_22, %c0_23, %c0_24] : memref<1x384x8xf32, #tpu.memory_space<vmem>>, vector<1x384x8xf32>
    %47 = vector.shape_cast %46 : vector<1x384x8xf32> to vector<384x8xf32>
    %48 = vector.shape_cast %45 : vector<384x8xf32> to vector<1x384x8xf32>
    tpu.vector_store %arg5[%c0_22, %c0_23, %c0_24], %48 {strides = array<i32>} : memref<1x384x8xf32, #tpu.memory_space<vmem>>, vector<1x384x8xf32>,
    return
  }
  func.func @transform_0(%arg0: i32, %arg1: i32) -> (i32, i32, i32) {
    %c0_i32 = arith.constant 0 : i32
    %c0_i32_0 = arith.constant 0 : i32
    %c0_i32_1 = arith.constant 0 : i32
    return %arg0, %c0_i32, %c0_i32_0 : i32, i32, i32
  }
  func.func @transform_1(%arg0: i32, %arg1: i32) -> (i32, i32) {
    %c0_i32 = arith.constant 0 : i32
    %c0_i32_0 = arith.constant 0 : i32
    %c0_i32_1 = arith.constant 0 : i32
    return %c0_i32, %c0_i32_0 : i32, i32
  }
  func.func @transform_2(%arg0: i32, %arg1: i32) -> (i32, i32) {
    %c0_i32 = arith.constant 0 : i32
    %c0_i32_0 = arith.constant 0 : i32
    %c0_i32_1 = arith.constant 0 : i32
    return %c0_i32, %c0_i32_0 : i32, i32
  }
  func.func @transform_3(%arg0: i32, %arg1: i32) -> (i32, i32, i32) {
    %c0_i32 = arith.constant 0 : i32
    %c0_i32_0 = arith.constant 0 : i32
    return %arg0, %arg1, %c0_i32 : i32, i32, i32
  }
}

</mosaic_0001>

<bundles_post_ra>
// kernel: conv_with_mask_forward_nhwc.1
= control target key start
LH: loop header
LB: loop body
LE: loop exit
PB: predicated region body
PF: predicated region fallthrough
CT: control target
= control target key end

     0   :  { %s7087_s12 = smov 0   ;;  %s7089_s13 = smov 0   ;;  %s9893_s0 = inlined_call_operand.vmem [shape: f32[2,440,4], index: 0, kind: input, shape index: {}]   ;;  %s9894_s1 = inlined_call_operand.vmem [shape: f32[36,8], index: 1, kind: input, shape index: {}]   ;;  %s9895_s2 = inlined_call_operand.vmem [shape: f32[1,8], index: 2, kind: input, shape index: {}]   ;;  %s9896_s3 = inlined_call_operand.vmem [shape: f32[2,384,8], index: 3, kind: output, shape index: {}]  }
   0x1   :  { %s7091_s14 = smov 0  }
   0x2 LB: > { %s25_s15 = sadd.s32 1, %s7053_s13  ;;  %p5459_p0 = scmp.ge.s32.totalorder %s7057_s14, 1  ;;  %s7057_s14 = sphi %s7091_s14, %s13_s14   ;;  %s7053_s13 = sphi %s7089_s13, %s10260_s13   ;;  %s7049_s12 = sphi %s7087_s12, %s10259_s12  }
   0x3   : > { %p27_p1 = scmp.ge.s32.totalorder %s25_s15, 2  ;;  %p151_p2 = scmp.lt.s32.totalorder %s7057_s14, 3 }
   0x5   : > { %s10262_s15 = smov (%p27_p1, %s25_s15), 0  ;;  %p152_p3 = pnand %p5459_p0, %p151_p2 }
   0x7   : > { %155 = sbr.rel (%p152_p3) target bundleno = 1326 (0x52e), region = 32 }
   0xe   : > { %p179_p4 = scmp.lt.s32.totalorder %s7049_s12, 1  ;;  %s7059_s20 = smov 4   ;;  %vm2729_vm0 = vcmask 1043456   ;;  %vm2180_vm1 = vcmask 31744   ;;  %vm2229_vm2 = vcmask 64512   ;;  %vm2278_vm3 = vcmask 97280  }
   0xf   : > { %s7060_s21 = smov 8   ;;  %s7061_s22 = smov 12   ;;  %vm2327_vm4 = vcmask 130048   ;;  %vm2376_vm5 = vcmask 162816   ;;  %vm2425_vm6 = vcmask 195584   ;;  %vm2474_vm7 = vcmask 228352  }
  0x10   : > { %s10264_s12 = smov (!%p179_p4, %s7049_s12), 1  ;;  %s7062_s23 = smov 16   ;;  %vm2523_vm8 = vcmask 261120   ;;  %vm2584_vm9 = vcmask 293888  }
  0x11   : > { %s6995_s16 = smul.u32 440, %s10264_s12  ;;  %s7063_s24 = smov 20  }
  0x12   : > { %s7064_s25 = smov 24   ;;  %s7065_s7 = smov 28  }
  0x13   : > { %s7111_s19 = scalar_lea.vmem %s9893_s0, %s6995_s16  ;;  %s7066_s10 = smov 32  }
  0x14   : > { %v5464_v0 = vld [vmem:[%s7111_s19 + $0x11] sm:$0xff]  ;;  %v5462_v1 = vld [vmem:[%s7111_s19 + $0x1] sm:$0xff]  ;;  %v7118_v2 = vld [vmem:[%s7111_s19 + $0x19] sm:$0xff] }
  0x15   : > { %696 = vrot.lane.b32.xlu1 %v5464_v0, %s7059_s20  ;;  %692 = vrot.lane.b32.xlu0 %v5462_v1, %s7059_s20  ;;  %v5463_v3 = vld [vmem:[%s7111_s19 + $0x9] sm:$0xff]  ;;  %v7128_v5 = vld [vmem:[%s7111_s19 + $0x21] sm:$0xff] }
  0x16   : > { %v7125_v4 = vld [vmem:[%s7111_s19 + $0x29] sm:$0xff]  ;;  %v7135_v6 = vld [vmem:[%s7111_s19 + $0x39] sm:$0xff]  ;;  %v7138_v7 = vld [vmem:[%s7111_s19 + $0x31] sm:$0xff] }
  0x17   : > { %v7145_v8 = vld [vmem:[%s7111_s19 + $0x49] sm:$0xff]  ;;  %v7148_v9 = vld [vmem:[%s7111_s19 + $0x41] sm:$0xff]  ;;  %v7155_v10 = vld [vmem:[%s7111_s19 + $0x59] sm:$0xff] }
  0x18   : > { %v7158_v11 = vld [vmem:[%s7111_s19 + $0x51] sm:$0xff]  ;;  %v7165_v12 = vld [vmem:[%s7111_s19 + $0x69] sm:$0xff]  ;;  %v7168_v13 = vld [vmem:[%s7111_s19 + $0x61] sm:$0xff] }
  0x19   : > { %698 = vrot.lane.b32.xlu1 %v7118_v2, %s7059_s20  ;;  %694 = vrot.lane.b32.xlu0 %v5463_v3, %s7059_s20  ;;  %v5477_v14 = vld [vmem:[%s7111_s19 + $0x79] sm:$0xff]  ;;  %v5476_v15 = vld [vmem:[%s7111_s19 + $0x71] sm:$0xff] }
  0x1a   : > { %v5479_v16 = vld [vmem:[%s7111_s19 + $0x89] sm:$0xff]  ;;  %v5478_v17 = vld [vmem:[%s7111_s19 + $0x81] sm:$0xff]  ;;  %v5481_v18 = vld [vmem:[%s7111_s19 + $0x99] sm:$0xff] }
  0x1b   : > { %v5480_v19 = vld [vmem:[%s7111_s19 + $0x91] sm:$0xff]  ;;  %v5483_v20 = vld [vmem:[%s7111_s19 + $0xa9] sm:$0xff]  ;;  %v5482_v21 = vld [vmem:[%s7111_s19 + $0xa1] sm:$0xff] }
  0x1c   : > { %v5485_v22 = vld [vmem:[%s7111_s19 + $0xb9] sm:$0xff]  ;;  %v5484_v23 = vld [vmem:[%s7111_s19 + $0xb1] sm:$0xff]  ;;  %v5487_v24 = vld [vmem:[%s7111_s19 + $0xc9] sm:$0xff] }
  0x1d   : > { %702 = vrot.lane.b32.xlu1 %v7125_v4, %s7059_s20  ;;  %700 = vrot.lane.b32.xlu0 %v7128_v5, %s7059_s20  ;;  %v5486_v25 = vld [vmem:[%s7111_s19 + $0xc1] sm:$0xff]  ;;  %v5489_v26 = vld [vmem:[%s7111_s19 + $0xd9] sm:$0xff] }
  0x1e   : > { %v5488_v27 = vld [vmem:[%s7111_s19 + $0xd1] sm:$0xff]  ;;  %v5491_v28 = vld [vmem:[%s7111_s19 + $0xe9] sm:$0xff]  ;;  %v5490_v29 = vld [vmem:[%s7111_s19 + $0xe1] sm:$0xff] }
  0x1f   : > { %v5493_v30 = vld [vmem:[%s7111_s19 + $0xf9] sm:$0xff]  ;;  %v5492_v31 = vld [vmem:[%s7111_s19 + $0xf1] sm:$0xff]  ;;  %v5495_v32 = vld [vmem:[%s7111_s19 + $0x109] sm:$0xff] }
  0x20   : > { %v5494_v33 = vld [vmem:[%s7111_s19 + $0x101] sm:$0xff]  ;;  %v5497_v34 = vld [vmem:[%s7111_s19 + $0x119] sm:$0xff]  ;;  %v5496_v35 = vld [vmem:[%s7111_s19 + $0x111] sm:$0xff] }
  0x21   : > { %706 = vrot.lane.b32.xlu1 %v7135_v6, %s7059_s20  ;;  %704 = vrot.lane.b32.xlu0 %v7138_v7, %s7059_s20  ;;  %v5499_v36 = vld [vmem:[%s7111_s19 + $0x129] sm:$0xff]  ;;  %v5498_v37 = vld [vmem:[%s7111_s19 + $0x121] sm:$0xff] }
  0x22   : > { %v5501_v38 = vld [vmem:[%s7111_s19 + $0x139] sm:$0xff]  ;;  %v5500_v39 = vld [vmem:[%s7111_s19 + $0x131] sm:$0xff]  ;;  %v5503_v40 = vld [vmem:[%s7111_s19 + $0x149] sm:$0xff] }
  0x23   : > { %v5502_v41 = vld [vmem:[%s7111_s19 + $0x141] sm:$0xff]  ;;  %v5505_v42 = vld [vmem:[%s7111_s19 + $0x159] sm:$0xff]  ;;  %v5504_v43 = vld [vmem:[%s7111_s19 + $0x151] sm:$0xff] }
  0x24   : > { %v5507_v44 = vld [vmem:[%s7111_s19 + $0x169] sm:$0xff]  ;;  %v5506_v45 = vld [vmem:[%s7111_s19 + $0x161] sm:$0xff]  ;;  %v5509_v46 = vld [vmem:[%s7111_s19 + $0x179] sm:$0xff] }
  0x25   : > { %710 = vrot.lane.b32.xlu1 %v7145_v8, %s7059_s20  ;;  %708 = vrot.lane.b32.xlu0 %v7148_v9, %s7059_s20  ;;  %v5508_v47 = vld [vmem:[%s7111_s19 + $0x171] sm:$0xff]  ;;  %v5510_v49 = vld [vmem:[%s7111_s19 + $0x2] sm:$0xff] }
  0x26   : > { %v5511_v48 = vld [vmem:[%s7111_s19 + $0xa] sm:$0xff]  ;;  %v7247_v50 = vld [vmem:[%s7111_s19 + $0x1a] sm:$0xff]  ;;  %v5512_v51 = vld [vmem:[%s7111_s19 + $0x12] sm:$0xff] }
  0x27   : > { %v7254_v52 = vld [vmem:[%s7111_s19 + $0x2a] sm:$0xff]  ;;  %v7257_v53 = vld [vmem:[%s7111_s19 + $0x22] sm:$0xff]  ;;  %v7264_v54 = vld [vmem:[%s7111_s19 + $0x3a] sm:$0xff] }
  0x28   : > { %v7267_v55 = vld [vmem:[%s7111_s19 + $0x32] sm:$0xff]  ;;  %v7274_v56 = vld [vmem:[%s7111_s19 + $0x4a] sm:$0xff]  ;;  %v7277_v57 = vld [vmem:[%s7111_s19 + $0x42] sm:$0xff] }
  0x29   : > { %714 = vrot.lane.b32.xlu1 %v7155_v10, %s7059_s20  ;;  %712 = vrot.lane.b32.xlu0 %v7158_v11, %s7059_s20  ;;  %v7284_v58 = vld [vmem:[%s7111_s19 + $0x5a] sm:$0xff]  ;;  %v7287_v59 = vld [vmem:[%s7111_s19 + $0x52] sm:$0xff] }
  0x2a   : > { %v7298_v62 = vld [vmem:[%s7111_s19 + $0x6a] sm:$0xff]  ;;  %v7301_v63 = vld [vmem:[%s7111_s19 + $0x62] sm:$0xff]  ;;  %v7312_v3 = vld [vmem:[%s7111_s19 + $0x7a] sm:$0xff] }
  0x2d   : > { %718 = vrot.lane.b32.xlu1 %v7165_v12, %s7059_s20  ;;  %716 = vrot.lane.b32.xlu0 %v7168_v13, %s7059_s20 }
  0x31   : > { %722 = vrot.lane.b32.xlu1 %v5477_v14, %s7059_s20  ;;  %720 = vrot.lane.b32.xlu0 %v5476_v15, %s7059_s20  ;;  %v7315_v14 = vld [vmem:[%s7111_s19 + $0x72] sm:$0xff] }
  0x35   : > { %726 = vrot.lane.b32.xlu1 %v5479_v16, %s7059_s20  ;;  %724 = vrot.lane.b32.xlu0 %v5478_v17, %s7059_s20  ;;  %v7326_v17 = vld [vmem:[%s7111_s19 + $0x8a] sm:$0xff] }
  0x39   : > { %730 = vrot.lane.b32.xlu1 %v5481_v18, %s7059_s20  ;;  %728 = vrot.lane.b32.xlu0 %v5480_v19, %s7059_s20  ;;  %v7329_v18 = vld [vmem:[%s7111_s19 + $0x82] sm:$0xff] }
  0x3d   : > { %734 = vrot.lane.b32.xlu1 %v5483_v20, %s7059_s20  ;;  %732 = vrot.lane.b32.xlu0 %v5482_v21, %s7059_s20  ;;  %v5529_v21 = vld [vmem:[%s7111_s19 + $0x9a] sm:$0xff] }
  0x41   : > { %738 = vrot.lane.b32.xlu1 %v5485_v22, %s7059_s20  ;;  %736 = vrot.lane.b32.xlu0 %v5484_v23, %s7059_s20  ;;  %v5528_v22 = vld [vmem:[%s7111_s19 + $0x92] sm:$0xff] }
  0x45   : > { %742 = vrot.lane.b32.xlu1 %v5487_v24, %s7059_s20  ;;  %740 = vrot.lane.b32.xlu0 %v5486_v25, %s7059_s20  ;;  %v5531_v25 = vld [vmem:[%s7111_s19 + $0xaa] sm:$0xff] }
  0x49   : > { %746 = vrot.lane.b32.xlu1 %v5489_v26, %s7059_s20  ;;  %744 = vrot.lane.b32.xlu0 %v5488_v27, %s7059_s20  ;;  %v5530_v26 = vld [vmem:[%s7111_s19 + $0xa2] sm:$0xff] }
  0x4d   : > { %750 = vrot.lane.b32.xlu1 %v5491_v28, %s7059_s20  ;;  %748 = vrot.lane.b32.xlu0 %v5490_v29, %s7059_s20  ;;  %v5533_v29 = vld [vmem:[%s7111_s19 + $0xba] sm:$0xff] }
  0x51   : > { %754 = vrot.lane.b32.xlu1 %v5493_v30, %s7059_s20  ;;  %752 = vrot.lane.b32.xlu0 %v5492_v31, %s7059_s20  ;;  %v5532_v30 = vld [vmem:[%s7111_s19 + $0xb2] sm:$0xff] }
  0x55   : > { %758 = vrot.lane.b32.xlu1 %v5495_v32, %s7059_s20  ;;  %756 = vrot.lane.b32.xlu0 %v5494_v33, %s7059_s20  ;;  %v5535_v33 = vld [vmem:[%s7111_s19 + $0xca] sm:$0xff] }
  0x59   : > { %762 = vrot.lane.b32.xlu1 %v5497_v34, %s7059_s20  ;;  %760 = vrot.lane.b32.xlu0 %v5496_v35, %s7059_s20  ;;  %v5534_v34 = vld [vmem:[%s7111_s19 + $0xc2] sm:$0xff] }
  0x5d   : > { %766 = vrot.lane.b32.xlu1 %v5499_v36, %s7059_s20  ;;  %764 = vrot.lane.b32.xlu0 %v5498_v37, %s7059_s20  ;;  %v5537_v37 = vld [vmem:[%s7111_s19 + $0xda] sm:$0xff] }
  0x61   : > { %770 = vrot.lane.b32.xlu1 %v5501_v38, %s7059_s20  ;;  %768 = vrot.lane.b32.xlu0 %v5500_v39, %s7059_s20  ;;  %v5536_v38 = vld [vmem:[%s7111_s19 + $0xd2] sm:$0xff] }
  0x65   : > { %774 = vrot.lane.b32.xlu1 %v5503_v40, %s7059_s20  ;;  %772 = vrot.lane.b32.xlu0 %v5502_v41, %s7059_s20  ;;  %v5539_v41 = vld [vmem:[%s7111_s19 + $0xea] sm:$0xff] }
  0x69   : > { %778 = vrot.lane.b32.xlu1 %v5505_v42, %s7059_s20  ;;  %776 = vrot.lane.b32.xlu0 %v5504_v43, %s7059_s20  ;;  %v5538_v42 = vld [vmem:[%s7111_s19 + $0xe2] sm:$0xff] }
  0x6d   : > { %782 = vrot.lane.b32.xlu1 %v5507_v44, %s7059_s20  ;;  %780 = vrot.lane.b32.xlu0 %v5506_v45, %s7059_s20  ;;  %v5541_v45 = vld [vmem:[%s7111_s19 + $0xfa] sm:$0xff] }
  0x71   : > { %786 = vrot.lane.b32.xlu1 %v5509_v46, %s7059_s20  ;;  %784 = vrot.lane.b32.xlu0 %v5508_v47, %s7059_s20  ;;  %v5540_v46 = vld [vmem:[%s7111_s19 + $0xf2] sm:$0xff] }
  0x75   : > { %886 = vrot.lane.b32.xlu1 %v5511_v48, %s7060_s21  ;;  %884 = vrot.lane.b32.xlu0 %v5510_v49, %s7060_s21  ;;  %v5543_v49 = vld [vmem:[%s7111_s19 + $0x10a] sm:$0xff] }
  0x79   : > { %890 = vrot.lane.b32.xlu1 %v7247_v50, %s7060_s21  ;;  %888 = vrot.lane.b32.xlu0 %v5512_v51, %s7060_s21  ;;  %v5542_v51 = vld [vmem:[%s7111_s19 + $0x102] sm:$0xff] }
  0x7d   : > { %894 = vrot.lane.b32.xlu1 %v7254_v52, %s7060_s21  ;;  %892 = vrot.lane.b32.xlu0 %v7257_v53, %s7060_s21 }
  0x81   : > { %898 = vrot.lane.b32.xlu1 %v7264_v54, %s7060_s21  ;;  %896 = vrot.lane.b32.xlu0 %v7267_v55, %s7060_s21 }
  0x85   : > { %902 = vrot.lane.b32.xlu1 %v7274_v56, %s7060_s21  ;;  %900 = vrot.lane.b32.xlu0 %v7277_v57, %s7060_s21 }
  0x87   : > { %v7289_v60 = vpop.permute.xlu1 %696  ;;  %v7291_v61 = vpop.permute.xlu0 %692 }
  0x89   : > { %906 = vrot.lane.b32.xlu1 %v7284_v58, %s7060_s21  ;;  %904 = vrot.lane.b32.xlu0 %v7287_v59, %s7060_s21 }
  0x8b   : > { %v7303_v0 = vpop.permute.xlu1 %698  ;;  %v7305_v1 = vpop.permute.xlu0 %694 }
  0x8d   : > { %910 = vrot.lane.b32.xlu1 %v7298_v62, %s7060_s21  ;;  %908 = vrot.lane.b32.xlu0 %v7301_v63, %s7060_s21 }
  0x8f   : > { %v7317_v15 = vpop.permute.xlu1 %702  ;;  %v7319_v16 = vpop.permute.xlu0 %700 }
  0x91   : > { %914 = vrot.lane.b32.xlu1 %v7312_v3, %s7060_s21  ;;  %912 = vrot.lane.b32.xlu0 %v7315_v14, %s7060_s21 }
  0x93   : > { %v7331_v19 = vpop.permute.xlu1 %706  ;;  %v7333_v20 = vpop.permute.xlu0 %704 }
  0x95   : > { %918 = vrot.lane.b32.xlu1 %v7326_v17, %s7060_s21  ;;  %916 = vrot.lane.b32.xlu0 %v7329_v18, %s7060_s21 }
  0x97   : > { %v7341_v23 = vpop.permute.xlu1 %710  ;;  %v7343_v24 = vpop.permute.xlu0 %708 }
  0x99   : > { %922 = vrot.lane.b32.xlu1 %v5529_v21, %s7060_s21  ;;  %920 = vrot.lane.b32.xlu0 %v5528_v22, %s7060_s21 }
  0x9b   : > { %v7349_v27 = vpop.permute.xlu1 %714  ;;  %v7351_v28 = vpop.permute.xlu0 %712 }
  0x9d   : > { %926 = vrot.lane.b32.xlu1 %v5531_v25, %s7060_s21  ;;  %924 = vrot.lane.b32.xlu0 %v5530_v26, %s7060_s21  ;;  %v5545_v25 = vld [vmem:[%s7111_s19 + $0x11a] sm:$0xff]  ;;  %v5544_v26 = vld [vmem:[%s7111_s19 + $0x112] sm:$0xff] }
  0x9f   : > { %v7357_v31 = vpop.permute.xlu1 %718  ;;  %v7359_v32 = vpop.permute.xlu0 %716 }
  0xa1   : > { %930 = vrot.lane.b32.xlu1 %v5533_v29, %s7060_s21  ;;  %928 = vrot.lane.b32.xlu0 %v5532_v30, %s7060_s21 }
  0xa3   : > { %v7365_v35 = vpop.permute.xlu1 %722  ;;  %v7367_v36 = vpop.permute.xlu0 %720 }
  0xa4   : > { %9985 = vst [vmem:[#allocation2_spill] sm:$0xff] %v7365_v35  ;;  %9986 = vst [vmem:[#allocation3_spill] sm:$0xff] %v7367_v36  ;;  %v5760_v35 = vld [vmem:[%s7111_s19 + $0x81] sm:$0xff] }
  0xa5   : > { %934 = vrot.lane.b32.xlu1 %v5535_v33, %s7060_s21  ;;  %932 = vrot.lane.b32.xlu0 %v5534_v34, %s7060_s21  ;;  %v5547_v33 = vld [vmem:[%s7111_s19 + $0x12a] sm:$0xff]  ;;  %v5546_v34 = vld [vmem:[%s7111_s19 + $0x122] sm:$0xff] }
  0xa7   : > { %v7373_v39 = vpop.permute.xlu1 %726  ;;  %v7375_v40 = vpop.permute.xlu0 %724 }
  0xa8   : > { %9987 = vst [vmem:[#allocation4_spill] sm:$0xff] %v7373_v39  ;;  %9988 = vst [vmem:[#allocation5_spill] sm:$0xff] %v7375_v40  ;;  %v7805_v40 = vld [vmem:[%s7111_s19 + $0x88] sm:$0xff] }
  0xa9   : > { %938 = vrot.lane.b32.xlu1 %v5537_v37, %s7060_s21  ;;  %936 = vrot.lane.b32.xlu0 %v5536_v38, %s7060_s21 }
  0xab   : > { %v7381_v43 = vpop.permute.xlu1 %730  ;;  %v7383_v44 = vpop.permute.xlu0 %728 }
  0xac   : > { %9989 = vst [vmem:[#allocation6_spill] sm:$0xff] %v7381_v43  ;;  %9990 = vst [vmem:[#allocation7_spill] sm:$0xff] %v7383_v44  ;;  %v7653_v43 = vld [vmem:[%s7111_s19 + $0x50] sm:$0xff] }
  0xad   : > { %942 = vrot.lane.b32.xlu1 %v5539_v41, %s7060_s21  ;;  %940 = vrot.lane.b32.xlu0 %v5538_v42, %s7060_s21  ;;  %v5549_v41 = vld [vmem:[%s7111_s19 + $0x13a] sm:$0xff]  ;;  %v5548_v42 = vld [vmem:[%s7111_s19 + $0x132] sm:$0xff] }
  0xaf   : > { %v7389_v47 = vpop.permute.xlu1 %734  ;;  %v7391_v48 = vpop.permute.xlu0 %732 }
  0xb0   : > { %9991 = vst [vmem:[#allocation8_spill] sm:$0xff] %v7389_v47  ;;  %9992 = vst [vmem:[#allocation9_spill] sm:$0xff] %v7391_v48 }
  0xb1   : > { %946 = vrot.lane.b32.xlu1 %v5541_v45, %s7060_s21  ;;  %944 = vrot.lane.b32.xlu0 %v5540_v46, %s7060_s21 }
  0xb3   : > { %v7397_v21 = vpop.permute.xlu1 %738  ;;  %v7399_v22 = vpop.permute.xlu0 %736 }
  0xb4   : > { %9993 = vst [vmem:[#allocation10_spill] sm:$0xff] %v7397_v21  ;;  %9994 = vst [vmem:[#allocation11_spill] sm:$0xff] %v7399_v22 }
  0xb5   : > { %950 = vrot.lane.b32.xlu1 %v5543_v49, %s7060_s21  ;;  %948 = vrot.lane.b32.xlu0 %v5542_v51, %s7060_s21  ;;  %v5551_v49 = vld [vmem:[%s7111_s19 + $0x14a] sm:$0xff]  ;;  %v5550_v51 = vld [vmem:[%s7111_s19 + $0x142] sm:$0xff] }
  0xb7   : > { %v7405_v29 = vpop.permute.xlu1 %742  ;;  %v7407_v30 = vpop.permute.xlu0 %740 }
  0xb8   : > { %9995 = vst [vmem:[#allocation12_spill] sm:$0xff] %v7405_v29  ;;  %9996 = vst [vmem:[#allocation13_spill] sm:$0xff] %v7407_v30 }
  0xb9   : > { %954 = vrot.lane.b32.xlu1 %v5545_v25, %s7060_s21  ;;  %952 = vrot.lane.b32.xlu0 %v5544_v26, %s7060_s21 }
  0xbb   : > { %v7413_v37 = vpop.permute.xlu1 %746  ;;  %v7415_v38 = vpop.permute.xlu0 %744 }
  0xbc   : > { %9997 = vst [vmem:[#allocation14_spill] sm:$0xff] %v7413_v37  ;;  %9998 = vst [vmem:[#allocation15_spill] sm:$0xff] %v7415_v38  ;;  %v7610_v37 = vld [vmem:[%s7111_s19 + $0x48] sm:$0xff] }
  0xbd   : > { %958 = vrot.lane.b32.xlu1 %v5547_v33, %s7060_s21  ;;  %956 = vrot.lane.b32.xlu0 %v5546_v34, %s7060_s21  ;;  %v5553_v33 = vld [vmem:[%s7111_s19 + $0x15a] sm:$0xff]  ;;  %v5552_v34 = vld [vmem:[%s7111_s19 + $0x152] sm:$0xff] }
  0xbf   : > { %v7421_v45 = vpop.permute.xlu1 %750  ;;  %v7423_v46 = vpop.permute.xlu0 %748 }
  0xc0   : > { %9999 = vst [vmem:[#allocation16_spill] sm:$0xff] %v7421_v45  ;;  %10000 = vst [vmem:[#allocation17_spill] sm:$0xff] %v7423_v46 }
  0xc1   : > { %962 = vrot.lane.b32.xlu1 %v5549_v41, %s7060_s21  ;;  %960 = vrot.lane.b32.xlu0 %v5548_v42, %s7060_s21  ;;  %v5555_v41 = vld [vmem:[%s7111_s19 + $0x16a] sm:$0xff]  ;;  %v5554_v42 = vld [vmem:[%s7111_s19 + $0x162] sm:$0xff] }
  0xc3   : > { %v7429_v25 = vpop.permute.xlu1 %754  ;;  %v7431_v26 = vpop.permute.xlu0 %752 }
  0xc4   : > { %10001 = vst [vmem:[#allocation18_spill] sm:$0xff] %v7429_v25  ;;  %10002 = vst [vmem:[#allocation19_spill] sm:$0xff] %v7431_v26 }
  0xc5   : > { %966 = vrot.lane.b32.xlu1 %v5551_v49, %s7060_s21  ;;  %964 = vrot.lane.b32.xlu0 %v5550_v51, %s7060_s21  ;;  %v5556_v49 = vld [vmem:[%s7111_s19 + $0x172] sm:$0xff] }
  0xc7   : > { %v7437_v45 = vpop.permute.xlu1 %758  ;;  %v7439_v46 = vpop.permute.xlu0 %756 }
  0xc8   : > { %10003 = vst [vmem:[#allocation20_spill] sm:$0xff] %v7437_v45  ;;  %10004 = vst [vmem:[#allocation21_spill] sm:$0xff] %v7439_v46  ;;  %v7457_v46 = vld [vmem:[%s7111_s19 + $0x18] sm:$0xff] }
  0xc9   : > { %970 = vrot.lane.b32.xlu1 %v5553_v33, %s7060_s21  ;;  %968 = vrot.lane.b32.xlu0 %v5552_v34, %s7060_s21 }
  0xcb   : > { %v7445_v25 = vpop.permute.xlu1 %762  ;;  %v7447_v26 = vpop.permute.xlu0 %760 }
  0xcc   : > { %10005 = vst [vmem:[#allocation22_spill] sm:$0xff] %v7445_v25  ;;  %10006 = vst [vmem:[#allocation23_spill] sm:$0xff] %v7447_v26 }
  0xcd   : > { %974 = vrot.lane.b32.xlu1 %v5555_v41, %s7060_s21  ;;  %972 = vrot.lane.b32.xlu0 %v5554_v42, %s7060_s21  ;;  %v7467_v41 = vld [vmem:[%s7111_s19 + $0x20] sm:$0xff] }
  0xcf   : > { %v7452_v51 = vpop.permute.xlu1 %766  ;;  %v7454_v45 = vpop.permute.xlu0 %764 }
  0xd0   : > { %10007 = vst [vmem:[#allocation24_spill] sm:$0xff] %v7452_v51  ;;  %10008 = vst [vmem:[#allocation25_spill] sm:$0xff] %v7454_v45 }
  0xd1   : > { %1076 = vrot.lane.b32.xlu1 %v7457_v46, %s7061_s22  ;;  %976 = vrot.lane.b32.xlu0 %v5556_v49, %s7060_s21 }
  0xd3   : > { %v7462_v33 = vpop.permute.xlu1 %770  ;;  %v7464_v34 = vpop.permute.xlu0 %768 }
  0xd4   : > { %10009 = vst [vmem:[#allocation26_spill] sm:$0xff] %v7462_v33  ;;  %10010 = vst [vmem:[#allocation27_spill] sm:$0xff] %v7464_v34  ;;  %v7509_v34 = vld [vmem:[%s7111_s19 + $0x28] sm:$0xff] }
  0xd5   : > { %1268 = vrot.lane.b32.xlu1 %v7118_v2, %s7062_s23  ;;  %1078 = vrot.lane.b32.xlu0 %v7467_v41, %s7061_s22  ;;  %v7486_v2 = vld [vmem:[%s7111_s19 + $0x30] sm:$0xff] }
  0xd7   : > { %v7473_v42 = vpop.permute.xlu1 %774  ;;  %v7475_v51 = vpop.permute.xlu0 %772 }
  0xd8   : > { %10011 = vst [vmem:[#allocation28_spill] sm:$0xff] %v7473_v42  ;;  %10012 = vst [vmem:[#allocation29_spill] sm:$0xff] %v7475_v51 }
  0xd9   : > { %1460 = vrot.lane.b32.xlu1 %v7247_v50, %s7063_s24  ;;  %1270 = vrot.lane.b32.xlu0 %v7128_v5, %s7062_s23  ;;  %v7495_v50 = vld [vmem:[%s9894_s1] sm:$0xff]  ;;  %v7500_v5 = vld [vmem:[%s9894_s1 + $0x8] sm:$0xff] }
  0xda   : > { %10015 = vst [vmem:[#allocation32_spill] sm:$0xff] %v7495_v50  ;;  %10016 = vst [vmem:[#allocation33_spill] sm:$0xff] %v7500_v5 }
  0xdb   : > { %v7481_v49 = vpop.permute.xlu1 %778  ;;  %v7483_v33 = vpop.permute.xlu0 %776 }
  0xdc   : > { %10013 = vst [vmem:[#allocation30_spill] sm:$0xff] %v7481_v49  ;;  %10014 = vst [vmem:[#allocation31_spill] sm:$0xff] %v7483_v33  ;;  %v9898_v49 = vand.u32 4294901760, %v7495_v50  ;;  %v9897_v33 = vand.u32 4294901760, %v7500_v5 }
  0xdd   : > { %1652 = vrot.lane.b32.xlu1 %v7486_v2, %s7064_s25  ;;  %1462 = vrot.lane.b32.xlu0 %v7257_v53, %s7063_s24  ;;  %v7512_v53 = vld [vmem:[%s7111_s19 + $0x38] sm:$0xff] }
  0xde   : > { %v7518_v45 = vpack.c.bf16 %v9897_v33, %v9898_v49 }
  0xdf   : > { %v7504_v42 = vpop.permute.xlu1 %782  ;;  %v7506_v51 = vpop.permute.xlu0 %780 }
  0xe0   : > { %10017 = vst [vmem:[#allocation34_spill] sm:$0xff] %v7504_v42  ;;  %10018 = vst [vmem:[#allocation35_spill] sm:$0xff] %v7506_v51  ;;  %v7527_v42 = vld [vmem:[%s9894_s1 + $0x10] sm:$0xff]  ;;  %v7532_v51 = vld [vmem:[%s9894_s1 + $0x18] sm:$0xff]  ;;  %6684 = vmatprep.subr.bf16.mxu0 %v7518_v45  ;;  %6660 = vmatprep.subr.bf16.mxu1 %v7518_v45 }
  0xe1   : > { %10019 = vst [vmem:[#allocation36_spill] sm:$0xff] %v7518_v45  ;;  %1654 = vrot.lane.b32.xlu1 %v7512_v53, %s7064_s25  ;;  %1080 = vrot.lane.b32.xlu0 %v7509_v34, %s7061_s22  ;;  %10020 = vst [vmem:[#allocation37_spill] sm:$0xff] %v7527_v42  ;;  %v9901_v33 = vand.u32 4294901760, %v7527_v42  ;;  %v9900_v49 = vand.u32 4294901760, %v7532_v51  ;;  %v7599_v42 = vld [vmem:[%s7111_s19 + $0x40] sm:$0xff] }
  0xe2   : > { %10021 = vst [vmem:[#allocation38_spill] sm:$0xff] %v7532_v51  ;;  %6686 = vmatpush3.bf16.msra.mxu0 %v7518_v45  ;;  %6662 = vmatpush3.bf16.msra.mxu1 %v7518_v45 }
  0xe3   : > { %v7538_v25 = vpop.permute.xlu1 %786  ;;  %v7540_v26 = vpop.permute.xlu0 %784  ;;  %v7548_v5 = vpack.c.bf16 %v9900_v49, %v9901_v33 }
  0xe4   : > { %10022 = vst [vmem:[#allocation39_spill] sm:$0xff] %v7538_v25  ;;  %10023 = vst [vmem:[#allocation40_spill] sm:$0xff] %v7540_v26  ;;  %v2576_v26 = vld [vmem:[%s9894_s1 + $0x20] sm:$0xf] }
  0xe5   : > { %10024 = vst [vmem:[#allocation41_spill] sm:$0xff] %v7548_v5  ;;  %1082 = vrot.lane.b32.xlu1 %v7486_v2, %s7061_s22  ;;  %1844 = vrot.lane.b32.xlu0 %v7138_v7, %s7065_s7  ;;  %v7564_v33 = vsel %vm2729_vm0, %v2576_v26, 0 }
  0xe6   : > { %6688 = vmatprep.subr.bf16.mxu0 %v7548_v5  ;;  %6664 = vmatprep.subr.bf16.mxu1 %v7548_v5  ;;  %10025 = vst [vmem:[#allocation42_spill] sm:$0xff] %v7564_v33  ;;  %v7568_v45 = vand.u32 4294901760, %v7564_v33 }
  0xe7   : > { %v7559_v25 = vpop.permute.xlu1 %886  ;;  %v7561_v49 = vpop.permute.xlu0 %884  ;;  %6690 = vmatpush3.bf16.msra.mxu0 %v7548_v5  ;;  %6666 = vmatpush3.bf16.msra.mxu1 %v7548_v5 }
  0xe8   : > { %10026 = vst [vmem:[#allocation43_spill] sm:$0xff] %v7568_v45  ;;  %6421 = vmatprep.subr.mxu0 %v7568_v45  ;;  %6175 = vmatprep.subr.mxu1 %v7568_v45 }
  0xe9   : > { %1846 = vrot.lane.b32.xlu1 %v7135_v6, %s7065_s7  ;;  %1272 = vrot.lane.b32.xlu0 %v7125_v4, %s7062_s23 }
  0xeb   : > { %v7576_v51 = vpop.permute.xlu1 %890  ;;  %v7578_v26 = vpop.permute.xlu0 %888  ;;  %6422 = vmatpush3.msra.mxu0 %v7568_v45  ;;  %6176 = vmatpush3.msra.mxu1 %v7568_v45 }
  0xed   : > { %1274 = vrot.lane.b32.xlu1 %v7138_v7, %s7062_s23  ;;  %2036 = vrot.lane.b32.xlu0 %v7267_v55, %s7066_s10 }
  0xef   : > { %v7586_v4 = vpop.permute.xlu1 %894  ;;  %v7588_v5 = vpop.permute.xlu0 %892 }
  0xf1   : > { %2038 = vrot.lane.b32.xlu1 %v7264_v54, %s7066_s10  ;;  %1464 = vrot.lane.b32.xlu0 %v7254_v52, %s7063_s24 }
  0xf3   : > { %v7594_v33 = vpop.permute.xlu1 %898  ;;  %v7596_v45 = vpop.permute.xlu0 %896 }
  0xf5   : > { %1656 = vrot.lane.b32.xlu1 %v7599_v42, %s7064_s25  ;;  %1466 = vrot.lane.b32.xlu0 %v7267_v55, %s7063_s24 }
  0xf7   : > { %v7605_v7 = vpop.permute.xlu1 %902  ;;  %v7607_v50 = vpop.permute.xlu0 %900 }
  0xf9   : > { %1658 = vrot.lane.b32.xlu1 %v7610_v37, %s7064_s25  ;;  %1084 = vrot.lane.b32.xlu0 %v7512_v53, %s7061_s22 }
  0xfb   : > { %v7616_v52 = vpop.permute.xlu1 %906  ;;  %v7618_v38 = vpop.permute.xlu0 %904 }
  0xfd   : > { %1086 = vrot.lane.b32.xlu1 %v7599_v42, %s7061_s22  ;;  %1848 = vrot.lane.b32.xlu0 %v7148_v9, %s7065_s7 }
  0xff   : > { %v7624_v55 = vpop.permute.xlu1 %910  ;;  %v7626_v29 = vpop.permute.xlu0 %908 }
 0x101   : > { %1850 = vrot.lane.b32.xlu1 %v7145_v8, %s7065_s7  ;;  %1276 = vrot.lane.b32.xlu0 %v7135_v6, %s7062_s23 }
 0x103   : > { %v7632_v30 = vpop.permute.xlu1 %914  ;;  %v7634_v21 = vpop.permute.xlu0 %912 }
 0x104   : > { %10027 = vst [vmem:[#allocation44_spill] sm:$0xff] %v7632_v30  ;;  %10028 = vst [vmem:[#allocation45_spill] sm:$0xff] %v7634_v21 }
 0x105   : > { %1278 = vrot.lane.b32.xlu1 %v7148_v9, %s7062_s23  ;;  %2040 = vrot.lane.b32.xlu0 %v7277_v57, %s7066_s10 }
 0x107   : > { %v7640_v22 = vpop.permute.xlu1 %918  ;;  %v7642_v47 = vpop.permute.xlu0 %916 }
 0x108   : > { %10029 = vst [vmem:[#allocation46_spill] sm:$0xff] %v7640_v22  ;;  %10030 = vst [vmem:[#allocation47_spill] sm:$0xff] %v7642_v47  ;;  %v7664_v22 = vld [vmem:[%s7111_s19 + $0x58] sm:$0xff] }
 0x109   : > { %2042 = vrot.lane.b32.xlu1 %v7274_v56, %s7066_s10  ;;  %1468 = vrot.lane.b32.xlu0 %v7264_v54, %s7063_s24 }
 0x10b   : > { %v7648_v6 = vpop.permute.xlu1 %922  ;;  %v7650_v48 = vpop.permute.xlu0 %920 }
 0x10c   : > { %10031 = vst [vmem:[#allocation48_spill] sm:$0xff] %v7648_v6  ;;  %10032 = vst [vmem:[#allocation49_spill] sm:$0xff] %v7650_v48 }
 0x10d   : > { %1660 = vrot.lane.b32.xlu1 %v7653_v43, %s7064_s25  ;;  %1470 = vrot.lane.b32.xlu0 %v7277_v57, %s7063_s24 }
 0x10f   : > { %v7659_v9 = vpop.permute.xlu1 %926  ;;  %v7661_v44 = vpop.permute.xlu0 %924 }
 0x110   : > { %10033 = vst [vmem:[#allocation50_spill] sm:$0xff] %v7659_v9  ;;  %10034 = vst [vmem:[#allocation51_spill] sm:$0xff] %v7661_v44 }
 0x111   : > { %1662 = vrot.lane.b32.xlu1 %v7664_v22, %s7064_s25  ;;  %1088 = vrot.lane.b32.xlu0 %v7610_v37, %s7061_s22 }
 0x113   : > { %v7670_v54 = vpop.permute.xlu1 %930  ;;  %v7672_v6 = vpop.permute.xlu0 %928 }
 0x114   : > { %10035 = vst [vmem:[#allocation52_spill] sm:$0xff] %v7670_v54  ;;  %10036 = vst [vmem:[#allocation53_spill] sm:$0xff] %v7672_v6 }
 0x115   : > { %1090 = vrot.lane.b32.xlu1 %v7653_v43, %s7061_s22  ;;  %1852 = vrot.lane.b32.xlu0 %v7158_v11, %s7065_s7 }
 0x117   : > { %v7678_v57 = vpop.permute.xlu1 %934  ;;  %v7680_v9 = vpop.permute.xlu0 %932 }
 0x118   : > { %10037 = vst [vmem:[#allocation54_spill] sm:$0xff] %v7678_v57  ;;  %10038 = vst [vmem:[#allocation55_spill] sm:$0xff] %v7680_v9 }
 0x119   : > { %1854 = vrot.lane.b32.xlu1 %v7155_v10, %s7065_s7  ;;  %1280 = vrot.lane.b32.xlu0 %v7145_v8, %s7062_s23 }
 0x11b   : > { %v7686_v54 = vpop.permute.xlu1 %938  ;;  %v7688_v6 = vpop.permute.xlu0 %936 }
 0x11c   : > { %10039 = vst [vmem:[#allocation56_spill] sm:$0xff] %v7686_v54  ;;  %10040 = vst [vmem:[#allocation57_spill] sm:$0xff] %v7688_v6  ;;  %v7707_v6 = vld [vmem:[%s7111_s19 + $0x60] sm:$0xff] }
 0x11d   : > { %1282 = vrot.lane.b32.xlu1 %v7158_v11, %s7062_s23  ;;  %2044 = vrot.lane.b32.xlu0 %v7287_v59, %s7066_s10 }
 0x11f   : > { %v7694_v57 = vpop.permute.xlu1 %942  ;;  %v7696_v9 = vpop.permute.xlu0 %940 }
 0x120   : > { %10041 = vst [vmem:[#allocation58_spill] sm:$0xff] %v7694_v57  ;;  %10042 = vst [vmem:[#allocation59_spill] sm:$0xff] %v7696_v9  ;;  %v7718_v9 = vld [vmem:[%s7111_s19 + $0x68] sm:$0xff] }
 0x121   : > { %2046 = vrot.lane.b32.xlu1 %v7284_v58, %s7066_s10  ;;  %1472 = vrot.lane.b32.xlu0 %v7274_v56, %s7063_s24 }
 0x123   : > { %v7702_v8 = vpop.permute.xlu1 %946  ;;  %v7704_v54 = vpop.permute.xlu0 %944 }
 0x124   : > { %10043 = vst [vmem:[#allocation60_spill] sm:$0xff] %v7702_v8  ;;  %10044 = vst [vmem:[#allocation61_spill] sm:$0xff] %v7704_v54 }
 0x125   : > { %1664 = vrot.lane.b32.xlu1 %v7707_v6, %s7064_s25  ;;  %1474 = vrot.lane.b32.xlu0 %v7287_v59, %s7063_s24 }
 0x127   : > { %v7713_v11 = vpop.permute.xlu1 %950  ;;  %v7715_v57 = vpop.permute.xlu0 %948 }
 0x128   : > { %10045 = vst [vmem:[#allocation62_spill] sm:$0xff] %v7713_v11  ;;  %10046 = vst [vmem:[#allocation63_spill] sm:$0xff] %v7715_v57 }
 0x129   : > { %1666 = vrot.lane.b32.xlu1 %v7718_v9, %s7064_s25  ;;  %1092 = vrot.lane.b32.xlu0 %v7664_v22, %s7061_s22 }
 0x12b   : > { %v7724_v56 = vpop.permute.xlu1 %954  ;;  %v7726_v8 = vpop.permute.xlu0 %952 }
 0x12c   : > { %10047 = vst [vmem:[#allocation64_spill] sm:$0xff] %v7724_v56  ;;  %10048 = vst [vmem:[#allocation65_spill] sm:$0xff] %v7726_v8 }
 0x12d   : > { %1094 = vrot.lane.b32.xlu1 %v7707_v6, %s7061_s22  ;;  %1856 = vrot.lane.b32.xlu0 %v7168_v13, %s7065_s7 }
 0x12f   : > { %v7732_v59 = vpop.permute.xlu1 %958  ;;  %v7734_v11 = vpop.permute.xlu0 %956 }
 0x130   : > { %10049 = vst [vmem:[#allocation66_spill] sm:$0xff] %v7732_v59  ;;  %10050 = vst [vmem:[#allocation67_spill] sm:$0xff] %v7734_v11 }
 0x131   : > { %1858 = vrot.lane.b32.xlu1 %v7165_v12, %s7065_s7  ;;  %1284 = vrot.lane.b32.xlu0 %v7155_v10, %s7062_s23 }
 0x133   : > { %v7740_v56 = vpop.permute.xlu1 %962  ;;  %v7742_v8 = vpop.permute.xlu0 %960 }
 0x134   : > { %10051 = vst [vmem:[#allocation68_spill] sm:$0xff] %v7740_v56  ;;  %10052 = vst [vmem:[#allocation69_spill] sm:$0xff] %v7742_v8  ;;  %v7772_v56 = vld [vmem:[%s7111_s19 + $0x78] sm:$0xff] }
 0x135   : > { %1286 = vrot.lane.b32.xlu1 %v7168_v13, %s7062_s23  ;;  %2048 = vrot.lane.b32.xlu0 %v7301_v63, %s7066_s10  ;;  %v7761_v13 = vld [vmem:[%s7111_s19 + $0x70] sm:$0xff]  ;;  %10060 = vst [vmem:[#allocation77_spill] sm:$0xff] %v7772_v56 }
 0x136   : > { %10057 = vst [vmem:[#allocation74_spill] sm:$0xff] %v7761_v13 }
 0x137   : > { %v7748_v59 = vpop.permute.xlu1 %966  ;;  %v7750_v11 = vpop.permute.xlu0 %964 }
 0x138   : > { %10053 = vst [vmem:[#allocation70_spill] sm:$0xff] %v7748_v59  ;;  %10054 = vst [vmem:[#allocation71_spill] sm:$0xff] %v7750_v11 }
 0x139   : > { %2050 = vrot.lane.b32.xlu1 %v7298_v62, %s7066_s10  ;;  %1476 = vrot.lane.b32.xlu0 %v7284_v58, %s7063_s24  ;;  %v5758_v58 = vld [vmem:[%s7111_s19 + $0x71] sm:$0xff] }
 0x13b   : > { %v7756_v10 = vpop.permute.xlu1 %970  ;;  %v7758_v12 = vpop.permute.xlu0 %968 }
 0x13c   : > { %10055 = vst [vmem:[#allocation72_spill] sm:$0xff] %v7756_v10  ;;  %10056 = vst [vmem:[#allocation73_spill] sm:$0xff] %v7758_v12 }
 0x13d   : > { %1668 = vrot.lane.b32.xlu1 %v7761_v13, %s7064_s25  ;;  %1478 = vrot.lane.b32.xlu0 %v7301_v63, %s7063_s24  ;;  %v5759_v63 = vld [vmem:[%s7111_s19 + $0x79] sm:$0xff] }
 0x13f   : > { %v7767_v59 = vpop.permute.xlu1 %974  ;;  %v7769_v11 = vpop.permute.xlu0 %972 }
 0x140   : > { %10058 = vst [vmem:[#allocation75_spill] sm:$0xff] %v7767_v59  ;;  %10059 = vst [vmem:[#allocation76_spill] sm:$0xff] %v7769_v11  ;;  %v5616_v59 = vld [vmem:[%s7111_s19 + $0x69] sm:$0xff] }
 0x141   : > { %1670 = vrot.lane.b32.xlu1 %v7772_v56, %s7064_s25  ;;  %1096 = vrot.lane.b32.xlu0 %v7718_v9, %s7061_s22 }
 0x143   : > { %v1077_v10 = vpop.permute.xlu1 %1076  ;;  %v7779_v12 = vpop.permute.xlu0 %976 }
 0x144   : > { %10061 = vst [vmem:[#allocation78_spill] sm:$0xff] %v7779_v12 }
 0x145   : > { %1098 = vrot.lane.b32.xlu1 %v7761_v13, %s7061_s22  ;;  %1860 = vrot.lane.b32.xlu0 %v5758_v58, %s7065_s7 }
 0x147   : > { %v1269_v11 = vpop.permute.xlu1 %1268  ;;  %v1079_v8 = vpop.permute.xlu0 %1078 }
 0x149   : > { %1862 = vrot.lane.b32.xlu1 %v5759_v63, %s7065_s7  ;;  %1288 = vrot.lane.b32.xlu0 %v5616_v59, %s7062_s23  ;;  %v212_v59 = vld [vmem:[%s7111_s19 + $0x80] sm:$0xff] }
 0x14b   : > { %v1461_v57 = vpop.permute.xlu1 %1460  ;;  %v1271_v54 = vpop.permute.xlu0 %1270 }
 0x14d   : > { %1290 = vrot.lane.b32.xlu1 %v5758_v58, %s7062_s23  ;;  %2052 = vrot.lane.b32.xlu0 %v7315_v14, %s7066_s10  ;;  %v196_v58 = vld [vmem:[%s7111_s19] sm:$0xff] }
 0x14f   : > { %v1653_v12 = vpop.permute.xlu1 %1652  ;;  %v1463_v44 = vpop.permute.xlu0 %1462 }
 0x151   : > { %2054 = vrot.lane.b32.xlu1 %v7312_v3, %s7066_s10  ;;  %1480 = vrot.lane.b32.xlu0 %v7298_v62, %s7063_s24  ;;  %v2181_v62 = vsel %vm2180_vm1, %v196_v58, %v7291_v61 }
 0x152   : > { %v2230_v30 = vsel %vm2229_vm2, %v2181_v62, %v7561_v49 }
 0x153   : > { %v1655_v48 = vpop.permute.xlu1 %1654  ;;  %v7795_v39 = vpop.permute.xlu0 %1080  ;;  %v2279_v21 = vsel %vm2278_vm3, %v2230_v30, %v1077_v10  ;;  %v7830_v10 = vld [vmem:[%s7111_s19 + $0x89] sm:$0xff] }
 0x154   : > { %v2328_v61 = vsel %vm2327_vm4, %v2279_v21, %v1269_v11 }
 0x155   : > { %1672 = vrot.lane.b32.xlu1 %v212_v59, %s7064_s25  ;;  %1482 = vrot.lane.b32.xlu0 %v7315_v14, %s7063_s24  ;;  %v197_v14 = vld [vmem:[%s7111_s19 + $0x8] sm:$0xff] }
 0x156   : > { %v2182_v58 = vsel %vm2180_vm1, %v197_v14, %v7305_v1 }
 0x157   : > { %v7802_v47 = vpop.permute.xlu1 %1082  ;;  %v1845_v3 = vpop.permute.xlu0 %1844  ;;  %v2231_v30 = vsel %vm2229_vm2, %v2182_v58, %v7559_v25 }
 0x158   : > { %v2280_v21 = vsel %vm2278_vm3, %v2231_v30, %v1079_v8 }
 0x159   : > { %1674 = vrot.lane.b32.xlu1 %v7805_v40, %s7064_s25  ;;  %1100 = vrot.lane.b32.xlu0 %v7772_v56, %s7061_s22  ;;  %v2377_v56 = vsel %vm2376_vm5, %v2328_v61, %v1461_v57 }
 0x15a   : > { %v2426_v49 = vsel %vm2425_vm6, %v2377_v56, %v1653_v12 }
 0x15b   : > { %v1847_v13 = vpop.permute.xlu1 %1846  ;;  %v7818_v36 = vpop.permute.xlu0 %1272  ;;  %v2475_v11 = vsel %vm2474_vm7, %v2426_v49, %v1845_v3 }
 0x15d   : > { %1102 = vrot.lane.b32.xlu1 %v212_v59, %s7061_s22  ;;  %1864 = vrot.lane.b32.xlu0 %v5760_v35, %s7065_s7  ;;  %v2329_v59 = vsel %vm2327_vm4, %v2280_v21, %v1271_v54 }
 0x15e   : > { %v2378_v14 = vsel %vm2376_vm5, %v2329_v59, %v1463_v44 }
 0x15f   : > { %v7834_v1 = vpop.permute.xlu1 %1274  ;;  %v2037_v57 = vpop.permute.xlu0 %2036  ;;  %v2427_v8 = vsel %vm2425_vm6, %v2378_v14, %v1655_v48  ;;  %v7871_v14 = vld [vmem:[%s7111_s19 + $0x90] sm:$0xff] }
 0x160   : > { %v2524_v62 = vsel %vm2523_vm8, %v2475_v11, %v2037_v57  ;;  %v2476_v12 = vsel %vm2474_vm7, %v2427_v8, %v1847_v13  ;;  %v5667_v57 = vld [vmem:[%s7111_s19 + $0x82] sm:$0xff] }
 0x161   : > { %v2586_v25 = vsel %vm2584_vm9, %v2524_v62, 0  ;;  %1866 = vrot.lane.b32.xlu1 %v7830_v10, %s7065_s7  ;;  %1292 = vrot.lane.b32.xlu0 %v5759_v63, %s7062_s23  ;;  %v5666_v63 = vld [vmem:[%s7111_s19 + $0x7a] sm:$0xff] }
 0x162   : > { %v7844_v56 = vand.u32 4294901760, %v2586_v25 }
 0x163   : > { %v2039_v3 = vpop.permute.xlu1 %2038  ;;  %v1465_v54 = vpop.permute.xlu0 %1464 }
 0x164   : > { %v7848_v61 = vsub.f32 %v2586_v25, %v7844_v56  ;;  %v2525_v44 = vsel %vm2523_vm8, %v2476_v12, %v2039_v3 }
 0x165   : > { %v2589_v58 = vsel %vm2584_vm9, %v2525_v44, 0  ;;  %1294 = vrot.lane.b32.xlu1 %v5760_v35, %s7062_s23  ;;  %2056 = vrot.lane.b32.xlu0 %v7329_v18, %s7066_s10  ;;  %v7881_v44 = vld [vmem:[%s7111_s19 + $0x98] sm:$0xff] }
 0x166   : > { %10062 = vst [vmem:[#allocation79_spill] sm:$0xff] %v7848_v61  ;;  %v7855_v48 = vand.u32 4294901760, %v2589_v58  ;;  %v2805_v13 = vand.u32 4294901760, %v7848_v61 }
 0x167   : > { %v1657_v30 = vpop.permute.xlu1 %1656  ;;  %v1467_v49 = vpop.permute.xlu0 %1466 }
 0x168   : > { %v7860_v21 = vsub.f32 %v2589_v58, %v7855_v48  ;;  %6423 = vmatprep.mubr.f32.mxu0 %v2805_v13  ;;  %v2806_v11 = vsub.f32 %v7848_v61, %v2805_v13 }
 0x169   : > { %2058 = vrot.lane.b32.xlu1 %v7326_v17, %s7066_s10  ;;  %1484 = vrot.lane.b32.xlu0 %v5666_v63, %s7063_s24  ;;  %v198_v17 = vld [vmem:[%s7111_s19 + $0x10] sm:$0xff] }
 0x16a   : > { %10063 = vst [vmem:[#allocation80_spill] sm:$0xff] %v7860_v21  ;;  %v2807_v18 = vand.u32 4294901760, %v2806_v11  ;;  %v2815_v35 = vand.u32 4294901760, %v7860_v21  ;;  %v2183_v58 = vsel %vm2180_vm1, %v198_v17, %v7289_v60  ;;  %v5762_v63 = vld [vmem:[%s7111_s19 + $0x91] sm:$0xff]  ;;  %v2184_v60 = vsel %vm2180_vm1, %v7457_v46, %v7303_v0 }
 0x16b   : > { %v1659_v59 = vpop.permute.xlu1 %1658  ;;  %v7868_v62 = vpop.permute.xlu0 %1084  ;;  %v2232_v13 = vsel %vm2229_vm2, %v2183_v58, %v7578_v26  ;;  %v7909_v26 = vld [vmem:[%s7111_s19 + $0x99] sm:$0xff] }
 0x16c   : > { %6177 = vmatprep.mubr.f32.mxu1 %v2807_v18  ;;  %6424 = vmatmul.mubr.f32.vlgmr.msra.gmra.mrb[0].mxu0 %v2815_v35  ;;  %v2816_v25 = vsub.f32 %v7860_v21, %v2815_v35  ;;  %v2281_v11 = vsel %vm2278_vm3, %v2232_v13, %v7795_v39  ;;  %v2233_v39 = vsel %vm2229_vm2, %v2184_v60, %v7576_v51  ;;  %v10144_v21 = vld [vmem:[#allocation63_spill] sm:$0xff] }
 0x16d   : > { %1676 = vrot.lane.b32.xlu1 %v7871_v14, %s7064_s25  ;;  %1486 = vrot.lane.b32.xlu0 %v5667_v57, %s7063_s24  ;;  %v2330_v57 = vsel %vm2327_vm4, %v2281_v11, %v7818_v36  ;;  %v2282_v36 = vsel %vm2278_vm3, %v2233_v39, %v7802_v47 }
 0x16e   : > { %v2817_v8 = vand.u32 4294901760, %v2816_v25  ;;  %v2379_v25 = vsel %vm2376_vm5, %v2330_v57, %v1465_v54  ;;  %v2331_v17 = vsel %vm2327_vm4, %v2282_v36, %v7834_v1 }
 0x16f   : > { %v7878_v12 = vpop.permute.xlu1 %1086  ;;  %v1849_v3 = vpop.permute.xlu0 %1848  ;;  %v2380_v58 = vsel %vm2376_vm5, %v2331_v17, %v1467_v49  ;;  %v5716_v17 = vld [vmem:[%s7111_s19 + $0xa0] sm:$0xff] }
 0x170   : > { %6178 = vmatmul.mubr.f32.vlgmr.msra.gmra.mrb[0].mxu1 %v2817_v8  ;;  %v2429_v47 = vsel %vm2425_vm6, %v2380_v58, %v1659_v59 }
 0x171   : > { %1678 = vrot.lane.b32.xlu1 %v7881_v44, %s7064_s25  ;;  %1104 = vrot.lane.b32.xlu0 %v7805_v40, %s7061_s22  ;;  %v2428_v40 = vsel %vm2425_vm6, %v2379_v25, %v1657_v30  ;;  %v7941_v25 = vld [vmem:[%s7111_s19 + $0x9a] sm:$0xff] }
 0x172   : > { %v2477_v0 = vsel %vm2474_vm7, %v2428_v40, %v1849_v3  ;;  %v5810_v3 = vld [vmem:[%s7111_s19 + $0x92] sm:$0xff] }
 0x173   : > { %v1851_v18 = vpop.permute.xlu1 %1850  ;;  %v7894_v35 = vpop.permute.xlu0 %1276 }
 0x174   : > { %v2478_v1 = vsel %vm2474_vm7, %v2429_v47, %v1851_v18  ;;  %v5668_v18 = vld [vmem:[%s7111_s19 + $0x8a] sm:$0xff] }
 0x175   : > { %1106 = vrot.lane.b32.xlu1 %v7871_v14, %s7061_s22  ;;  %1868 = vrot.lane.b32.xlu0 %v5762_v63, %s7065_s7 }
 0x177   : > { %v7914_v46 = vpop.permute.xlu1 %1278  ;;  %v2041_v54 = vpop.permute.xlu0 %2040 }
 0x178   : > { %v2526_v8 = vsel %vm2523_vm8, %v2477_v0, %v2041_v54 }
 0x179   : > { %v2592_v51 = vsel %vm2584_vm9, %v2526_v8, 0  ;;  %1870 = vrot.lane.b32.xlu1 %v7909_v26, %s7065_s7  ;;  %1296 = vrot.lane.b32.xlu0 %v7830_v10, %s7062_s23 }
 0x17a   : > { %v7926_v30 = vand.u32 4294901760, %v2592_v51 }
 0x17b   : > { %v2043_v13 = vpop.permute.xlu1 %2042  ;;  %v1469_v11 = vpop.permute.xlu0 %1468 }
 0x17c   : > { %v7931_v49 = vsub.f32 %v2592_v51, %v7926_v30  ;;  %v2527_v57 = vsel %vm2523_vm8, %v2478_v1, %v2043_v13  ;;  %v7959_v1 = vld [vmem:[%s7111_s19 + $0xa8] sm:$0xff]  ;;  %v5574_v13 = vld [vmem:[%s7111_s19 + $0x98] sm:$0xff] }
 0x17d   : > { %v2595_v60 = vsel %vm2584_vm9, %v2527_v57, 0  ;;  %1298 = vrot.lane.b32.xlu1 %v5762_v63, %s7062_s23  ;;  %2060 = vrot.lane.b32.xlu0 %v5810_v3, %s7066_s10 }
 0x17e   : > { %10064 = vst [vmem:[#allocation81_spill] sm:$0xff] %v7931_v49  ;;  %v7937_v10 = vand.u32 4294901760, %v2595_v60  ;;  %v2825_v59 = vand.u32 4294901760, %v7931_v49 }
 0x17f   : > { %v1661_v39 = vpop.permute.xlu1 %1660  ;;  %v1471_v40 = vpop.permute.xlu0 %1470 }
 0x180   : > { %v7945_v36 = vsub.f32 %v2595_v60, %v7937_v10  ;;  %6426 = vmatprep.mubr.f32.mxu0 %v2825_v59  ;;  %v2826_v0 = vsub.f32 %v7931_v49, %v2825_v59  ;;  %v2185_v59 = vsel %vm2180_vm1, %v7467_v41, %v7319_v16  ;;  %v2186_v16 = vsel %vm2180_vm1, %v7509_v34, %v7317_v15 }
 0x181   : > { %2062 = vrot.lane.b32.xlu1 %v7941_v25, %s7066_s10  ;;  %1488 = vrot.lane.b32.xlu0 %v5668_v18, %s7063_s24  ;;  %v5764_v18 = vld [vmem:[%s7111_s19 + $0xa1] sm:$0xff] }
 0x182   : > { %10065 = vst [vmem:[#allocation82_spill] sm:$0xff] %v7945_v36  ;;  %v2827_v63 = vand.u32 4294901760, %v2826_v0  ;;  %v2835_v54 = vand.u32 4294901760, %v7945_v36 }
 0x183   : > { %v1663_v8 = vpop.permute.xlu1 %1662  ;;  %v7953_v58 = vpop.permute.xlu0 %1088 }
 0x184   : > { %6180 = vmatprep.mubr.f32.mxu1 %v2827_v63  ;;  %6427 = vmatmul.mubr.f32.gmra.mrb[2].mxu0 %v2835_v54  ;;  %v2836_v51 = vsub.f32 %v7945_v36, %v2835_v54 }
 0x185   : > { %1680 = vrot.lane.b32.xlu1 %v5716_v17, %s7064_s25  ;;  %1490 = vrot.lane.b32.xlu0 %v5810_v3, %s7063_s24  ;;  %v2234_v3 = vsel %vm2229_vm2, %v2185_v59, %v7588_v5  ;;  %v2235_v5 = vsel %vm2229_vm2, %v2186_v16, %v7586_v4 }
 0x186   : > { %v2837_v47 = vand.u32 4294901760, %v2836_v51  ;;  %v2283_v0 = vsel %vm2278_vm3, %v2234_v3, %v7868_v62 }
 0x187   : > { %v7962_v57 = vpop.permute.xlu1 %1090  ;;  %v1853_v60 = vpop.permute.xlu0 %1852  ;;  %v2332_v51 = vsel %vm2327_vm4, %v2283_v0, %v7894_v35  ;;  %v2284_v35 = vsel %vm2278_vm3, %v2235_v5, %v7878_v12 }
 0x188   : > { %6181 = vmatmul.mubr.f32.gmra.mrb[2].mxu1 %v2837_v47  ;;  %v2381_v41 = vsel %vm2376_vm5, %v2332_v51, %v1469_v11  ;;  %v7989_v47 = vld [vmem:[%s7111_s19 + $0xa9] sm:$0xff]  ;;  %v2333_v11 = vsel %vm2327_vm4, %v2284_v35, %v7914_v46 }
 0x189   : > { %1682 = vrot.lane.b32.xlu1 %v7959_v1, %s7064_s25  ;;  %1108 = vrot.lane.b32.xlu0 %v5574_v13, %s7061_s22  ;;  %v2430_v62 = vsel %vm2425_vm6, %v2381_v41, %v1661_v39  ;;  %v2382_v59 = vsel %vm2376_vm5, %v2333_v11, %v1471_v40  ;;  %v8021_v41 = vld [vmem:[%s7111_s19 + $0xaa] sm:$0xff] }
 0x18a   : > { %v2479_v13 = vsel %vm2474_vm7, %v2430_v62, %v1853_v60  ;;  %v2431_v12 = vsel %vm2425_vm6, %v2382_v59, %v1663_v8  ;;  %v5812_v60 = vld [vmem:[%s7111_s19 + $0xa2] sm:$0xff] }
 0x18b   : > { %v1855_v63 = vpop.permute.xlu1 %1854  ;;  %v7975_v54 = vpop.permute.xlu0 %1280 }
 0x18c   : > { %v2480_v46 = vsel %vm2474_vm7, %v2431_v12, %v1855_v63  ;;  %v8039_v12 = vld [vmem:[%s7111_s19 + $0xb8] sm:$0xff] }
 0x18d   : > { %1110 = vrot.lane.b32.xlu1 %v5716_v17, %s7061_s22  ;;  %1872 = vrot.lane.b32.xlu0 %v5764_v18, %s7065_s7 }
 0x18f   : > { %v7994_v15 = vpop.permute.xlu1 %1282  ;;  %v2045_v34 = vpop.permute.xlu0 %2044 }
 0x190   : > { %v2528_v17 = vsel %vm2523_vm8, %v2479_v13, %v2045_v34  ;;  %v5718_v34 = vld [vmem:[%s7111_s19 + $0xb0] sm:$0xff] }
 0x191   : > { %v2598_v4 = vsel %vm2584_vm9, %v2528_v17, 0  ;;  %1874 = vrot.lane.b32.xlu1 %v7989_v47, %s7065_s7  ;;  %1300 = vrot.lane.b32.xlu0 %v7909_v26, %s7062_s23 }
 0x192   : > { %v8006_v39 = vand.u32 4294901760, %v2598_v4 }
 0x193   : > { %v2047_v3 = vpop.permute.xlu1 %2046  ;;  %v1473_v0 = vpop.permute.xlu0 %1472 }
 0x194   : > { %v8011_v40 = vsub.f32 %v2598_v4, %v8006_v39  ;;  %v2529_v51 = vsel %vm2523_vm8, %v2480_v46, %v2047_v3  ;;  %v2187_v3 = vsel %vm2180_vm1, %v7486_v2, %v7333_v20  ;;  %v2188_v20 = vsel %vm2180_vm1, %v7512_v53, %v7331_v19 }
 0x195   : > { %v2601_v16 = vsel %vm2584_vm9, %v2529_v51, 0  ;;  %1302 = vrot.lane.b32.xlu1 %v5764_v18, %s7062_s23  ;;  %2064 = vrot.lane.b32.xlu0 %v5812_v60, %s7066_s10  ;;  %v5766_v51 = vld [vmem:[%s7111_s19 + $0xb1] sm:$0xff] }
 0x196   : > { %10066 = vst [vmem:[#allocation83_spill] sm:$0xff] %v8011_v40  ;;  %v8017_v26 = vand.u32 4294901760, %v2601_v16  ;;  %v2845_v8 = vand.u32 4294901760, %v8011_v40 }
 0x197   : > { %v1665_v63 = vpop.permute.xlu1 %1664  ;;  %v1475_v5 = vpop.permute.xlu0 %1474 }
 0x198   : > { %v8024_v62 = vsub.f32 %v2601_v16, %v8017_v26  ;;  %6429 = vmatprep.mubr.f32.mxu0 %v2845_v8  ;;  %v2846_v35 = vsub.f32 %v8011_v40, %v2845_v8 }
 0x199   : > { %2066 = vrot.lane.b32.xlu1 %v8021_v41, %s7066_s10  ;;  %1492 = vrot.lane.b32.xlu0 %v7941_v25, %s7063_s24 }
 0x19a   : > { %10067 = vst [vmem:[#allocation84_spill] sm:$0xff] %v8024_v62  ;;  %v2847_v18 = vand.u32 4294901760, %v2846_v35  ;;  %v2855_v13 = vand.u32 4294901760, %v8024_v62 }
 0x19b   : > { %v1667_v11 = vpop.permute.xlu1 %1666  ;;  %v8033_v17 = vpop.permute.xlu0 %1092 }
 0x19c   : > { %6183 = vmatprep.mubr.f32.mxu1 %v2847_v18  ;;  %6430 = vmatmul.mubr.f32.gmra.mrb[4].mxu0 %v2855_v13  ;;  %v2856_v59 = vsub.f32 %v8024_v62, %v2855_v13  ;;  %v9018_v62 = vld [vmem:[%s7111_s19 + $0x178] sm:$0xff] }
 0x19d   : > { %1684 = vrot.lane.b32.xlu1 %v5718_v34, %s7064_s25  ;;  %1494 = vrot.lane.b32.xlu0 %v5812_v60, %s7063_s24  ;;  %v2236_v60 = vsel %vm2229_vm2, %v2187_v3, %v7596_v45  ;;  %v2237_v45 = vsel %vm2229_vm2, %v2188_v20, %v7594_v33 }
 0x19e   : > { %v2857_v4 = vand.u32 4294901760, %v2856_v59  ;;  %v2285_v16 = vsel %vm2278_vm3, %v2236_v60, %v7953_v58 }
 0x19f   : > { %v8041_v25 = vpop.permute.xlu1 %1094  ;;  %v1857_v46 = vpop.permute.xlu0 %1856  ;;  %v2334_v18 = vsel %vm2327_vm4, %v2285_v16, %v7975_v54  ;;  %v2286_v54 = vsel %vm2278_vm3, %v2237_v45, %v7962_v57 }
 0x1a0   : > { %6184 = vmatmul.mubr.f32.gmra.mrb[4].mxu1 %v2857_v4  ;;  %v2383_v2 = vsel %vm2376_vm5, %v2334_v18, %v1473_v0  ;;  %v2335_v0 = vsel %vm2327_vm4, %v2286_v54, %v7994_v15  ;;  %v5814_v4 = vld [vmem:[%s7111_s19 + $0xb2] sm:$0xff]  ;;  %v8101_v18 = vld [vmem:[%s7111_s19 + $0xba] sm:$0xff] }
 0x1a1   : > { %1686 = vrot.lane.b32.xlu1 %v8039_v12, %s7064_s25  ;;  %1112 = vrot.lane.b32.xlu0 %v7959_v1, %s7061_s22  ;;  %v2432_v58 = vsel %vm2425_vm6, %v2383_v2, %v1665_v63  ;;  %v8069_v1 = vld [vmem:[%s7111_s19 + $0xb9] sm:$0xff]  ;;  %v2384_v59 = vsel %vm2376_vm5, %v2335_v0, %v1475_v5 }
 0x1a2   : > { %v2481_v13 = vsel %vm2474_vm7, %v2432_v58, %v1857_v46  ;;  %v2433_v57 = vsel %vm2425_vm6, %v2384_v59, %v1667_v11  ;;  %v5720_v54 = vld [vmem:[%s7111_s19 + $0xc0] sm:$0xff]  ;;  %v8119_v59 = vld [vmem:[%s7111_s19 + $0xc8] sm:$0xff] }
 0x1a3   : > { %v1859_v8 = vpop.permute.xlu1 %1858  ;;  %v8055_v35 = vpop.permute.xlu0 %1284 }
 0x1a4   : > { %v2482_v15 = vsel %vm2474_vm7, %v2433_v57, %v1859_v8  ;;  %v2189_v57 = vsel %vm2180_vm1, %v7599_v42, %v7343_v24  ;;  %v2190_v24 = vsel %vm2180_vm1, %v7610_v37, %v7341_v23 }
 0x1a5   : > { %1114 = vrot.lane.b32.xlu1 %v5718_v34, %s7061_s22  ;;  %1876 = vrot.lane.b32.xlu0 %v5766_v51, %s7065_s7 }
 0x1a7   : > { %v8074_v19 = vpop.permute.xlu1 %1286  ;;  %v2049_v53 = vpop.permute.xlu0 %2048 }
 0x1a8   : > { %v2530_v34 = vsel %vm2523_vm8, %v2481_v13, %v2049_v53 }
 0x1a9   : > { %v2604_v33 = vsel %vm2584_vm9, %v2530_v34, 0  ;;  %1878 = vrot.lane.b32.xlu1 %v8069_v1, %s7065_s7  ;;  %1304 = vrot.lane.b32.xlu0 %v7989_v47, %s7062_s23 }
 0x1aa   : > { %v8086_v63 = vand.u32 4294901760, %v2604_v33 }
 0x1ab   : > { %v2051_v46 = vpop.permute.xlu1 %2050  ;;  %v1477_v3 = vpop.permute.xlu0 %1476 }
 0x1ac   : > { %v8091_v5 = vsub.f32 %v2604_v33, %v8086_v63  ;;  %v2531_v60 = vsel %vm2523_vm8, %v2482_v15, %v2051_v46  ;;  %v5768_v15 = vld [vmem:[%s7111_s19 + $0xc1] sm:$0xff] }
 0x1ad   : > { %v2607_v16 = vsel %vm2584_vm9, %v2531_v60, 0  ;;  %1306 = vrot.lane.b32.xlu1 %v5766_v51, %s7062_s23  ;;  %2068 = vrot.lane.b32.xlu0 %v5814_v4, %s7066_s10 }
 0x1ae   : > { %10068 = vst [vmem:[#allocation85_spill] sm:$0xff] %v8091_v5  ;;  %v8097_v47 = vand.u32 4294901760, %v2607_v16  ;;  %v2865_v11 = vand.u32 4294901760, %v8091_v5 }
 0x1af   : > { %v1669_v8 = vpop.permute.xlu1 %1668  ;;  %v1479_v20 = vpop.permute.xlu0 %1478 }
 0x1b0   : > { %v8104_v2 = vsub.f32 %v2607_v16, %v8097_v47  ;;  %6432 = vmatprep.mubr.f32.mxu0 %v2865_v11  ;;  %v2866_v45 = vsub.f32 %v8091_v5, %v2865_v11 }
 0x1b1   : > { %2070 = vrot.lane.b32.xlu1 %v8101_v18, %s7066_s10  ;;  %1496 = vrot.lane.b32.xlu0 %v8021_v41, %s7063_s24 }
 0x1b2   : > { %10069 = vst [vmem:[#allocation86_spill] sm:$0xff] %v8104_v2  ;;  %v2867_v51 = vand.u32 4294901760, %v2866_v45  ;;  %v2875_v58 = vand.u32 4294901760, %v8104_v2 }
 0x1b3   : > { %v1671_v13 = vpop.permute.xlu1 %1670  ;;  %v8113_v53 = vpop.permute.xlu0 %1096 }
 0x1b4   : > { %6186 = vmatprep.mubr.f32.mxu1 %v2867_v51  ;;  %6433 = vmatmul.mubr.f32.gmra.mrb[6].mxu0 %v2875_v58  ;;  %v2876_v0 = vsub.f32 %v8104_v2, %v2875_v58 }
 0x1b5   : > { %1688 = vrot.lane.b32.xlu1 %v5720_v54, %s7064_s25  ;;  %1498 = vrot.lane.b32.xlu0 %v5814_v4, %s7063_s24  ;;  %v2238_v4 = vsel %vm2229_vm2, %v2189_v57, %v7607_v50  ;;  %v2239_v50 = vsel %vm2229_vm2, %v2190_v24, %v7605_v7 }
 0x1b6   : > { %v2877_v34 = vand.u32 4294901760, %v2876_v0  ;;  %v2287_v46 = vsel %vm2278_vm3, %v2238_v4, %v8033_v17  ;;  %v8181_v4 = vld [vmem:[%s7111_s19 + $0xca] sm:$0xff] }
 0x1b7   : > { %v8121_v41 = vpop.permute.xlu1 %1098  ;;  %v1861_v33 = vpop.permute.xlu0 %1860  ;;  %v2336_v11 = vsel %vm2327_vm4, %v2287_v46, %v8055_v35  ;;  %v2288_v35 = vsel %vm2278_vm3, %v2239_v50, %v8041_v25  ;;  %v5722_v50 = vld [vmem:[%s7111_s19 + $0xd0] sm:$0xff] }
 0x1b8   : > { %6187 = vmatmul.mubr.f32.gmra.mrb[6].mxu1 %v2877_v34  ;;  %v2385_v42 = vsel %vm2376_vm5, %v2336_v11, %v1477_v3  ;;  %v2337_v3 = vsel %vm2327_vm4, %v2288_v35, %v8074_v19 }
 0x1b9   : > { %1690 = vrot.lane.b32.xlu1 %v8119_v59, %s7064_s25  ;;  %1116 = vrot.lane.b32.xlu0 %v8039_v12, %s7061_s22  ;;  %v2434_v17 = vsel %vm2425_vm6, %v2385_v42, %v1669_v8  ;;  %v8149_v12 = vld [vmem:[%s7111_s19 + $0xc9] sm:$0xff]  ;;  %v2386_v58 = vsel %vm2376_vm5, %v2337_v3, %v1479_v20  ;;  %v8199_v3 = vld [vmem:[%s7111_s19 + $0xd8] sm:$0xff] }
 0x1ba   : > { %v2483_v45 = vsel %vm2474_vm7, %v2434_v17, %v1861_v33  ;;  %v2435_v25 = vsel %vm2425_vm6, %v2386_v58, %v1671_v13  ;;  %v2191_v58 = vsel %vm2180_vm1, %v7653_v43, %v7351_v28  ;;  %v2192_v28 = vsel %vm2180_vm1, %v7664_v22, %v7349_v27 }
 0x1bb   : > { %v1863_v60 = vpop.permute.xlu1 %1862  ;;  %v8135_v16 = vpop.permute.xlu0 %1288 }
 0x1bc   : > { %v2484_v19 = vsel %vm2474_vm7, %v2435_v25, %v1863_v60  ;;  %v5770_v25 = vld [vmem:[%s7111_s19 + $0xd1] sm:$0xff] }
 0x1bd   : > { %1118 = vrot.lane.b32.xlu1 %v5720_v54, %s7061_s22  ;;  %1880 = vrot.lane.b32.xlu0 %v5768_v15, %s7065_s7  ;;  %v5816_v54 = vld [vmem:[%s7111_s19 + $0xc2] sm:$0xff] }
 0x1bf   : > { %v8154_v23 = vpop.permute.xlu1 %1290  ;;  %v2053_v37 = vpop.permute.xlu0 %2052 }
 0x1c0   : > { %v2532_v51 = vsel %vm2523_vm8, %v2483_v45, %v2053_v37 }
 0x1c1   : > { %v2610_v7 = vsel %vm2584_vm9, %v2532_v51, 0  ;;  %1882 = vrot.lane.b32.xlu1 %v8149_v12, %s7065_s7  ;;  %1308 = vrot.lane.b32.xlu0 %v8069_v1, %s7062_s23 }
 0x1c2   : > { %v8166_v8 = vand.u32 4294901760, %v2610_v7 }
 0x1c3   : > { %v2055_v0 = vpop.permute.xlu1 %2054  ;;  %v1481_v34 = vpop.permute.xlu0 %1480 }
 0x1c4   : > { %v8171_v20 = vsub.f32 %v2610_v7, %v8166_v8  ;;  %v2533_v33 = vsel %vm2523_vm8, %v2484_v19, %v2055_v0  ;;  %v2240_v7 = vsel %vm2229_vm2, %v2191_v58, %v7618_v38  ;;  %v2241_v38 = vsel %vm2229_vm2, %v2192_v28, %v7616_v52  ;;  %v5724_v28 = vld [vmem:[%s7111_s19 + $0xe0] sm:$0xff] }
 0x1c5   : > { %v2613_v57 = vsel %vm2584_vm9, %v2533_v33, 0  ;;  %1310 = vrot.lane.b32.xlu1 %v5768_v15, %s7062_s23  ;;  %2072 = vrot.lane.b32.xlu0 %v5816_v54, %s7066_s10 }
 0x1c6   : > { %10070 = vst [vmem:[#allocation87_spill] sm:$0xff] %v8171_v20  ;;  %v8177_v1 = vand.u32 4294901760, %v2613_v57  ;;  %v2885_v13 = vand.u32 4294901760, %v8171_v20 }
 0x1c7   : > { %v1673_v46 = vpop.permute.xlu1 %1672  ;;  %v1483_v60 = vpop.permute.xlu0 %1482 }
 0x1c8   : > { %v8184_v11 = vsub.f32 %v2613_v57, %v8177_v1  ;;  %6435 = vmatprep.mubr.f32.mxu0 %v2885_v13  ;;  %v2886_v24 = vsub.f32 %v8171_v20, %v2885_v13 }
 0x1c9   : > { %2074 = vrot.lane.b32.xlu1 %v8181_v4, %s7066_s10  ;;  %1500 = vrot.lane.b32.xlu0 %v8101_v18, %s7063_s24 }
 0x1ca   : > { %10071 = vst [vmem:[#allocation88_spill] sm:$0xff] %v8184_v11  ;;  %v2887_v15 = vand.u32 4294901760, %v2886_v24  ;;  %v2895_v42 = vand.u32 4294901760, %v8184_v11 }
 0x1cb   : > { %v1675_v17 = vpop.permute.xlu1 %1674  ;;  %v8193_v35 = vpop.permute.xlu0 %1100 }
 0x1cc   : > { %6189 = vmatprep.mubr.f32.mxu1 %v2887_v15  ;;  %6436 = vmatmul.mubr.f32.gmra.mrb[8].mxu0 %v2895_v42  ;;  %v2896_v45 = vsub.f32 %v8184_v11, %v2895_v42  ;;  %v5818_v15 = vld [vmem:[%s7111_s19 + $0xd2] sm:$0xff] }
 0x1cd   : > { %1692 = vrot.lane.b32.xlu1 %v5722_v50, %s7064_s25  ;;  %1502 = vrot.lane.b32.xlu0 %v5816_v54, %s7063_s24  ;;  %v2289_v54 = vsel %vm2278_vm3, %v2240_v7, %v8113_v53 }
 0x1ce   : > { %v2897_v37 = vand.u32 4294901760, %v2896_v45  ;;  %v2338_v33 = vsel %vm2327_vm4, %v2289_v54, %v8135_v16  ;;  %v2290_v16 = vsel %vm2278_vm3, %v2241_v38, %v8121_v41 }
 0x1cf   : > { %v8201_v18 = vpop.permute.xlu1 %1102  ;;  %v1865_v51 = vpop.permute.xlu0 %1864  ;;  %v2387_v43 = vsel %vm2376_vm5, %v2338_v33, %v1481_v34  ;;  %v2339_v34 = vsel %vm2327_vm4, %v2290_v16, %v8154_v23 }
 0x1d0   : > { %6190 = vmatmul.mubr.f32.gmra.mrb[8].mxu1 %v2897_v37  ;;  %v2436_v53 = vsel %vm2425_vm6, %v2387_v43, %v1673_v46  ;;  %v2388_v24 = vsel %vm2376_vm5, %v2339_v34, %v1483_v60  ;;  %v2193_v34 = vsel %vm2180_vm1, %v7707_v6, %v7359_v32  ;;  %v2194_v32 = vsel %vm2180_vm1, %v7718_v9, %v7357_v31 }
 0x1d1   : > { %1694 = vrot.lane.b32.xlu1 %v8199_v3, %s7064_s25  ;;  %1120 = vrot.lane.b32.xlu0 %v8119_v59, %s7061_s22  ;;  %v8229_v59 = vld [vmem:[%s7111_s19 + $0xd9] sm:$0xff]  ;;  %v2485_v57 = vsel %vm2474_vm7, %v2436_v53, %v1865_v51  ;;  %v2437_v41 = vsel %vm2425_vm6, %v2388_v24, %v1675_v17  ;;  %v5772_v24 = vld [vmem:[%s7111_s19 + $0xe1] sm:$0xff] }
 0x1d2   : > { %v8261_v51 = vld [vmem:[%s7111_s19 + $0xda] sm:$0xff] }
 0x1d3   : > { %v1867_v19 = vpop.permute.xlu1 %1866  ;;  %v8215_v0 = vpop.permute.xlu0 %1292 }
 0x1d4   : > { %v2486_v23 = vsel %vm2474_vm7, %v2437_v41, %v1867_v19 }
 0x1d5   : > { %1122 = vrot.lane.b32.xlu1 %v5722_v50, %s7061_s22  ;;  %1884 = vrot.lane.b32.xlu0 %v5770_v25, %s7065_s7 }
 0x1d7   : > { %v8234_v27 = vpop.permute.xlu1 %1294  ;;  %v2057_v22 = vpop.permute.xlu0 %2056 }
 0x1d8   : > { %v2534_v13 = vsel %vm2523_vm8, %v2485_v57, %v2057_v22  ;;  %v8279_v57 = vld [vmem:[%s7111_s19 + $0xe8] sm:$0xff] }
 0x1d9   : > { %v2616_v52 = vsel %vm2584_vm9, %v2534_v13, 0  ;;  %1886 = vrot.lane.b32.xlu1 %v8229_v59, %s7065_s7  ;;  %1312 = vrot.lane.b32.xlu0 %v8149_v12, %s7062_s23  ;;  %v2242_v13 = vsel %vm2229_vm2, %v2193_v34, %v7626_v29  ;;  %v2243_v29 = vsel %vm2229_vm2, %v2194_v32, %v7624_v55 }
 0x1da   : > { %v8246_v46 = vand.u32 4294901760, %v2616_v52 }
 0x1db   : > { %v2059_v42 = vpop.permute.xlu1 %2058  ;;  %v1485_v50 = vpop.permute.xlu0 %1484 }
 0x1dc   : > { %v8251_v60 = vsub.f32 %v2616_v52, %v8246_v46  ;;  %v2535_v45 = vsel %vm2523_vm8, %v2486_v23, %v2059_v42  ;;  %v2291_v52 = vsel %vm2278_vm3, %v2242_v13, %v8193_v35 }
 0x1dd   : > { %v2619_v37 = vsel %vm2584_vm9, %v2535_v45, 0  ;;  %1314 = vrot.lane.b32.xlu1 %v5770_v25, %s7062_s23  ;;  %2076 = vrot.lane.b32.xlu0 %v5818_v15, %s7066_s10  ;;  %v2340_v23 = vsel %vm2327_vm4, %v2291_v52, %v8215_v0  ;;  %v2292_v0 = vsel %vm2278_vm3, %v2243_v29, %v8201_v18 }
 0x1de   : > { %10072 = vst [vmem:[#allocation89_spill] sm:$0xff] %v8251_v60  ;;  %v8257_v12 = vand.u32 4294901760, %v2619_v37  ;;  %v2905_v17 = vand.u32 4294901760, %v8251_v60  ;;  %v2389_v6 = vsel %vm2376_vm5, %v2340_v23, %v1485_v50  ;;  %v2341_v50 = vsel %vm2327_vm4, %v2292_v0, %v8234_v27 }
 0x1df   : > { %v1677_v58 = vpop.permute.xlu1 %1676  ;;  %v1487_v7 = vpop.permute.xlu0 %1486 }
 0x1e0   : > { %v8264_v54 = vsub.f32 %v2619_v37, %v8257_v12  ;;  %6438 = vmatprep.mubr.f32.mxu0 %v2905_v17  ;;  %v2906_v19 = vsub.f32 %v8251_v60, %v2905_v17  ;;  %v2438_v35 = vsel %vm2425_vm6, %v2389_v6, %v1677_v58  ;;  %v2390_v37 = vsel %vm2376_vm5, %v2341_v50, %v1487_v7  ;;  %v5820_v58 = vld [vmem:[%s7111_s19 + $0xe2] sm:$0xff] }
 0x1e1   : > { %2078 = vrot.lane.b32.xlu1 %v8261_v51, %s7066_s10  ;;  %1504 = vrot.lane.b32.xlu0 %v8181_v4, %s7063_s24 }
 0x1e2   : > { %10073 = vst [vmem:[#allocation90_spill] sm:$0xff] %v8264_v54  ;;  %v2907_v25 = vand.u32 4294901760, %v2906_v19  ;;  %v2915_v33 = vand.u32 4294901760, %v8264_v54 }
 0x1e3   : > { %v1679_v43 = vpop.permute.xlu1 %1678  ;;  %v8273_v38 = vpop.permute.xlu0 %1104 }
 0x1e4   : > { %6192 = vmatprep.mubr.f32.mxu1 %v2907_v25  ;;  %6439 = vmatmul.mubr.f32.gmra.mrb[10].mxu0 %v2915_v33  ;;  %v2916_v53 = vsub.f32 %v8264_v54, %v2915_v33  ;;  %v2439_v18 = vsel %vm2425_vm6, %v2390_v37, %v1679_v43 }
 0x1e5   : > { %1696 = vrot.lane.b32.xlu1 %v5724_v28, %s7064_s25  ;;  %1506 = vrot.lane.b32.xlu0 %v5818_v15, %s7063_s24 }
 0x1e6   : > { %v2917_v16 = vand.u32 4294901760, %v2916_v53  ;;  %v8341_v53 = vld [vmem:[%s7111_s19 + $0xea] sm:$0xff] }
 0x1e7   : > { %v8281_v4 = vpop.permute.xlu1 %1106  ;;  %v1869_v22 = vpop.permute.xlu0 %1868 }
 0x1e8   : > { %6193 = vmatmul.mubr.f32.gmra.mrb[10].mxu1 %v2917_v16  ;;  %v2487_v42 = vsel %vm2474_vm7, %v2438_v35, %v1869_v22  ;;  %v8359_v35 = vld [vmem:[%s7111_s19 + $0xf8] sm:$0xff] }
 0x1e9   : > { %1698 = vrot.lane.b32.xlu1 %v8279_v57, %s7064_s25  ;;  %1124 = vrot.lane.b32.xlu0 %v8199_v3, %s7061_s22  ;;  %v8309_v3 = vld [vmem:[%s7111_s19 + $0xe9] sm:$0xff] }
 0x1eb   : > { %v1871_v41 = vpop.permute.xlu1 %1870  ;;  %v8295_v15 = vpop.permute.xlu0 %1296 }
 0x1ec   : > { %v2488_v27 = vsel %vm2474_vm7, %v2439_v18, %v1871_v41  ;;  %v5726_v41 = vld [vmem:[%s7111_s19 + $0xf0] sm:$0xff] }
 0x1ed   : > { %1126 = vrot.lane.b32.xlu1 %v5724_v28, %s7061_s22  ;;  %1888 = vrot.lane.b32.xlu0 %v5772_v24, %s7065_s7 }
 0x1ef   : > { %v8314_v31 = vpop.permute.xlu1 %1298  ;;  %v2061_v9 = vpop.permute.xlu0 %2060 }
 0x1f0   : > { %v2536_v45 = vsel %vm2523_vm8, %v2487_v42, %v2061_v9  ;;  %v10076_v42 = vld [vmem:[#allocation3_spill] sm:$0xff]  ;;  %v10077_v9 = vld [vmem:[#allocation74_spill] sm:$0xff] }
 0x1f1   : > { %v2622_v55 = vsel %vm2584_vm9, %v2536_v45, 0  ;;  %1890 = vrot.lane.b32.xlu1 %v8309_v3, %s7065_s7  ;;  %1316 = vrot.lane.b32.xlu0 %v8229_v59, %s7062_s23  ;;  %v2195_v50 = vsel %vm2180_vm1, %v10077_v9, %v10076_v42  ;;  %v10078_v45 = vld [vmem:[#allocation45_spill] sm:$0xff] }
 0x1f2   : > { %v8326_v17 = vand.u32 4294901760, %v2622_v55  ;;  %v2244_v37 = vsel %vm2229_vm2, %v2195_v50, %v10078_v45 }
 0x1f3   : > { %v2063_v19 = vpop.permute.xlu1 %2062  ;;  %v1489_v25 = vpop.permute.xlu0 %1488  ;;  %v2293_v18 = vsel %vm2278_vm3, %v2244_v37, %v8273_v38 }
 0x1f4   : > { %v8331_v7 = vsub.f32 %v2622_v55, %v8326_v17  ;;  %v2537_v33 = vsel %vm2523_vm8, %v2488_v27, %v2063_v19  ;;  %v5774_v55 = vld [vmem:[%s7111_s19 + $0xf1] sm:$0xff]  ;;  %v2342_v19 = vsel %vm2327_vm4, %v2293_v18, %v8295_v15 }
 0x1f5   : > { %v2625_v28 = vsel %vm2584_vm9, %v2537_v33, 0  ;;  %1318 = vrot.lane.b32.xlu1 %v5772_v24, %s7062_s23  ;;  %2080 = vrot.lane.b32.xlu0 %v5820_v58, %s7066_s10  ;;  %v10079_v33 = vld [vmem:[#allocation2_spill] sm:$0xff] }
 0x1f6   : > { %10074 = vst [vmem:[#allocation91_spill] sm:$0xff] %v8331_v7  ;;  %v8337_v59 = vand.u32 4294901760, %v2625_v28  ;;  %v2925_v43 = vand.u32 4294901760, %v8331_v7 }
 0x1f7   : > { %v1681_v16 = vpop.permute.xlu1 %1680  ;;  %v1491_v22 = vpop.permute.xlu0 %1490 }
 0x1f8   : > { %v8344_v34 = vsub.f32 %v2625_v28, %v8337_v59  ;;  %6441 = vmatprep.mubr.f32.mxu0 %v2925_v43  ;;  %v2926_v13 = vsub.f32 %v8331_v7, %v2925_v43  ;;  %v10080_v28 = vld [vmem:[#allocation77_spill] sm:$0xff] }
 0x1f9   : > { %2082 = vrot.lane.b32.xlu1 %v8341_v53, %s7066_s10  ;;  %1508 = vrot.lane.b32.xlu0 %v8261_v51, %s7063_s24  ;;  %v2196_v43 = vsel %vm2180_vm1, %v10080_v28, %v10079_v33  ;;  %v8421_v33 = vld [vmem:[%s7111_s19 + $0xfa] sm:$0xff] }
 0x1fa   : > { %10075 = vst [vmem:[#allocation92_spill] sm:$0xff] %v8344_v34  ;;  %v2927_v24 = vand.u32 4294901760, %v2926_v13  ;;  %v2935_v52 = vand.u32 4294901760, %v8344_v34  ;;  %v2391_v13 = vsel %vm2376_vm5, %v2342_v19, %v1489_v25 }
 0x1fb   : > { %v1683_v23 = vpop.permute.xlu1 %1682  ;;  %v8353_v32 = vpop.permute.xlu0 %1108 }
 0x1fc   : > { %6195 = vmatprep.mubr.f32.mxu1 %v2927_v24  ;;  %6442 = vmatmul.mubr.f32.gmra.mrb[12].mxu0 %v2935_v52  ;;  %v2936_v6 = vsub.f32 %v8344_v34, %v2935_v52  ;;  %v2440_v24 = vsel %vm2425_vm6, %v2391_v13, %v1681_v16  ;;  %v8389_v52 = vld [vmem:[%s7111_s19 + $0xf9] sm:$0xff] }
 0x1fd   : > { %1700 = vrot.lane.b32.xlu1 %v5726_v41, %s7064_s25  ;;  %1510 = vrot.lane.b32.xlu0 %v5820_v58, %s7063_s24 }
 0x1fe   : > { %v2937_v29 = vand.u32 4294901760, %v2936_v6 }
 0x1ff   : > { %v8361_v51 = vpop.permute.xlu1 %1110  ;;  %v1873_v0 = vpop.permute.xlu0 %1872 }
 0x200   : > { %6196 = vmatmul.mubr.f32.gmra.mrb[12].mxu1 %v2937_v29  ;;  %v2489_v6 = vsel %vm2474_vm7, %v2440_v24, %v1873_v0  ;;  %v5822_v0 = vld [vmem:[%s7111_s19 + $0xf2] sm:$0xff] }
 0x201   : > { %1702 = vrot.lane.b32.xlu1 %v8359_v35, %s7064_s25  ;;  %1128 = vrot.lane.b32.xlu0 %v8279_v57, %s7061_s22  ;;  %v10081_v57 = vld [vmem:[#allocation44_spill] sm:$0xff] }
 0x202   : > { %v2245_v38 = vsel %vm2229_vm2, %v2196_v43, %v10081_v57 }
 0x203   : > { %v1875_v58 = vpop.permute.xlu1 %1874  ;;  %v8375_v27 = vpop.permute.xlu0 %1300  ;;  %v2294_v15 = vsel %vm2278_vm3, %v2245_v38, %v8281_v4  ;;  %v5728_v38 = vld [vmem:[%s7111_s19 + $0x100] sm:$0xff] }
 0x205   : > { %1130 = vrot.lane.b32.xlu1 %v5726_v41, %s7061_s22  ;;  %1892 = vrot.lane.b32.xlu0 %v5774_v55, %s7065_s7  ;;  %v2343_v41 = vsel %vm2327_vm4, %v2294_v15, %v8314_v31 }
 0x206   : > { %v2392_v9 = vsel %vm2376_vm5, %v2343_v41, %v1491_v22 }
 0x207   : > { %v8394_v29 = vpop.permute.xlu1 %1302  ;;  %v2065_v25 = vpop.permute.xlu0 %2064  ;;  %v2441_v4 = vsel %vm2425_vm6, %v2392_v9, %v1683_v23  ;;  %v7029_v9 = vld [vmem:[%s7111_s19 + $0x80] sm:$0xff] }
 0x208   : > { %v2538_v42 = vsel %vm2523_vm8, %v2489_v6, %v2065_v25  ;;  %v2490_v31 = vsel %vm2474_vm7, %v2441_v4, %v1875_v58 }
 0x209   : > { %v2628_v50 = vsel %vm2584_vm9, %v2538_v42, 0  ;;  %1894 = vrot.lane.b32.xlu1 %v8389_v52, %s7065_s7  ;;  %1320 = vrot.lane.b32.xlu0 %v8309_v3, %s7062_s23 }
 0x20a   : > { %v8406_v16 = vand.u32 4294901760, %v2628_v50 }
 0x20b   : > { %v2067_v45 = vpop.permute.xlu1 %2066  ;;  %v1493_v37 = vpop.permute.xlu0 %1492 }
 0x20c   : > { %v8411_v22 = vsub.f32 %v2628_v50, %v8406_v16  ;;  %v2539_v18 = vsel %vm2523_vm8, %v2490_v31, %v2067_v45  ;;  %v10084_v50 = vld [vmem:[#allocation5_spill] sm:$0xff]  ;;  %v5776_v45 = vld [vmem:[%s7111_s19 + $0x101] sm:$0xff] }
 0x20d   : > { %v2631_v19 = vsel %vm2584_vm9, %v2539_v18, 0  ;;  %1322 = vrot.lane.b32.xlu1 %v5774_v55, %s7062_s23  ;;  %2084 = vrot.lane.b32.xlu0 %v5822_v0, %s7066_s10  ;;  %v2197_v4 = vsel %vm2180_vm1, %v7029_v9, %v10084_v50  ;;  %v8469_v50 = vld [vmem:[%s7111_s19 + $0x109] sm:$0xff] }
 0x20e   : > { %10082 = vst [vmem:[#allocation3_spill] sm:$0xff] %v8411_v22  ;;  %v8417_v3 = vand.u32 4294901760, %v2631_v19  ;;  %v2945_v23 = vand.u32 4294901760, %v8411_v22 }
 0x20f   : > { %v1685_v58 = vpop.permute.xlu1 %1684  ;;  %v1495_v28 = vpop.permute.xlu0 %1494 }
 0x210   : > { %v8424_v43 = vsub.f32 %v2631_v19, %v8417_v3  ;;  %6444 = vmatprep.mubr.f32.mxu0 %v2945_v23  ;;  %v2946_v13 = vsub.f32 %v8411_v22, %v2945_v23 }
 0x211   : > { %2086 = vrot.lane.b32.xlu1 %v8421_v33, %s7066_s10  ;;  %1512 = vrot.lane.b32.xlu0 %v8341_v53, %s7063_s24  ;;  %v8439_v53 = vld [vmem:[%s7111_s19 + $0x108] sm:$0xff] }
 0x212   : > { %10083 = vst [vmem:[#allocation74_spill] sm:$0xff] %v8424_v43  ;;  %v2947_v55 = vand.u32 4294901760, %v2946_v13  ;;  %v2955_v57 = vand.u32 4294901760, %v8424_v43 }
 0x213   : > { %v1687_v24 = vpop.permute.xlu1 %1686  ;;  %v8433_v15 = vpop.permute.xlu0 %1112 }
 0x214   : > { %6198 = vmatprep.mubr.f32.mxu1 %v2947_v55  ;;  %6445 = vmatmul.mubr.f32.gmra.mrb[14].mxu0 %v2955_v57  ;;  %v2956_v6 = vsub.f32 %v8424_v43, %v2955_v57  ;;  %v7030_v55 = vld [vmem:[%s7111_s19 + $0x88] sm:$0xff]  ;;  %v10086_v57 = vld [vmem:[#allocation4_spill] sm:$0xff] }
 0x215   : > { %1704 = vrot.lane.b32.xlu1 %v5728_v38, %s7064_s25  ;;  %1514 = vrot.lane.b32.xlu0 %v5822_v0, %s7063_s24  ;;  %v10085_v0 = vld [vmem:[#allocation47_spill] sm:$0xff] }
 0x216   : > { %v2957_v25 = vand.u32 4294901760, %v2956_v6  ;;  %v2246_v31 = vsel %vm2229_vm2, %v2197_v4, %v10085_v0  ;;  %v2198_v6 = vsel %vm2180_vm1, %v7030_v55, %v10086_v57 }
 0x217   : > { %v8441_v41 = vpop.permute.xlu1 %1114  ;;  %v1877_v42 = vpop.permute.xlu0 %1876  ;;  %v2295_v18 = vsel %vm2278_vm3, %v2246_v31, %v8353_v32 }
 0x218   : > { %6199 = vmatmul.mubr.f32.gmra.mrb[14].mxu1 %v2957_v25  ;;  %v2344_v13 = vsel %vm2327_vm4, %v2295_v18, %v8375_v27 }
 0x219   : > { %1706 = vrot.lane.b32.xlu1 %v8439_v53, %s7064_s25  ;;  %1132 = vrot.lane.b32.xlu0 %v8359_v35, %s7061_s22  ;;  %v2393_v25 = vsel %vm2376_vm5, %v2344_v13, %v1493_v37  ;;  %v10087_v35 = vld [vmem:[#allocation46_spill] sm:$0xff] }
 0x21a   : > { %v2247_v32 = vsel %vm2229_vm2, %v2198_v6, %v10087_v35  ;;  %v2442_v9 = vsel %vm2425_vm6, %v2393_v25, %v1685_v58  ;;  %v8501_v35 = vld [vmem:[%s7111_s19 + $0x10a] sm:$0xff] }
 0x21b   : > { %v1879_v19 = vpop.permute.xlu1 %1878  ;;  %v8455_v23 = vpop.permute.xlu0 %1304  ;;  %v2296_v27 = vsel %vm2278_vm3, %v2247_v32, %v8361_v51  ;;  %v2491_v4 = vsel %vm2474_vm7, %v2442_v9, %v1877_v42  ;;  %v5824_v42 = vld [vmem:[%s7111_s19 + $0x102] sm:$0xff] }
 0x21d   : > { %1134 = vrot.lane.b32.xlu1 %v5728_v38, %s7061_s22  ;;  %1896 = vrot.lane.b32.xlu0 %v5776_v45, %s7065_s7  ;;  %v2345_v38 = vsel %vm2327_vm4, %v2296_v27, %v8394_v29 }
 0x21e   : > { %v2394_v18 = vsel %vm2376_vm5, %v2345_v38, %v1495_v28 }
 0x21f   : > { %v8474_v0 = vpop.permute.xlu1 %1306  ;;  %v2069_v37 = vpop.permute.xlu0 %2068  ;;  %v2443_v51 = vsel %vm2425_vm6, %v2394_v18, %v1687_v24 }
 0x220   : > { %v2540_v31 = vsel %vm2523_vm8, %v2491_v4, %v2069_v37  ;;  %v2492_v29 = vsel %vm2474_vm7, %v2443_v51, %v1879_v19  ;;  %v5730_v37 = vld [vmem:[%s7111_s19 + $0x110] sm:$0xff]  ;;  %v8519_v51 = vld [vmem:[%s7111_s19 + $0x118] sm:$0xff] }
 0x221   : > { %v2634_v13 = vsel %vm2584_vm9, %v2540_v31, 0  ;;  %1898 = vrot.lane.b32.xlu1 %v8469_v50, %s7065_s7  ;;  %1324 = vrot.lane.b32.xlu0 %v8389_v52, %s7062_s23 }
 0x222   : > { %v8486_v58 = vand.u32 4294901760, %v2634_v13 }
 0x223   : > { %v2071_v55 = vpop.permute.xlu1 %2070  ;;  %v1497_v57 = vpop.permute.xlu0 %1496 }
 0x224   : > { %v8491_v28 = vsub.f32 %v2634_v13, %v8486_v58  ;;  %v2541_v6 = vsel %vm2523_vm8, %v2492_v29, %v2071_v55  ;;  %v10090_v55 = vld [vmem:[#allocation7_spill] sm:$0xff] }
 0x225   : > { %v2637_v25 = vsel %vm2584_vm9, %v2541_v6, 0  ;;  %1326 = vrot.lane.b32.xlu1 %v5776_v45, %s7062_s23  ;;  %2088 = vrot.lane.b32.xlu0 %v5824_v42, %s7066_s10  ;;  %v2199_v6 = vsel %vm2180_vm1, %v7871_v14, %v10090_v55  ;;  %v10092_v14 = vld [vmem:[#allocation6_spill] sm:$0xff] }
 0x226   : > { %10088 = vst [vmem:[#allocation45_spill] sm:$0xff] %v8491_v28  ;;  %v8497_v52 = vand.u32 4294901760, %v2637_v25  ;;  %v2965_v24 = vand.u32 4294901760, %v8491_v28 }
 0x227   : > { %v1689_v19 = vpop.permute.xlu1 %1688  ;;  %v1499_v32 = vpop.permute.xlu0 %1498 }
 0x228   : > { %v8504_v9 = vsub.f32 %v2637_v25, %v8497_v52  ;;  %6447 = vmatprep.mubr.f32.mxu0 %v2965_v24  ;;  %v2966_v27 = vsub.f32 %v8491_v28, %v2965_v24  ;;  %v10091_v25 = vld [vmem:[#allocation49_spill] sm:$0xff] }
 0x229   : > { %2090 = vrot.lane.b32.xlu1 %v8501_v35, %s7066_s10  ;;  %1516 = vrot.lane.b32.xlu0 %v8421_v33, %s7063_s24  ;;  %v5778_v24 = vld [vmem:[%s7111_s19 + $0x111] sm:$0xff] }
 0x22a   : > { %10089 = vst [vmem:[#allocation2_spill] sm:$0xff] %v8504_v9  ;;  %v2967_v45 = vand.u32 4294901760, %v2966_v27  ;;  %v2975_v4 = vand.u32 4294901760, %v8504_v9 }
 0x22b   : > { %v1691_v38 = vpop.permute.xlu1 %1690  ;;  %v8513_v31 = vpop.permute.xlu0 %1116 }
 0x22c   : > { %6201 = vmatprep.mubr.f32.mxu1 %v2967_v45  ;;  %6448 = vmatmul.mubr.f32.gmra.mrb[16].mxu0 %v2975_v4  ;;  %v2976_v18 = vsub.f32 %v8504_v9, %v2975_v4 }
 0x22d   : > { %1708 = vrot.lane.b32.xlu1 %v5730_v37, %s7064_s25  ;;  %1518 = vrot.lane.b32.xlu0 %v5824_v42, %s7063_s24  ;;  %v2248_v42 = vsel %vm2229_vm2, %v2199_v6, %v10091_v25  ;;  %v8549_v25 = vld [vmem:[%s7111_s19 + $0x119] sm:$0xff] }
 0x22e   : > { %v2977_v13 = vand.u32 4294901760, %v2976_v18  ;;  %v2297_v27 = vsel %vm2278_vm3, %v2248_v42, %v8433_v15 }
 0x22f   : > { %v8521_v33 = vpop.permute.xlu1 %1118  ;;  %v1881_v29 = vpop.permute.xlu0 %1880  ;;  %v2346_v18 = vsel %vm2327_vm4, %v2297_v27, %v8455_v23 }
 0x230   : > { %6202 = vmatmul.mubr.f32.gmra.mrb[16].mxu1 %v2977_v13  ;;  %v2200_v13 = vsel %vm2180_vm1, %v7881_v44, %v10092_v14  ;;  %v2395_v55 = vsel %vm2376_vm5, %v2346_v18, %v1497_v57 }
 0x231   : > { %1710 = vrot.lane.b32.xlu1 %v8519_v51, %s7064_s25  ;;  %1136 = vrot.lane.b32.xlu0 %v8439_v53, %s7061_s22  ;;  %v10093_v53 = vld [vmem:[#allocation48_spill] sm:$0xff]  ;;  %v2444_v6 = vsel %vm2425_vm6, %v2395_v55, %v1689_v19 }
 0x232   : > { %v2249_v15 = vsel %vm2229_vm2, %v2200_v13, %v10093_v53  ;;  %v2493_v42 = vsel %vm2474_vm7, %v2444_v6, %v1881_v29  ;;  %v5826_v29 = vld [vmem:[%s7111_s19 + $0x112] sm:$0xff]  ;;  %v8581_v6 = vld [vmem:[%s7111_s19 + $0x11a] sm:$0xff] }
 0x233   : > { %v1883_v45 = vpop.permute.xlu1 %1882  ;;  %v8535_v4 = vpop.permute.xlu0 %1308  ;;  %v2298_v23 = vsel %vm2278_vm3, %v2249_v15, %v8441_v41 }
 0x235   : > { %1138 = vrot.lane.b32.xlu1 %v5730_v37, %s7061_s22  ;;  %1900 = vrot.lane.b32.xlu0 %v5778_v24, %s7065_s7  ;;  %v2347_v37 = vsel %vm2327_vm4, %v2298_v23, %v8474_v0 }
 0x236   : > { %v2396_v18 = vsel %vm2376_vm5, %v2347_v37, %v1499_v32 }
 0x237   : > { %v8554_v44 = vpop.permute.xlu1 %1310  ;;  %v2073_v57 = vpop.permute.xlu0 %2072  ;;  %v2445_v41 = vsel %vm2425_vm6, %v2396_v18, %v1691_v38 }
 0x238   : > { %v2542_v27 = vsel %vm2523_vm8, %v2493_v42, %v2073_v57  ;;  %v2494_v0 = vsel %vm2474_vm7, %v2445_v41, %v1883_v45 }
 0x239   : > { %v2640_v14 = vsel %vm2584_vm9, %v2542_v27, 0  ;;  %1902 = vrot.lane.b32.xlu1 %v8549_v25, %s7065_s7  ;;  %1328 = vrot.lane.b32.xlu0 %v8469_v50, %s7062_s23  ;;  %v5732_v27 = vld [vmem:[%s7111_s19 + $0x120] sm:$0xff] }
 0x23a   : > { %v8566_v19 = vand.u32 4294901760, %v2640_v14 }
 0x23b   : > { %v2075_v13 = vpop.permute.xlu1 %2074  ;;  %v1501_v55 = vpop.permute.xlu0 %1500 }
 0x23c   : > { %v8571_v32 = vsub.f32 %v2640_v14, %v8566_v19  ;;  %v2543_v53 = vsel %vm2523_vm8, %v2494_v0, %v2075_v13  ;;  %v216_v0 = vld [vmem:[%s7111_s19 + $0xa0] sm:$0xff] }
 0x23d   : > { %v2643_v15 = vsel %vm2584_vm9, %v2543_v53, 0  ;;  %1330 = vrot.lane.b32.xlu1 %v5778_v24, %s7062_s23  ;;  %2092 = vrot.lane.b32.xlu0 %v5826_v29, %s7066_s10 }
 0x23e   : > { %10094 = vst [vmem:[#allocation77_spill] sm:$0xff] %v8571_v32  ;;  %v8577_v50 = vand.u32 4294901760, %v2643_v15  ;;  %v2985_v38 = vand.u32 4294901760, %v8571_v32 }
 0x23f   : > { %v1693_v45 = vpop.permute.xlu1 %1692  ;;  %v1503_v23 = vpop.permute.xlu0 %1502 }
 0x240   : > { %v8584_v42 = vsub.f32 %v2643_v15, %v8577_v50  ;;  %6450 = vmatprep.mubr.f32.mxu0 %v2985_v38  ;;  %v2986_v57 = vsub.f32 %v8571_v32, %v2985_v38  ;;  %v10096_v38 = vld [vmem:[#allocation9_spill] sm:$0xff] }
 0x241   : > { %2094 = vrot.lane.b32.xlu1 %v8581_v6, %s7066_s10  ;;  %1520 = vrot.lane.b32.xlu0 %v8501_v35, %s7063_s24  ;;  %v8600_v35 = vld [vmem:[%s7111_s19 + $0x128] sm:$0xff] }
 0x242   : > { %10095 = vst [vmem:[#allocation44_spill] sm:$0xff] %v8584_v42  ;;  %v2987_v24 = vand.u32 4294901760, %v2986_v57  ;;  %v2995_v37 = vand.u32 4294901760, %v8584_v42  ;;  %v2201_v57 = vsel %vm2180_vm1, %v216_v0, %v10096_v38  ;;  %v10098_v38 = vld [vmem:[#allocation8_spill] sm:$0xff] }
 0x243   : > { %v1695_v18 = vpop.permute.xlu1 %1694  ;;  %v8593_v14 = vpop.permute.xlu0 %1120 }
 0x244   : > { %6204 = vmatprep.mubr.f32.mxu1 %v2987_v24  ;;  %6451 = vmatmul.mubr.f32.gmra.mrb[18].mxu0 %v2995_v37  ;;  %v2996_v41 = vsub.f32 %v8584_v42, %v2995_v37  ;;  %v217_v24 = vld [vmem:[%s7111_s19 + $0xa8] sm:$0xff] }
 0x245   : > { %1712 = vrot.lane.b32.xlu1 %v5732_v27, %s7064_s25  ;;  %1522 = vrot.lane.b32.xlu0 %v5826_v29, %s7063_s24  ;;  %v10097_v29 = vld [vmem:[#allocation51_spill] sm:$0xff]  ;;  %v2202_v9 = vsel %vm2180_vm1, %v217_v24, %v10098_v38 }
 0x246   : > { %v2997_v13 = vand.u32 4294901760, %v2996_v41  ;;  %v2250_v37 = vsel %vm2229_vm2, %v2201_v57, %v10097_v29  ;;  %v5780_v41 = vld [vmem:[%s7111_s19 + $0x121] sm:$0xff]  ;;  %v8629_v29 = vld [vmem:[%s7111_s19 + $0x129] sm:$0xff] }
 0x247   : > { %v8602_v53 = vpop.permute.xlu1 %1122  ;;  %v1885_v15 = vpop.permute.xlu0 %1884  ;;  %v2299_v42 = vsel %vm2278_vm3, %v2250_v37, %v8513_v31 }
 0x248   : > { %6205 = vmatmul.mubr.f32.gmra.mrb[18].mxu1 %v2997_v13  ;;  %v2348_v0 = vsel %vm2327_vm4, %v2299_v42, %v8535_v4 }
 0x249   : > { %1714 = vrot.lane.b32.xlu1 %v8600_v35, %s7064_s25  ;;  %1140 = vrot.lane.b32.xlu0 %v8519_v51, %s7061_s22  ;;  %v2397_v28 = vsel %vm2376_vm5, %v2348_v0, %v1501_v55  ;;  %v10099_v51 = vld [vmem:[#allocation50_spill] sm:$0xff] }
 0x24a   : > { %v2251_v57 = vsel %vm2229_vm2, %v2202_v9, %v10099_v51  ;;  %v2446_v31 = vsel %vm2425_vm6, %v2397_v28, %v1693_v45  ;;  %v5828_v45 = vld [vmem:[%s7111_s19 + $0x122] sm:$0xff] }
 0x24b   : > { %v1887_v32 = vpop.permute.xlu1 %1886  ;;  %v8616_v13 = vpop.permute.xlu0 %1312  ;;  %v2300_v4 = vsel %vm2278_vm3, %v2251_v57, %v8521_v33  ;;  %v2495_v42 = vsel %vm2474_vm7, %v2446_v31, %v1885_v15  ;;  %v8661_v31 = vld [vmem:[%s7111_s19 + $0x12a] sm:$0xff] }
 0x24d   : > { %1142 = vrot.lane.b32.xlu1 %v5732_v27, %s7061_s22  ;;  %1904 = vrot.lane.b32.xlu0 %v5780_v41, %s7065_s7  ;;  %v2349_v27 = vsel %vm2327_vm4, %v2300_v4, %v8554_v44 }
 0x24e   : > { %v2398_v0 = vsel %vm2376_vm5, %v2349_v27, %v1503_v23 }
 0x24f   : > { %v8634_v24 = vpop.permute.xlu1 %1314  ;;  %v2077_v55 = vpop.permute.xlu0 %2076  ;;  %v2447_v28 = vsel %vm2425_vm6, %v2398_v0, %v1695_v18 }
 0x250   : > { %v2544_v37 = vsel %vm2523_vm8, %v2495_v42, %v2077_v55  ;;  %v2496_v44 = vsel %vm2474_vm7, %v2447_v28, %v1887_v32 }
 0x251   : > { %v2646_v9 = vsel %vm2584_vm9, %v2544_v37, 0  ;;  %1906 = vrot.lane.b32.xlu1 %v8629_v29, %s7065_s7  ;;  %1332 = vrot.lane.b32.xlu0 %v8549_v25, %s7062_s23  ;;  %v5734_v37 = vld [vmem:[%s7111_s19 + $0x130] sm:$0xff] }
 0x252   : > { %v8646_v33 = vand.u32 4294901760, %v2646_v9 }
 0x253   : > { %v2079_v15 = vpop.permute.xlu1 %2078  ;;  %v1505_v38 = vpop.permute.xlu0 %1504 }
 0x254   : > { %v8651_v23 = vsub.f32 %v2646_v9, %v8646_v33  ;;  %v2545_v51 = vsel %vm2523_vm8, %v2496_v44, %v2079_v15  ;;  %v218_v44 = vld [vmem:[%s7111_s19 + $0xb0] sm:$0xff] }
 0x255   : > { %v2649_v57 = vsel %vm2584_vm9, %v2545_v51, 0  ;;  %1334 = vrot.lane.b32.xlu1 %v5780_v41, %s7062_s23  ;;  %2096 = vrot.lane.b32.xlu0 %v5828_v45, %s7066_s10 }
 0x256   : > { %10100 = vst [vmem:[#allocation5_spill] sm:$0xff] %v8651_v23  ;;  %v8657_v25 = vand.u32 4294901760, %v2649_v57  ;;  %v3005_v18 = vand.u32 4294901760, %v8651_v23 }
 0x257   : > { %v1697_v32 = vpop.permute.xlu1 %1696  ;;  %v1507_v4 = vpop.permute.xlu0 %1506 }
 0x258   : > { %v8664_v42 = vsub.f32 %v2649_v57, %v8657_v25  ;;  %6453 = vmatprep.mubr.f32.mxu0 %v3005_v18  ;;  %v3006_v55 = vsub.f32 %v8651_v23, %v3005_v18  ;;  %v10102_v18 = vld [vmem:[#allocation11_spill] sm:$0xff] }
 0x259   : > { %2098 = vrot.lane.b32.xlu1 %v8661_v31, %s7066_s10  ;;  %1524 = vrot.lane.b32.xlu0 %v8581_v6, %s7063_s24  ;;  %v8680_v6 = vld [vmem:[%s7111_s19 + $0x138] sm:$0xff] }
 0x25a   : > { %10101 = vst [vmem:[#allocation47_spill] sm:$0xff] %v8664_v42  ;;  %v3007_v41 = vand.u32 4294901760, %v3006_v55  ;;  %v3015_v27 = vand.u32 4294901760, %v8664_v42  ;;  %v2203_v55 = vsel %vm2180_vm1, %v218_v44, %v10102_v18  ;;  %v10104_v18 = vld [vmem:[#allocation10_spill] sm:$0xff] }
 0x25b   : > { %v1699_v0 = vpop.permute.xlu1 %1698  ;;  %v8673_v9 = vpop.permute.xlu0 %1124 }
 0x25c   : > { %6207 = vmatprep.mubr.f32.mxu1 %v3007_v41  ;;  %6454 = vmatmul.mubr.f32.gmra.mrb[20].mxu0 %v3015_v27  ;;  %v3016_v28 = vsub.f32 %v8664_v42, %v3015_v27  ;;  %v219_v41 = vld [vmem:[%s7111_s19 + $0xb8] sm:$0xff] }
 0x25d   : > { %1716 = vrot.lane.b32.xlu1 %v5734_v37, %s7064_s25  ;;  %1526 = vrot.lane.b32.xlu0 %v5828_v45, %s7063_s24  ;;  %v10103_v45 = vld [vmem:[#allocation53_spill] sm:$0xff]  ;;  %v2204_v43 = vsel %vm2180_vm1, %v219_v41, %v10104_v18 }
 0x25e   : > { %v3017_v15 = vand.u32 4294901760, %v3016_v28  ;;  %v2252_v27 = vsel %vm2229_vm2, %v2203_v55, %v10103_v45  ;;  %v5782_v28 = vld [vmem:[%s7111_s19 + $0x131] sm:$0xff]  ;;  %v8709_v45 = vld [vmem:[%s7111_s19 + $0x139] sm:$0xff] }
 0x25f   : > { %v8682_v51 = vpop.permute.xlu1 %1126  ;;  %v1889_v57 = vpop.permute.xlu0 %1888  ;;  %v2301_v42 = vsel %vm2278_vm3, %v2252_v27, %v8593_v14 }
 0x260   : > { %6208 = vmatmul.mubr.f32.gmra.mrb[20].mxu1 %v3017_v15  ;;  %v2350_v44 = vsel %vm2327_vm4, %v2301_v42, %v8616_v13 }
 0x261   : > { %1718 = vrot.lane.b32.xlu1 %v8680_v6, %s7064_s25  ;;  %1144 = vrot.lane.b32.xlu0 %v8600_v35, %s7061_s22  ;;  %v2399_v22 = vsel %vm2376_vm5, %v2350_v44, %v1505_v38  ;;  %v10105_v35 = vld [vmem:[#allocation52_spill] sm:$0xff] }
 0x262   : > { %v2253_v55 = vsel %vm2229_vm2, %v2204_v43, %v10105_v35  ;;  %v2448_v14 = vsel %vm2425_vm6, %v2399_v22, %v1697_v32  ;;  %v5830_v32 = vld [vmem:[%s7111_s19 + $0x132] sm:$0xff] }
 0x263   : > { %v1891_v23 = vpop.permute.xlu1 %1890  ;;  %v8696_v15 = vpop.permute.xlu0 %1316  ;;  %v2302_v13 = vsel %vm2278_vm3, %v2253_v55, %v8602_v53  ;;  %v2497_v42 = vsel %vm2474_vm7, %v2448_v14, %v1889_v57  ;;  %v8741_v14 = vld [vmem:[%s7111_s19 + $0x13a] sm:$0xff] }
 0x265   : > { %1146 = vrot.lane.b32.xlu1 %v5734_v37, %s7061_s22  ;;  %1908 = vrot.lane.b32.xlu0 %v5782_v28, %s7065_s7  ;;  %v2351_v37 = vsel %vm2327_vm4, %v2302_v13, %v8634_v24 }
 0x266   : > { %v2400_v44 = vsel %vm2376_vm5, %v2351_v37, %v1507_v4 }
 0x267   : > { %v8714_v41 = vpop.permute.xlu1 %1318  ;;  %v2081_v38 = vpop.permute.xlu0 %2080  ;;  %v2449_v22 = vsel %vm2425_vm6, %v2400_v44, %v1699_v0 }
 0x268   : > { %v2546_v27 = vsel %vm2523_vm8, %v2497_v42, %v2081_v38  ;;  %v2498_v24 = vsel %vm2474_vm7, %v2449_v22, %v1891_v23 }
 0x269   : > { %v2652_v43 = vsel %vm2584_vm9, %v2546_v27, 0  ;;  %1910 = vrot.lane.b32.xlu1 %v8709_v45, %s7065_s7  ;;  %1336 = vrot.lane.b32.xlu0 %v8629_v29, %s7062_s23  ;;  %v5736_v27 = vld [vmem:[%s7111_s19 + $0x140] sm:$0xff] }
 0x26a   : > { %v8726_v53 = vand.u32 4294901760, %v2652_v43 }
 0x26b   : > { %v2083_v57 = vpop.permute.xlu1 %2082  ;;  %v1509_v18 = vpop.permute.xlu0 %1508 }
 0x26c   : > { %v8731_v4 = vsub.f32 %v2652_v43, %v8726_v53  ;;  %v2547_v35 = vsel %vm2523_vm8, %v2498_v24, %v2083_v57  ;;  %v220_v24 = vld [vmem:[%s7111_s19 + $0xc0] sm:$0xff] }
 0x26d   : > { %v2655_v55 = vsel %vm2584_vm9, %v2547_v35, 0  ;;  %1338 = vrot.lane.b32.xlu1 %v5782_v28, %s7062_s23  ;;  %2100 = vrot.lane.b32.xlu0 %v5830_v32, %s7066_s10 }
 0x26e   : > { %10106 = vst [vmem:[#allocation4_spill] sm:$0xff] %v8731_v4  ;;  %v8737_v29 = vand.u32 4294901760, %v2655_v55  ;;  %v3025_v0 = vand.u32 4294901760, %v8731_v4 }
 0x26f   : > { %v1701_v23 = vpop.permute.xlu1 %1700  ;;  %v1511_v13 = vpop.permute.xlu0 %1510 }
 0x270   : > { %v8744_v42 = vsub.f32 %v2655_v55, %v8737_v29  ;;  %6456 = vmatprep.mubr.f32.mxu0 %v3025_v0  ;;  %v3026_v38 = vsub.f32 %v8731_v4, %v3025_v0  ;;  %v10108_v0 = vld [vmem:[#allocation13_spill] sm:$0xff] }
 0x271   : > { %2102 = vrot.lane.b32.xlu1 %v8741_v14, %s7066_s10  ;;  %1528 = vrot.lane.b32.xlu0 %v8661_v31, %s7063_s24  ;;  %v8760_v31 = vld [vmem:[%s7111_s19 + $0x148] sm:$0xff] }
 0x272   : > { %10107 = vst [vmem:[#allocation46_spill] sm:$0xff] %v8744_v42  ;;  %v3027_v28 = vand.u32 4294901760, %v3026_v38  ;;  %v3035_v37 = vand.u32 4294901760, %v8744_v42  ;;  %v2205_v38 = vsel %vm2180_vm1, %v220_v24, %v10108_v0  ;;  %v10110_v0 = vld [vmem:[#allocation12_spill] sm:$0xff] }
 0x273   : > { %v1703_v44 = vpop.permute.xlu1 %1702  ;;  %v8753_v43 = vpop.permute.xlu0 %1128 }
 0x274   : > { %6210 = vmatprep.mubr.f32.mxu1 %v3027_v28  ;;  %6457 = vmatmul.mubr.f32.gmra.mrb[22].mxu0 %v3035_v37  ;;  %v3036_v22 = vsub.f32 %v8744_v42, %v3035_v37  ;;  %v221_v28 = vld [vmem:[%s7111_s19 + $0xc8] sm:$0xff] }
 0x275   : > { %1720 = vrot.lane.b32.xlu1 %v5736_v27, %s7064_s25  ;;  %1530 = vrot.lane.b32.xlu0 %v5830_v32, %s7063_s24  ;;  %v10109_v32 = vld [vmem:[#allocation55_spill] sm:$0xff]  ;;  %v2206_v34 = vsel %vm2180_vm1, %v221_v28, %v10110_v0 }
 0x276   : > { %v3037_v57 = vand.u32 4294901760, %v3036_v22  ;;  %v2254_v37 = vsel %vm2229_vm2, %v2205_v38, %v10109_v32  ;;  %v5784_v22 = vld [vmem:[%s7111_s19 + $0x141] sm:$0xff]  ;;  %v8789_v32 = vld [vmem:[%s7111_s19 + $0x149] sm:$0xff] }
 0x277   : > { %v8762_v35 = vpop.permute.xlu1 %1130  ;;  %v1893_v55 = vpop.permute.xlu0 %1892  ;;  %v2303_v42 = vsel %vm2278_vm3, %v2254_v37, %v8673_v9 }
 0x278   : > { %6211 = vmatmul.mubr.f32.gmra.mrb[22].mxu1 %v3037_v57  ;;  %v2352_v24 = vsel %vm2327_vm4, %v2303_v42, %v8696_v15 }
 0x279   : > { %1722 = vrot.lane.b32.xlu1 %v8760_v31, %s7064_s25  ;;  %1148 = vrot.lane.b32.xlu0 %v8680_v6, %s7061_s22  ;;  %v2401_v7 = vsel %vm2376_vm5, %v2352_v24, %v1509_v18  ;;  %v10111_v6 = vld [vmem:[#allocation54_spill] sm:$0xff] }
 0x27a   : > { %v2255_v38 = vsel %vm2229_vm2, %v2206_v34, %v10111_v6  ;;  %v2450_v9 = vsel %vm2425_vm6, %v2401_v7, %v1701_v23  ;;  %v5832_v23 = vld [vmem:[%s7111_s19 + $0x142] sm:$0xff] }
 0x27b   : > { %v1895_v4 = vpop.permute.xlu1 %1894  ;;  %v8776_v57 = vpop.permute.xlu0 %1320  ;;  %v2304_v15 = vsel %vm2278_vm3, %v2255_v38, %v8682_v51  ;;  %v2499_v42 = vsel %vm2474_vm7, %v2450_v9, %v1893_v55  ;;  %v8821_v9 = vld [vmem:[%s7111_s19 + $0x14a] sm:$0xff] }
 0x27d   : > { %1150 = vrot.lane.b32.xlu1 %v5736_v27, %s7061_s22  ;;  %1912 = vrot.lane.b32.xlu0 %v5784_v22, %s7065_s7  ;;  %v2353_v27 = vsel %vm2327_vm4, %v2304_v15, %v8714_v41 }
 0x27e   : > { %v2402_v24 = vsel %vm2376_vm5, %v2353_v27, %v1511_v13 }
 0x27f   : > { %v8794_v28 = vpop.permute.xlu1 %1322  ;;  %v2085_v18 = vpop.permute.xlu0 %2084  ;;  %v2451_v7 = vsel %vm2425_vm6, %v2402_v24, %v1703_v44 }
 0x280   : > { %v2548_v37 = vsel %vm2523_vm8, %v2499_v42, %v2085_v18  ;;  %v2500_v41 = vsel %vm2474_vm7, %v2451_v7, %v1895_v4 }
 0x281   : > { %v2658_v34 = vsel %vm2584_vm9, %v2548_v37, 0  ;;  %1914 = vrot.lane.b32.xlu1 %v8789_v32, %s7065_s7  ;;  %1340 = vrot.lane.b32.xlu0 %v8709_v45, %s7062_s23  ;;  %v5738_v37 = vld [vmem:[%s7111_s19 + $0x150] sm:$0xff] }
 0x282   : > { %v8806_v51 = vand.u32 4294901760, %v2658_v34 }
 0x283   : > { %v2087_v55 = vpop.permute.xlu1 %2086  ;;  %v1513_v0 = vpop.permute.xlu0 %1512 }
 0x284   : > { %v8811_v13 = vsub.f32 %v2658_v34, %v8806_v51  ;;  %v2549_v6 = vsel %vm2523_vm8, %v2500_v41, %v2087_v55  ;;  %v222_v41 = vld [vmem:[%s7111_s19 + $0xd0] sm:$0xff] }
 0x285   : > { %v2661_v38 = vsel %vm2584_vm9, %v2549_v6, 0  ;;  %1342 = vrot.lane.b32.xlu1 %v5784_v22, %s7062_s23  ;;  %2104 = vrot.lane.b32.xlu0 %v5832_v23, %s7066_s10 }
 0x286   : > { %10112 = vst [vmem:[#allocation7_spill] sm:$0xff] %v8811_v13  ;;  %v8817_v45 = vand.u32 4294901760, %v2661_v38  ;;  %v3045_v44 = vand.u32 4294901760, %v8811_v13 }
 0x287   : > { %v1705_v4 = vpop.permute.xlu1 %1704  ;;  %v1515_v15 = vpop.permute.xlu0 %1514 }
 0x288   : > { %v8824_v42 = vsub.f32 %v2661_v38, %v8817_v45  ;;  %6459 = vmatprep.mubr.f32.mxu0 %v3045_v44  ;;  %v3046_v18 = vsub.f32 %v8811_v13, %v3045_v44  ;;  %v10114_v44 = vld [vmem:[#allocation15_spill] sm:$0xff] }
 0x289   : > { %2106 = vrot.lane.b32.xlu1 %v8821_v9, %s7066_s10  ;;  %1532 = vrot.lane.b32.xlu0 %v8741_v14, %s7063_s24  ;;  %v8840_v14 = vld [vmem:[%s7111_s19 + $0x158] sm:$0xff] }
 0x28a   : > { %10113 = vst [vmem:[#allocation49_spill] sm:$0xff] %v8824_v42  ;;  %v3047_v22 = vand.u32 4294901760, %v3046_v18  ;;  %v3055_v27 = vand.u32 4294901760, %v8824_v42  ;;  %v2207_v18 = vsel %vm2180_vm1, %v222_v41, %v10114_v44  ;;  %v10116_v44 = vld [vmem:[#allocation14_spill] sm:$0xff] }
 0x28b   : > { %v1707_v24 = vpop.permute.xlu1 %1706  ;;  %v8833_v34 = vpop.permute.xlu0 %1132 }
 0x28c   : > { %6213 = vmatprep.mubr.f32.mxu1 %v3047_v22  ;;  %6460 = vmatmul.mubr.f32.gmra.mrb[24].mxu0 %v3055_v27  ;;  %v3056_v7 = vsub.f32 %v8824_v42, %v3055_v27  ;;  %v223_v22 = vld [vmem:[%s7111_s19 + $0xd8] sm:$0xff] }
 0x28d   : > { %1724 = vrot.lane.b32.xlu1 %v5738_v37, %s7064_s25  ;;  %1534 = vrot.lane.b32.xlu0 %v5832_v23, %s7063_s24  ;;  %v10115_v23 = vld [vmem:[#allocation57_spill] sm:$0xff]  ;;  %v2208_v54 = vsel %vm2180_vm1, %v223_v22, %v10116_v44 }
 0x28e   : > { %v3057_v55 = vand.u32 4294901760, %v3056_v7  ;;  %v2256_v27 = vsel %vm2229_vm2, %v2207_v18, %v10115_v23  ;;  %v5786_v7 = vld [vmem:[%s7111_s19 + $0x151] sm:$0xff]  ;;  %v8869_v23 = vld [vmem:[%s7111_s19 + $0x159] sm:$0xff] }
 0x28f   : > { %v8842_v6 = vpop.permute.xlu1 %1134  ;;  %v1897_v38 = vpop.permute.xlu0 %1896  ;;  %v2305_v42 = vsel %vm2278_vm3, %v2256_v27, %v8753_v43 }
 0x290   : > { %6214 = vmatmul.mubr.f32.gmra.mrb[24].mxu1 %v3057_v55  ;;  %v2354_v41 = vsel %vm2327_vm4, %v2305_v42, %v8776_v57 }
 0x291   : > { %1726 = vrot.lane.b32.xlu1 %v8840_v14, %s7064_s25  ;;  %1152 = vrot.lane.b32.xlu0 %v8760_v31, %s7061_s22  ;;  %v2403_v60 = vsel %vm2376_vm5, %v2354_v41, %v1513_v0  ;;  %v10117_v31 = vld [vmem:[#allocation56_spill] sm:$0xff] }
 0x292   : > { %v2257_v18 = vsel %vm2229_vm2, %v2208_v54, %v10117_v31  ;;  %v2452_v43 = vsel %vm2425_vm6, %v2403_v60, %v1705_v4  ;;  %v5834_v4 = vld [vmem:[%s7111_s19 + $0x152] sm:$0xff] }
 0x293   : > { %v1899_v13 = vpop.permute.xlu1 %1898  ;;  %v8856_v55 = vpop.permute.xlu0 %1324  ;;  %v2306_v57 = vsel %vm2278_vm3, %v2257_v18, %v8762_v35  ;;  %v2501_v42 = vsel %vm2474_vm7, %v2452_v43, %v1897_v38  ;;  %v8901_v43 = vld [vmem:[%s7111_s19 + $0x15a] sm:$0xff] }
 0x295   : > { %1154 = vrot.lane.b32.xlu1 %v5738_v37, %s7061_s22  ;;  %1916 = vrot.lane.b32.xlu0 %v5786_v7, %s7065_s7  ;;  %v2355_v37 = vsel %vm2327_vm4, %v2306_v57, %v8794_v28 }
 0x296   : > { %v2404_v41 = vsel %vm2376_vm5, %v2355_v37, %v1515_v15 }
 0x297   : > { %v8874_v22 = vpop.permute.xlu1 %1326  ;;  %v2089_v0 = vpop.permute.xlu0 %2088  ;;  %v2453_v60 = vsel %vm2425_vm6, %v2404_v41, %v1707_v24 }
 0x298   : > { %v2550_v27 = vsel %vm2523_vm8, %v2501_v42, %v2089_v0  ;;  %v2502_v28 = vsel %vm2474_vm7, %v2453_v60, %v1899_v13 }
 0x299   : > { %v2664_v54 = vsel %vm2584_vm9, %v2550_v27, 0  ;;  %1918 = vrot.lane.b32.xlu1 %v8869_v23, %s7065_s7  ;;  %1344 = vrot.lane.b32.xlu0 %v8789_v32, %s7062_s23  ;;  %v5740_v27 = vld [vmem:[%s7111_s19 + $0x160] sm:$0xff] }
 0x29a   : > { %v8886_v35 = vand.u32 4294901760, %v2664_v54 }
 0x29b   : > { %v2091_v38 = vpop.permute.xlu1 %2090  ;;  %v1517_v44 = vpop.permute.xlu0 %1516 }
 0x29c   : > { %v8891_v15 = vsub.f32 %v2664_v54, %v8886_v35  ;;  %v2551_v31 = vsel %vm2523_vm8, %v2502_v28, %v2091_v38  ;;  %v224_v28 = vld [vmem:[%s7111_s19 + $0xe0] sm:$0xff] }
 0x29d   : > { %v2667_v18 = vsel %vm2584_vm9, %v2551_v31, 0  ;;  %1346 = vrot.lane.b32.xlu1 %v5786_v7, %s7062_s23  ;;  %2108 = vrot.lane.b32.xlu0 %v5834_v4, %s7066_s10 }
 0x29e   : > { %10118 = vst [vmem:[#allocation6_spill] sm:$0xff] %v8891_v15  ;;  %v8897_v32 = vand.u32 4294901760, %v2667_v18  ;;  %v3065_v24 = vand.u32 4294901760, %v8891_v15 }
 0x29f   : > { %v1709_v13 = vpop.permute.xlu1 %1708  ;;  %v1519_v57 = vpop.permute.xlu0 %1518 }
 0x2a0   : > { %v8904_v42 = vsub.f32 %v2667_v18, %v8897_v32  ;;  %6462 = vmatprep.mubr.f32.mxu0 %v3065_v24  ;;  %v3066_v0 = vsub.f32 %v8891_v15, %v3065_v24  ;;  %v10120_v24 = vld [vmem:[#allocation17_spill] sm:$0xff] }
 0x2a1   : > { %2110 = vrot.lane.b32.xlu1 %v8901_v43, %s7066_s10  ;;  %1536 = vrot.lane.b32.xlu0 %v8821_v9, %s7063_s24  ;;  %v8920_v9 = vld [vmem:[%s7111_s19 + $0x168] sm:$0xff] }
 0x2a2   : > { %10119 = vst [vmem:[#allocation48_spill] sm:$0xff] %v8904_v42  ;;  %v3067_v7 = vand.u32 4294901760, %v3066_v0  ;;  %v3075_v37 = vand.u32 4294901760, %v8904_v42  ;;  %v2209_v0 = vsel %vm2180_vm1, %v224_v28, %v10120_v24  ;;  %v10122_v24 = vld [vmem:[#allocation16_spill] sm:$0xff] }
 0x2a3   : > { %v1711_v41 = vpop.permute.xlu1 %1710  ;;  %v8913_v54 = vpop.permute.xlu0 %1136 }
 0x2a4   : > { %6216 = vmatprep.mubr.f32.mxu1 %v3067_v7  ;;  %6463 = vmatmul.mubr.f32.gmra.mrb[26].mxu0 %v3075_v37  ;;  %v3076_v60 = vsub.f32 %v8904_v42, %v3075_v37  ;;  %v225_v7 = vld [vmem:[%s7111_s19 + $0xe8] sm:$0xff] }
 0x2a5   : > { %1728 = vrot.lane.b32.xlu1 %v5740_v27, %s7064_s25  ;;  %1538 = vrot.lane.b32.xlu0 %v5834_v4, %s7063_s24  ;;  %v10121_v4 = vld [vmem:[#allocation59_spill] sm:$0xff]  ;;  %v2210_v11 = vsel %vm2180_vm1, %v225_v7, %v10122_v24 }
 0x2a6   : > { %v3077_v38 = vand.u32 4294901760, %v3076_v60  ;;  %v2258_v37 = vsel %vm2229_vm2, %v2209_v0, %v10121_v4  ;;  %v5788_v60 = vld [vmem:[%s7111_s19 + $0x161] sm:$0xff]  ;;  %v8949_v4 = vld [vmem:[%s7111_s19 + $0x169] sm:$0xff] }
 0x2a7   : > { %v8922_v31 = vpop.permute.xlu1 %1138  ;;  %v1901_v18 = vpop.permute.xlu0 %1900  ;;  %v2307_v42 = vsel %vm2278_vm3, %v2258_v37, %v8833_v34 }
 0x2a8   : > { %6217 = vmatmul.mubr.f32.gmra.mrb[26].mxu1 %v3077_v38  ;;  %v2356_v28 = vsel %vm2327_vm4, %v2307_v42, %v8856_v55 }
 0x2a9   : > { %1730 = vrot.lane.b32.xlu1 %v8920_v9, %s7064_s25  ;;  %1156 = vrot.lane.b32.xlu0 %v8840_v14, %s7061_s22  ;;  %v2405_v20 = vsel %vm2376_vm5, %v2356_v28, %v1517_v44  ;;  %v10123_v14 = vld [vmem:[#allocation58_spill] sm:$0xff] }
 0x2aa   : > { %v2259_v0 = vsel %vm2229_vm2, %v2210_v11, %v10123_v14  ;;  %v2454_v34 = vsel %vm2425_vm6, %v2405_v20, %v1709_v13  ;;  %v5836_v13 = vld [vmem:[%s7111_s19 + $0x162] sm:$0xff] }
 0x2ab   : > { %v1903_v15 = vpop.permute.xlu1 %1902  ;;  %v8936_v38 = vpop.permute.xlu0 %1328  ;;  %v2308_v55 = vsel %vm2278_vm3, %v2259_v0, %v8842_v6  ;;  %v2503_v42 = vsel %vm2474_vm7, %v2454_v34, %v1901_v18  ;;  %v7031_v0 = vld [vmem:[%s9894_s1] sm:$0xff] }
 0x2ad   : > { %1158 = vrot.lane.b32.xlu1 %v5740_v27, %s7061_s22  ;;  %1920 = vrot.lane.b32.xlu0 %v5788_v60, %s7065_s7  ;;  %v2357_v27 = vsel %vm2327_vm4, %v2308_v55, %v8874_v22 }
 0x2ae   : > { %v2406_v28 = vsel %vm2376_vm5, %v2357_v27, %v1519_v57 }
 0x2af   : > { %v8954_v7 = vpop.permute.xlu1 %1330  ;;  %v2093_v44 = vpop.permute.xlu0 %2092  ;;  %v2455_v20 = vsel %vm2425_vm6, %v2406_v28, %v1711_v41 }
 0x2b0   : > { %v2552_v37 = vsel %vm2523_vm8, %v2503_v42, %v2093_v44  ;;  %v2504_v22 = vsel %vm2474_vm7, %v2455_v20, %v1903_v15  ;;  %v7032_v15 = vld [vmem:[%s9894_s1 + $0x8] sm:$0xff]  ;;  %v10127_v42 = vld [vmem:[#allocation33_spill] sm:$0xff] }
 0x2b1   : > { %v2670_v11 = vsel %vm2584_vm9, %v2552_v37, 0  ;;  %1922 = vrot.lane.b32.xlu1 %v8949_v4, %s7065_s7  ;;  %1348 = vrot.lane.b32.xlu0 %v8869_v23, %s7062_s23  ;;  %v10125_v23 = vld [vmem:[#allocation32_spill] sm:$0xff]  ;;  %v10128_v44 = vand.u32 4294901760, %v10127_v42 }
 0x2b2   : > { %v8966_v6 = vand.u32 4294901760, %v2670_v11  ;;  %v10126_v34 = vand.u32 4294901760, %v10125_v23 }
 0x2b3   : > { %v2095_v18 = vpop.permute.xlu1 %2094  ;;  %v1521_v24 = vpop.permute.xlu0 %1520  ;;  %v8989_v27 = vsub.f32 %v7032_v15, %v10128_v44  ;;  %v5742_v44 = vld [vmem:[%s7111_s19 + $0x170] sm:$0xff] }
 0x2b4   : > { %v8971_v57 = vsub.f32 %v2670_v11, %v8966_v6  ;;  %v2553_v14 = vsel %vm2523_vm8, %v2504_v22, %v2095_v18  ;;  %v8979_v41 = vsub.f32 %v7031_v0, %v10126_v34  ;;  %v8995_v11 = vld [vmem:[%s7111_s19 + $0x16a] sm:$0xff] }
 0x2b5   : > { %v2673_v55 = vsel %vm2584_vm9, %v2553_v14, 0  ;;  %1350 = vrot.lane.b32.xlu1 %v5788_v60, %s7062_s23  ;;  %2112 = vrot.lane.b32.xlu0 %v5836_v13, %s7066_s10  ;;  %v3293_v18 = vand.u32 4294901760, %v8989_v27 }
 0x2b6   : > { %10124 = vst [vmem:[#allocation9_spill] sm:$0xff] %v8971_v57  ;;  %v8991_v37 = vand.u32 4294901760, %v2673_v55  ;;  %v3085_v28 = vand.u32 4294901760, %v8971_v57  ;;  %v3286_v20 = vand.u32 4294901760, %v8979_v41 }
 0x2b7   : > { %v1713_v60 = vpop.permute.xlu1 %1712  ;;  %v1523_v22 = vpop.permute.xlu0 %1522  ;;  %v3294_v34 = vsub.f32 %v8989_v27, %v3293_v18 }
 0x2b8   : > { %10129 = vst [vmem:[#allocation51_spill] sm:$0xff] %v8991_v37  ;;  %v9000_v14 = vsub.f32 %v2673_v55, %v8991_v37  ;;  %6465 = vmatprep.mubr.f32.mxu0 %v3085_v28  ;;  %v3086_v0 = vsub.f32 %v8971_v57, %v3085_v28  ;;  %v3287_v23 = vsub.f32 %v8979_v41, %v3286_v20 }
 0x2b9   : > { %2114 = vrot.lane.b32.xlu1 %v8995_v11, %s7066_s10  ;;  %1540 = vrot.lane.b32.xlu0 %v8901_v43, %s7063_s24  ;;  %v6691_v15 = vpack.c.bf16 %v3293_v18, %v3286_v20  ;;  %v3295_v57 = vand.u32 4294901760, %v3294_v34  ;;  %v226_v18 = vld [vmem:[%s7111_s19 + $0xf0] sm:$0xff]  ;;  %v10131_v34 = vld [vmem:[#allocation19_spill] sm:$0xff] }
 0x2ba   : > { %10130 = vst [vmem:[#allocation8_spill] sm:$0xff] %v9000_v14  ;;  %v3087_v42 = vand.u32 4294901760, %v3086_v0  ;;  %v3095_v55 = vand.u32 4294901760, %v9000_v14  ;;  %v3288_v28 = vand.u32 4294901760, %v3287_v23 }
 0x2bb   : > { %v1715_v2 = vpop.permute.xlu1 %1714  ;;  %v9011_v5 = vpop.permute.xlu0 %1140  ;;  %6692 = vmatprep.subr.bf16.mxu0 %v6691_v15 }
 0x2bc   : > { %6219 = vmatprep.mubr.f32.mxu1 %v3087_v42  ;;  %6466 = vmatmul.mubr.f32.gmra.mrb[28].mxu0 %v3095_v55  ;;  %v3096_v43 = vsub.f32 %v9000_v14, %v3095_v55  ;;  %v6667_v20 = vpack.c.bf16 %v3295_v57, %v3288_v28  ;;  %v2211_v42 = vsel %vm2180_vm1, %v226_v18, %v10131_v34  ;;  %v10132_v57 = vld [vmem:[#allocation61_spill] sm:$0xff]  ;;  %v10133_v34 = vld [vmem:[#allocation18_spill] sm:$0xff] }
 0x2bd   : > { %1732 = vrot.lane.b32.xlu1 %v5742_v44, %s7064_s25  ;;  %1542 = vrot.lane.b32.xlu0 %v5836_v13, %s7063_s24  ;;  %v227_v13 = vld [vmem:[%s7111_s19 + $0xf8] sm:$0xff]  ;;  %v2260_v55 = vsel %vm2229_vm2, %v2211_v42, %v10132_v57  ;;  %v10134_v42 = vld [vmem:[#allocation60_spill] sm:$0xff] }
 0x2be   : > { %v3097_v0 = vand.u32 4294901760, %v3096_v43  ;;  %6694 = vmatpush3.bf16.msra.mxu0 %v6691_v15  ;;  %6668 = vmatprep.subr.bf16.mxu1 %v6667_v20  ;;  %v5790_v15 = vld [vmem:[%s7111_s19 + $0x171] sm:$0xff]  ;;  %v2309_v28 = vsel %vm2278_vm3, %v2260_v55, %v8913_v54  ;;  %v2212_v14 = vsel %vm2180_vm1, %v227_v13, %v10133_v34  ;;  %v9047_v57 = vld [vmem:[%s7111_s19 + $0x179] sm:$0xff] }
 0x2bf   : > { %v9020_v40 = vpop.permute.xlu1 %1142  ;;  %v1905_v23 = vpop.permute.xlu0 %1904  ;;  %6670 = vmatpush3.bf16.msra.mxu1 %v6667_v20  ;;  %v2358_v18 = vsel %vm2327_vm4, %v2309_v28, %v8936_v38  ;;  %v2261_v20 = vsel %vm2229_vm2, %v2212_v14, %v10134_v42 }
 0x2c0   : > { %6220 = vmatmul.mubr.f32.gmra.mrb[28].mxu1 %v3097_v0  ;;  %v2310_v38 = vsel %vm2278_vm3, %v2261_v20, %v8922_v31 }
 0x2c1   : > { %1734 = vrot.lane.b32.xlu1 %v9018_v62, %s7064_s25  ;;  %1160 = vrot.lane.b32.xlu0 %v8920_v9, %s7061_s22  ;;  %v2407_v9 = vsel %vm2376_vm5, %v2358_v18, %v1521_v24 }
 0x2c2   : > { %v2456_v54 = vsel %vm2425_vm6, %v2407_v9, %v1713_v60 }
 0x2c3   : > { %v1907_v43 = vpop.permute.xlu1 %1906  ;;  %v9034_v0 = vpop.permute.xlu0 %1332  ;;  %v2505_v55 = vsel %vm2474_vm7, %v2456_v54, %v1905_v23  ;;  %v5838_v23 = vld [vmem:[%s7111_s19 + $0x172] sm:$0xff]  ;;  %v9079_v54 = vld [vmem:[%s7111_s19 + $0x17a] sm:$0xff] }
 0x2c5   : > { %1162 = vrot.lane.b32.xlu1 %v5742_v44, %s7061_s22  ;;  %1924 = vrot.lane.b32.xlu0 %v5790_v15, %s7065_s7  ;;  %v2359_v44 = vsel %vm2327_vm4, %v2310_v38, %v8954_v7 }
 0x2c6   : > { %v2408_v18 = vsel %vm2376_vm5, %v2359_v44, %v1523_v22 }
 0x2c7   : > { %v9052_v13 = vpop.permute.xlu1 %1334  ;;  %v2097_v24 = vpop.permute.xlu0 %2096  ;;  %v2457_v31 = vsel %vm2425_vm6, %v2408_v18, %v1715_v2 }
 0x2c8   : > { %v2554_v28 = vsel %vm2523_vm8, %v2505_v55, %v2097_v24  ;;  %v2506_v7 = vsel %vm2474_vm7, %v2457_v31, %v1907_v43 }
 0x2c9   : > { %v2676_v14 = vsel %vm2584_vm9, %v2554_v28, 0  ;;  %1926 = vrot.lane.b32.xlu1 %v9047_v57, %s7065_s7  ;;  %1352 = vrot.lane.b32.xlu0 %v8949_v4, %s7062_s23  ;;  %v5744_v28 = vld [vmem:[%s7111_s19 + $0x180] sm:$0xff] }
 0x2ca   : > { %v9064_v60 = vand.u32 4294901760, %v2676_v14 }
 0x2cb   : > { %v2099_v34 = vpop.permute.xlu1 %2098  ;;  %v1525_v9 = vpop.permute.xlu0 %1524 }
 0x2cc   : > { %10135 = vst [vmem:[#allocation50_spill] sm:$0xff] %v9064_v60  ;;  %v9069_v22 = vsub.f32 %v2676_v14, %v9064_v60  ;;  %v2555_v42 = vsel %vm2523_vm8, %v2506_v7, %v2099_v34  ;;  %v228_v7 = vld [vmem:[%s7111_s19 + $0x100] sm:$0xff]  ;;  %v10139_v34 = vld [vmem:[#allocation37_spill] sm:$0xff] }
 0x2cd   : > { %v2679_v20 = vsel %vm2584_vm9, %v2555_v42, 0  ;;  %1354 = vrot.lane.b32.xlu1 %v5790_v15, %s7062_s23  ;;  %2116 = vrot.lane.b32.xlu0 %v5838_v23, %s7066_s10  ;;  %v10140_v42 = vand.u32 4294901760, %v10139_v34 }
 0x2ce   : > { %10136 = vst [vmem:[#allocation11_spill] sm:$0xff] %v9069_v22  ;;  %v9075_v2 = vand.u32 4294901760, %v2679_v20  ;;  %v3105_v4 = vand.u32 4294901760, %v9069_v22 }
 0x2cf   : > { %v1717_v43 = vpop.permute.xlu1 %1716  ;;  %v1527_v38 = vpop.permute.xlu0 %1526 }
 0x2d0   : > { %10137 = vst [vmem:[#allocation53_spill] sm:$0xff] %v9075_v2  ;;  %v9082_v55 = vsub.f32 %v2679_v20, %v9075_v2  ;;  %6468 = vmatprep.mubr.f32.mxu0 %v3105_v4  ;;  %v3106_v24 = vsub.f32 %v9069_v22, %v3105_v4  ;;  %v7034_v4 = vld [vmem:[%s9894_s1 + $0x18] sm:$0xff]  ;;  %v5792_v2 = vld [vmem:[%s7111_s19 + $0x181] sm:$0xff] }
 0x2d1   : > { %2118 = vrot.lane.b32.xlu1 %v9079_v54, %s7066_s10  ;;  %1544 = vrot.lane.b32.xlu0 %v8995_v11, %s7063_s24  ;;  %v7033_v11 = vld [vmem:[%s9894_s1 + $0x10] sm:$0xff] }
 0x2d2   : > { %10138 = vst [vmem:[#allocation10_spill] sm:$0xff] %v9082_v55  ;;  %v3107_v15 = vand.u32 4294901760, %v3106_v24  ;;  %v3115_v44 = vand.u32 4294901760, %v9082_v55  ;;  %v9102_v20 = vsub.f32 %v7033_v11, %v10140_v42  ;;  %v10141_v24 = vld [vmem:[#allocation38_spill] sm:$0xff]  ;;  %v10143_v42 = vld [vmem:[#allocation21_spill] sm:$0xff] }
 0x2d3   : > { %v1719_v18 = vpop.permute.xlu1 %1718  ;;  %v9091_v14 = vpop.permute.xlu0 %1144  ;;  %v2213_v49 = vsel %vm2180_vm1, %v228_v7, %v10143_v42 }
 0x2d4   : > { %6222 = vmatprep.mubr.f32.mxu1 %v3107_v15  ;;  %6469 = vmatmul.mubr.f32.gmra.mrb[30].mxu0 %v3115_v44  ;;  %v3116_v31 = vsub.f32 %v9082_v55, %v3115_v44  ;;  %v10142_v15 = vand.u32 4294901760, %v10141_v24  ;;  %v3300_v34 = vand.u32 4294901760, %v9102_v20  ;;  %v2262_v61 = vsel %vm2229_vm2, %v2213_v49, %v10144_v21  ;;  %v10146_v49 = vld [vmem:[#allocation62_spill] sm:$0xff] }
 0x2d5   : > { %1736 = vrot.lane.b32.xlu1 %v5744_v28, %s7064_s25  ;;  %1546 = vrot.lane.b32.xlu0 %v5838_v23, %s7063_s24  ;;  %v9112_v23 = vld [vmem:[%s7111_s19 + $0x188] sm:$0xff] }
 0x2d6   : > { %v9109_v44 = vsub.f32 %v7034_v4, %v10142_v15  ;;  %v3117_v55 = vand.u32 4294901760, %v3116_v31  ;;  %v3301_v31 = vsub.f32 %v9102_v20, %v3300_v34  ;;  %v229_v15 = vld [vmem:[%s7111_s19 + $0x108] sm:$0xff] }
 0x2d7   : > { %v9114_v22 = vpop.permute.xlu1 %1146  ;;  %v1909_v36 = vpop.permute.xlu0 %1908 }
 0x2d8   : > { %v3307_v11 = vand.u32 4294901760, %v9109_v44  ;;  %6223 = vmatmul.mubr.f32.gmra.mrb[30].mxu1 %v3117_v55  ;;  %v2311_v55 = vsel %vm2278_vm3, %v2262_v61, %v9011_v5  ;;  %v3302_v60 = vand.u32 4294901760, %v3301_v31 }
 0x2d9   : > { %1738 = vrot.lane.b32.xlu1 %v9112_v23, %s7064_s25  ;;  %1164 = vrot.lane.b32.xlu0 %v9018_v62, %s7061_s22  ;;  %v2360_v62 = vsel %vm2327_vm4, %v2311_v55, %v9034_v0  ;;  %v5840_v55 = vld [vmem:[%s7111_s19 + $0x182] sm:$0xff] }
 0x2da   : > { %v3308_v4 = vsub.f32 %v9109_v44, %v3307_v11  ;;  %v6695_v24 = vpack.c.bf16 %v3307_v11, %v3300_v34  ;;  %v10145_v34 = vld [vmem:[#allocation20_spill] sm:$0xff]  ;;  %v2409_v21 = vsel %vm2376_vm5, %v2360_v62, %v1525_v9 }
 0x2db   : > { %v1911_v7 = vpop.permute.xlu1 %1910  ;;  %v9132_v42 = vpop.permute.xlu0 %1336  ;;  %v2214_v11 = vsel %vm2180_vm1, %v229_v15, %v10145_v34  ;;  %v2458_v31 = vsel %vm2425_vm6, %v2409_v21, %v1717_v43 }
 0x2dc   : > { %v3309_v37 = vand.u32 4294901760, %v3308_v4  ;;  %6696 = vmatprep.subr.bf16.mxu0 %v6695_v24  ;;  %v2263_v5 = vsel %vm2229_vm2, %v2214_v11, %v10146_v49  ;;  %v9145_v4 = vld [vmem:[%s7111_s19 + $0x189] sm:$0xff] }
 0x2dd   : > { %6698 = vmatpush3.bf16.msra.mxu0 %v6695_v24  ;;  %1166 = vrot.lane.b32.xlu1 %v5744_v28, %s7061_s22  ;;  %v2312_v0 = vsel %vm2278_vm3, %v2263_v5, %v9020_v40  ;;  %v2507_v24 = vsel %vm2474_vm7, %v2458_v31, %v1909_v36 }
 0x2de   : > { %1928 = vrot.lane.b32.xlu0 %v5792_v2, %s7065_s7  ;;  %v6671_v61 = vpack.c.bf16 %v3309_v37, %v3302_v60  ;;  %v2361_v37 = vsel %vm2327_vm4, %v2312_v0, %v9052_v13 }
 0x2df   : > { %v9150_v15 = vpop.permute.xlu1 %1338  ;;  %v2101_v9 = vpop.permute.xlu0 %2100  ;;  %v2410_v43 = vsel %vm2376_vm5, %v2361_v37, %v1527_v38 }
 0x2e0   : > { %6672 = vmatprep.subr.bf16.mxu1 %v6671_v61  ;;  %v2556_v60 = vsel %vm2523_vm8, %v2507_v24, %v2101_v9  ;;  %v2459_v36 = vsel %vm2425_vm6, %v2410_v43, %v1719_v18  ;;  %v5746_v24 = vld [vmem:[%s7111_s19 + $0x190] sm:$0xff] }
 0x2e1   : > { %6674 = vmatpush3.bf16.msra.mxu1 %v6671_v61  ;;  %v2682_v28 = vsel %vm2584_vm9, %v2556_v60, 0  ;;  %1930 = vrot.lane.b32.xlu1 %v9145_v4, %s7065_s7  ;;  %v2508_v13 = vsel %vm2474_vm7, %v2459_v36, %v1911_v7  ;;  %v9177_v61 = vld [vmem:[%s7111_s19 + $0x18a] sm:$0xff] }
 0x2e2   : > { %1356 = vrot.lane.b32.xlu0 %v9047_v57, %s7062_s23  ;;  %v9162_v40 = vand.u32 4294901760, %v2682_v28  ;;  %v230_v43 = vld [vmem:[%s7111_s19 + $0x110] sm:$0xff] }
 0x2e3   : > { %v2103_v62 = vpop.permute.xlu1 %2102  ;;  %v1529_v34 = vpop.permute.xlu0 %1528 }
 0x2e4   : > { %v9167_v38 = vsub.f32 %v2682_v28, %v9162_v40  ;;  %v2557_v11 = vsel %vm2523_vm8, %v2508_v13, %v2103_v62  ;;  %v10149_v62 = vld [vmem:[#allocation23_spill] sm:$0xff] }
 0x2e5   : > { %v2685_v21 = vsel %vm2584_vm9, %v2557_v11, 0  ;;  %1358 = vrot.lane.b32.xlu1 %v5792_v2, %s7062_s23  ;;  %v2215_v11 = vsel %vm2180_vm1, %v230_v43, %v10149_v62  ;;  %v10151_v62 = vld [vmem:[#allocation43_spill] sm:$0xff] }
 0x2e6   : > { %10147 = vst [vmem:[#allocation52_spill] sm:$0xff] %v9167_v38  ;;  %2120 = vrot.lane.b32.xlu0 %v5840_v55, %s7066_s10  ;;  %v9173_v57 = vand.u32 4294901760, %v2685_v21  ;;  %v3125_v18 = vand.u32 4294901760, %v9167_v38 }
 0x2e7   : > { %v1721_v7 = vpop.permute.xlu1 %1720  ;;  %v1531_v49 = vpop.permute.xlu0 %1530 }
 0x2e8   : > { %v9180_v5 = vsub.f32 %v2685_v21, %v9173_v57  ;;  %6471 = vmatprep.mubr.f32.mxu0 %v3125_v18  ;;  %v3126_v31 = vsub.f32 %v9167_v38, %v3125_v18  ;;  %v231_v21 = vld [vmem:[%s7111_s19 + $0x118] sm:$0xff] }
 0x2e9   : > { %2122 = vrot.lane.b32.xlu1 %v9177_v61, %s7066_s10  ;;  %v10150_v18 = vld [vmem:[#allocation65_spill] sm:$0xff] }
 0x2ea   : > { %10148 = vst [vmem:[#allocation13_spill] sm:$0xff] %v9180_v5  ;;  %1548 = vrot.lane.b32.xlu0 %v9079_v54, %s7063_s24  ;;  %v3127_v2 = vand.u32 4294901760, %v3126_v31  ;;  %v3135_v0 = vand.u32 4294901760, %v9180_v5  ;;  %v2264_v31 = vsel %vm2229_vm2, %v2215_v11, %v10150_v18 }
 0x2eb   : > { %v1723_v9 = vpop.permute.xlu1 %1722  ;;  %v9189_v37 = vpop.permute.xlu0 %1148 }
 0x2ec   : > { %6225 = vmatprep.mubr.f32.mxu1 %v3127_v2  ;;  %6472 = vmatmul.mubr.f32.gmra.mrb[32].mxu0 %v3135_v0  ;;  %v3136_v60 = vsub.f32 %v9180_v5, %v3135_v0  ;;  %v5747_v2 = vld [vmem:[%s7111_s19 + $0x198] sm:$0xff]  ;;  %v2313_v0 = vsel %vm2278_vm3, %v2264_v31, %v9091_v14  ;;  %v10154_v14 = vld [vmem:[#allocation64_spill] sm:$0xff] }
 0x2ed   : > { %1740 = vrot.lane.b32.xlu1 %v5746_v24, %s7064_s25  ;;  %v2362_v43 = vsel %vm2327_vm4, %v2313_v0, %v9132_v42 }
 0x2ee   : > { %1550 = vrot.lane.b32.xlu0 %v5840_v55, %s7063_s24  ;;  %v3137_v28 = vand.u32 4294901760, %v3136_v60  ;;  %v5794_v55 = vld [vmem:[%s7111_s19 + $0x191] sm:$0xff]  ;;  %v2411_v11 = vsel %vm2376_vm5, %v2362_v43, %v1529_v34 }
 0x2ef   : > { %v9195_v36 = vpop.permute.xlu1 %1150  ;;  %v1913_v13 = vpop.permute.xlu0 %1912  ;;  %v2460_v31 = vsel %vm2425_vm6, %v2411_v11, %v1721_v7  ;;  %v5842_v11 = vld [vmem:[%s7111_s19 + $0x192] sm:$0xff] }
 0x2f0   : > { %6226 = vmatmul.mubr.f32.gmra.mrb[32].mxu1 %v3137_v28 }
 0x2f1   : > { %1168 = vrot.lane.b32.xlu1 %v9112_v23, %s7061_s22  ;;  %v10152_v23 = vld [vmem:[#allocation42_spill] sm:$0xff] }
 0x2f2   : > { %978 = vrot.lane.b32.xlu0 %v9079_v54, %s7060_s21  ;;  %v9216_v5 = vsub.f32 %v10152_v23, %v10151_v62  ;;  %v10153_v54 = vld [vmem:[#allocation22_spill] sm:$0xff] }
 0x2f3   : > { %v1915_v60 = vpop.permute.xlu1 %1914  ;;  %v9210_v28 = vpop.permute.xlu0 %1340  ;;  %v2216_v38 = vsel %vm2180_vm1, %v231_v21, %v10153_v54  ;;  %v2509_v21 = vsel %vm2474_vm7, %v2460_v31, %v1913_v13 }
 0x2f4   : > { %v2265_v18 = vsel %vm2229_vm2, %v2216_v38, %v10154_v14  ;;  %v3314_v42 = vand.u32 4294901760, %v9216_v5 }
 0x2f5   : > { %1932 = vrot.lane.b32.xlu1 %v5794_v55, %s7065_s7  ;;  %v2314_v0 = vsel %vm2278_vm3, %v2265_v18, %v9114_v22 }
 0x2f6   : > { %1742 = vrot.lane.b32.xlu0 %v5747_v2, %s7064_s25  ;;  %v2363_v2 = vsel %vm2327_vm4, %v2314_v0, %v9150_v15  ;;  %v3315_v38 = vsub.f32 %v9216_v5, %v3314_v42  ;;  %6503 = vmatprep.subr.mxu0 %v3314_v42  ;;  %v5795_v15 = vld [vmem:[%s7111_s19 + $0x199] sm:$0xff] }
 0x2f7   : > { %v9230_v23 = vpop.permute.xlu1 %1342  ;;  %v2105_v34 = vpop.permute.xlu0 %2104  ;;  %v2412_v7 = vsel %vm2376_vm5, %v2363_v2, %v1531_v49  ;;  %6504 = vmatpush3.msra.mxu0 %v3314_v42  ;;  %v10156_v49 = vld [vmem:[#allocation36_spill] sm:$0xff] }
 0x2f8   : > { %v2558_v43 = vsel %vm2523_vm8, %v2509_v21, %v2105_v34  ;;  %v2461_v22 = vsel %vm2425_vm6, %v2412_v7, %v1723_v9  ;;  %v3316_v14 = vand.u32 4294901760, %v3315_v38  ;;  %6700 = vmatprep.subr.bf16.mxu0 %v10156_v49 }
 0x2f9   : > { %v2688_v54 = vsel %vm2584_vm9, %v2558_v43, 0  ;;  %1360 = vrot.lane.b32.xlu1 %v9145_v4, %s7062_s23  ;;  %v2510_v18 = vsel %vm2474_vm7, %v2461_v22, %v1915_v60 }
 0x2fa   : > { %1170 = vrot.lane.b32.xlu0 %v5746_v24, %s7061_s22  ;;  %v9242_v13 = vand.u32 4294901760, %v2688_v54  ;;  %6257 = vmatprep.subr.mxu1 %v3316_v14  ;;  %s6996_s22 = smul.u32 384, %s10264_s12 }
 0x2fb   : > { %v2107_v31 = vpop.permute.xlu1 %2106  ;;  %v1533_v0 = vpop.permute.xlu0 %1532  ;;  %6258 = vmatpush3.msra.mxu1 %v3316_v14 }
 0x2fc   : > { %10155 = vst [vmem:[#allocation55_spill] sm:$0xff] %v9242_v13  ;;  %v9249_v21 = vsub.f32 %v2688_v54, %v9242_v13  ;;  %v2559_v4 = vsel %vm2523_vm8, %v2510_v18, %v2107_v31  ;;  %v5843_v54 = vld [vmem:[%s7111_s19 + $0x19a] sm:$0xff]  ;;  %v5749_v18 = vld [vmem:[%s7111_s19 + $0x1a8] sm:$0xff] }
 0x2fd   : > { %v2691_v24 = vsel %vm2584_vm9, %v2559_v4, 0  ;;  %2124 = vrot.lane.b32.xlu1 %v5842_v11, %s7066_s10  ;;  %v5748_v31 = vld [vmem:[%s7111_s19 + $0x1a0] sm:$0xff] }
 0x2fe   : > { %10157 = vst [vmem:[#allocation12_spill] sm:$0xff] %v9249_v21  ;;  %1934 = vrot.lane.b32.xlu0 %v5795_v15, %s7065_s7  ;;  %v9255_v9 = vand.u32 4294901760, %v2691_v24  ;;  %v3145_v60 = vand.u32 4294901760, %v9249_v21 }
 0x2ff   : > { %v1725_v42 = vpop.permute.xlu1 %1724  ;;  %v1535_v34 = vpop.permute.xlu0 %1534 }
 0x300   : > { %10158 = vst [vmem:[#allocation54_spill] sm:$0xff] %v9255_v9  ;;  %v9259_v2 = vsub.f32 %v2691_v24, %v9255_v9  ;;  %6474 = vmatprep.mubr.f32.mxu0 %v3145_v60  ;;  %v3146_v43 = vsub.f32 %v9249_v21, %v3145_v60  ;;  %v10160_v60 = vld [vmem:[#allocation25_spill] sm:$0xff] }
 0x301   : > { %1552 = vrot.lane.b32.xlu1 %v9177_v61, %s7063_s24  ;;  %v232_v61 = vld [vmem:[%s7111_s19 + $0x120] sm:$0xff] }
 0x302   : > { %10159 = vst [vmem:[#allocation15_spill] sm:$0xff] %v9259_v2  ;;  %1362 = vrot.lane.b32.xlu0 %v5794_v55, %s7062_s23  ;;  %v3147_v38 = vand.u32 4294901760, %v3146_v43  ;;  %v3155_v7 = vand.u32 4294901760, %v9259_v2  ;;  %v2217_v43 = vsel %vm2180_vm1, %v232_v61, %v10160_v60  ;;  %v10162_v60 = vld [vmem:[#allocation24_spill] sm:$0xff] }
 0x303   : > { %v1727_v22 = vpop.permute.xlu1 %1726  ;;  %v9267_v15 = vpop.permute.xlu0 %1152 }
 0x304   : > { %6228 = vmatprep.mubr.f32.mxu1 %v3147_v38  ;;  %6475 = vmatmul.mubr.f32.gmra.mrb[34].mxu0 %v3155_v7  ;;  %v3156_v14 = vsub.f32 %v9259_v2, %v3155_v7  ;;  %v10161_v38 = vld [vmem:[#allocation67_spill] sm:$0xff] }
 0x305   : > { %1554 = vrot.lane.b32.xlu1 %v5842_v11, %s7063_s24  ;;  %v233_v11 = vld [vmem:[%s7111_s19 + $0x128] sm:$0xff]  ;;  %v2266_v7 = vsel %vm2229_vm2, %v2217_v43, %v10161_v38  ;;  %v10163_v43 = vld [vmem:[#allocation66_spill] sm:$0xff] }
 0x306   : > { %2126 = vrot.lane.b32.xlu0 %v5843_v54, %s7066_s10  ;;  %v3157_v55 = vand.u32 4294901760, %v3156_v14  ;;  %v5797_v54 = vld [vmem:[%s7111_s19 + $0x1a9] sm:$0xff]  ;;  %v5796_v14 = vld [vmem:[%s7111_s19 + $0x1a1] sm:$0xff]  ;;  %v2315_v2 = vsel %vm2278_vm3, %v2266_v7, %v9189_v37 }
 0x307   : > { %v9275_v4 = vpop.permute.xlu1 %1154  ;;  %v1917_v24 = vpop.permute.xlu0 %1916  ;;  %v2364_v61 = vsel %vm2327_vm4, %v2315_v2, %v9210_v28  ;;  %v5845_v37 = vld [vmem:[%s7111_s19 + $0x1aa] sm:$0xff]  ;;  %v5844_v7 = vld [vmem:[%s7111_s19 + $0x1a2] sm:$0xff] }
 0x308   : > { %6229 = vmatmul.mubr.f32.gmra.mrb[34].mxu1 %v3157_v55 }
 0x309   : > { %1746 = vrot.lane.b32.xlu1 %v5749_v18, %s7064_s25  ;;  %v2218_v18 = vsel %vm2180_vm1, %v233_v11, %v10162_v60 }
 0x30a   : > { %1744 = vrot.lane.b32.xlu0 %v5748_v31, %s7064_s25  ;;  %v2413_v31 = vsel %vm2376_vm5, %v2364_v61, %v1533_v0  ;;  %v2267_v38 = vsel %vm2229_vm2, %v2218_v18, %v10163_v43  ;;  %s9740_s25 = scalar_lea.vmem %s9896_s3, %s6996_s22 }
 0x30b   : > { %v1919_v21 = vpop.permute.xlu1 %1918  ;;  %v1345_v55 = vpop.permute.xlu0 %1344  ;;  %v2462_v9 = vsel %vm2425_vm6, %v2413_v31, %v1725_v42  ;;  %v2316_v13 = vsel %vm2278_vm3, %v2267_v38, %v9195_v36 }
 0x30c   : > { %v2511_v28 = vsel %vm2474_vm7, %v2462_v9, %v1917_v24  ;;  %v2365_v0 = vsel %vm2327_vm4, %v2316_v13, %v9230_v23  ;;  %v9315_v9 = vpack.c.bf16 %v8989_v27, %v8979_v41 }
 0x30d   : > { %1938 = vrot.lane.b32.xlu1 %v5797_v54, %s7065_s7 }
 0x30e   : > { %1936 = vrot.lane.b32.xlu0 %v5796_v14, %s7065_s7  ;;  %v2414_v14 = vsel %vm2376_vm5, %v2365_v0, %v1535_v34  ;;  %6676 = vmatprep.subr.bf16.mxu1 %v9315_v9  ;;  %v234_v0 = vld [vmem:[%s7111_s19 + $0x130] sm:$0xff] }
 0x30f   : > { %v1347_v2 = vpop.permute.xlu1 %1346  ;;  %v2109_v11 = vpop.permute.xlu0 %2108  ;;  %v2463_v42 = vsel %vm2425_vm6, %v2414_v14, %v1727_v22 }
 0x310   : > { %v2560_v54 = vsel %vm2523_vm8, %v2511_v28, %v2109_v11  ;;  %v2512_v23 = vsel %vm2474_vm7, %v2463_v42, %v1919_v21  ;;  %v10167_v42 = vld [vmem:[#allocation27_spill] sm:$0xff] }
 0x311   : > { %v2694_v61 = vsel %vm2584_vm9, %v2560_v54, 0  ;;  %2130 = vrot.lane.b32.xlu1 %v5845_v37, %s7066_s10 }
 0x312   : > { %2128 = vrot.lane.b32.xlu0 %v5844_v7, %s7066_s10  ;;  %v9311_v36 = vand.u32 4294901760, %v2694_v61 }
 0x313   : > { %v2111_v13 = vpop.permute.xlu1 %2110  ;;  %v1537_v24 = vpop.permute.xlu0 %1536 }
 0x314   : > { %v9319_v34 = vsub.f32 %v2694_v61, %v9311_v36  ;;  %v2561_v60 = vsel %vm2523_vm8, %v2512_v23, %v2111_v13  ;;  %v2219_v23 = vsel %vm2180_vm1, %v234_v0, %v10167_v42  ;;  %v235_v13 = vld [vmem:[%s7111_s19 + $0x138] sm:$0xff] }
 0x315   : > { %v2697_v22 = vsel %vm2584_vm9, %v2561_v60, 0  ;;  %v10168_v60 = vld [vmem:[#allocation69_spill] sm:$0xff] }
 0x316   : > { %10164 = vst [vmem:[#allocation57_spill] sm:$0xff] %v9319_v34  ;;  %v9324_v18 = vand.u32 4294901760, %v2697_v22  ;;  %v3165_v31 = vand.u32 4294901760, %v9319_v34 }
 0x317   : > { %v1729_v41 = vpop.permute.xlu1 %1728  ;;  %v1539_v27 = vpop.permute.xlu0 %1538 }
 0x318   : > { %10165 = vst [vmem:[#allocation14_spill] sm:$0xff] %v9324_v18  ;;  %v9328_v21 = vsub.f32 %v2697_v22, %v9324_v18  ;;  %6477 = vmatprep.mubr.f32.mxu0 %v3165_v31  ;;  %v3166_v43 = vsub.f32 %v9319_v34, %v3165_v31  ;;  %v2268_v22 = vsel %vm2229_vm2, %v2219_v23, %v10168_v60 }
 0x319   : > { %v2317_v31 = vsel %vm2278_vm3, %v2268_v22, %v9267_v15 }
 0x31a   : > { %10166 = vst [vmem:[#allocation56_spill] sm:$0xff] %v9328_v21  ;;  %v3167_v38 = vand.u32 4294901760, %v3166_v43  ;;  %v3175_v37 = vand.u32 4294901760, %v9328_v21  ;;  %v2366_v34 = vsel %vm2327_vm4, %v2317_v31, %v1345_v55 }
 0x31b   : > { %v1731_v7 = vpop.permute.xlu1 %1730  ;;  %v1157_v28 = vpop.permute.xlu0 %1156 }
 0x31c   : > { %6231 = vmatprep.mubr.f32.mxu1 %v3167_v38  ;;  %6478 = vmatmul.mubr.f32.gmra.mrb[36].mxu0 %v3175_v37  ;;  %v3176_v11 = vsub.f32 %v9328_v21, %v3175_v37  ;;  %v10169_v37 = vld [vmem:[#allocation26_spill] sm:$0xff]  ;;  %v2415_v21 = vsel %vm2376_vm5, %v2366_v34, %v1537_v24 }
 0x31d   : > { %v2464_v0 = vsel %vm2425_vm6, %v2415_v21, %v1729_v41 }
 0x31e   : > { %v3177_v54 = vand.u32 4294901760, %v3176_v11  ;;  %v2220_v11 = vsel %vm2180_vm1, %v235_v13, %v10169_v37 }
 0x31f   : > { %v1159_v14 = vpop.permute.xlu1 %1158  ;;  %v1921_v61 = vpop.permute.xlu0 %1920 }
 0x320   : > { %6232 = vmatmul.mubr.f32.gmra.mrb[36].mxu1 %v3177_v54  ;;  %v10170_v54 = vld [vmem:[#allocation68_spill] sm:$0xff]  ;;  %v2513_v23 = vsel %vm2474_vm7, %v2464_v0, %v1921_v61 }
 0x321   : > { %v2269_v18 = vsel %vm2229_vm2, %v2220_v11, %v10170_v54 }
 0x322   : > { %v2318_v42 = vsel %vm2278_vm3, %v2269_v18, %v9275_v4 }
 0x323   : > { %v1923_v43 = vpop.permute.xlu1 %1922  ;;  %v1349_v38 = vpop.permute.xlu0 %1348  ;;  %v2367_v22 = vsel %vm2327_vm4, %v2318_v42, %v1347_v2 }
 0x324   : > { %v2416_v13 = vsel %vm2376_vm5, %v2367_v22, %v1539_v27 }
 0x325   : > { %v2465_v34 = vsel %vm2425_vm6, %v2416_v13, %v1731_v7 }
 0x326   : > { %v2514_v41 = vsel %vm2474_vm7, %v2465_v34, %v1923_v43 }
 0x327   : > { %v1351_v15 = vpop.permute.xlu1 %1350  ;;  %v2113_v60 = vpop.permute.xlu0 %2112 }
 0x328   : > { %v2562_v55 = vsel %vm2523_vm8, %v2513_v23, %v2113_v60 }
 0x329   : > { %v2700_v24 = vsel %vm2584_vm9, %v2562_v55, 0  ;;  %v236_v55 = vld [vmem:[%s7111_s19 + $0x140] sm:$0xff] }
 0x32a   : > { %v9356_v31 = vand.u32 4294901760, %v2700_v24 }
 0x32b   : > { %v2115_v21 = vpop.permute.xlu1 %2114  ;;  %v1541_v4 = vpop.permute.xlu0 %1540 }
 0x32c   : > { %10171 = vst [vmem:[#allocation17_spill] sm:$0xff] %v9356_v31  ;;  %v9360_v18 = vsub.f32 %v2700_v24, %v9356_v31  ;;  %v2563_v61 = vsel %vm2523_vm8, %v2514_v41, %v2115_v21  ;;  %v10175_v41 = vld [vmem:[#allocation29_spill] sm:$0xff]  ;;  %v10177_v31 = vld [vmem:[#allocation28_spill] sm:$0xff] }
 0x32d   : > { %v2703_v2 = vsel %vm2584_vm9, %v2563_v61, 0  ;;  %v2221_v21 = vsel %vm2180_vm1, %v236_v55, %v10175_v41  ;;  %v237_v61 = vld [vmem:[%s7111_s19 + $0x148] sm:$0xff] }
 0x32e   : > { %10172 = vst [vmem:[#allocation59_spill] sm:$0xff] %v9360_v18  ;;  %v9364_v37 = vand.u32 4294901760, %v2703_v2  ;;  %v3185_v27 = vand.u32 4294901760, %v9360_v18 }
 0x32f   : > { %v1733_v11 = vpop.permute.xlu1 %1732  ;;  %v1543_v7 = vpop.permute.xlu0 %1542 }
 0x330   : > { %10173 = vst [vmem:[#allocation16_spill] sm:$0xff] %v9364_v37  ;;  %v9368_v54 = vsub.f32 %v2703_v2, %v9364_v37  ;;  %6480 = vmatprep.mubr.f32.mxu0 %v3185_v27  ;;  %v3186_v43 = vsub.f32 %v9360_v18, %v3185_v27  ;;  %v10176_v2 = vld [vmem:[#allocation71_spill] sm:$0xff] }
 0x331   : > { %v2270_v27 = vsel %vm2229_vm2, %v2221_v21, %v10176_v2 }
 0x332   : > { %10174 = vst [vmem:[#allocation58_spill] sm:$0xff] %v9368_v54  ;;  %v3187_v0 = vand.u32 4294901760, %v3186_v43  ;;  %v3195_v42 = vand.u32 4294901760, %v9368_v54  ;;  %v2319_v43 = vsel %vm2278_vm3, %v2270_v27, %v1157_v28 }
 0x333   : > { %v1735_v23 = vpop.permute.xlu1 %1734  ;;  %v1161_v60 = vpop.permute.xlu0 %1160 }
 0x334   : > { %6234 = vmatprep.mubr.f32.mxu1 %v3187_v0  ;;  %6481 = vmatmul.mubr.f32.gmra.mrb[38].mxu0 %v3195_v42  ;;  %v3196_v22 = vsub.f32 %v9368_v54, %v3195_v42  ;;  %v2368_v0 = vsel %vm2327_vm4, %v2319_v43, %v1349_v38  ;;  %v2222_v42 = vsel %vm2180_vm1, %v237_v61, %v10177_v31  ;;  %v10178_v54 = vld [vmem:[#allocation70_spill] sm:$0xff] }
 0x336   : > { %v3197_v13 = vand.u32 4294901760, %v3196_v22  ;;  %v2417_v22 = vsel %vm2376_vm5, %v2368_v0, %v1541_v4 }
 0x337   : > { %v1163_v24 = vpop.permute.xlu1 %1162  ;;  %v1925_v34 = vpop.permute.xlu0 %1924  ;;  %v2466_v55 = vsel %vm2425_vm6, %v2417_v22, %v1733_v11 }
 0x338   : > { %6235 = vmatmul.mubr.f32.gmra.mrb[38].mxu1 %v3197_v13  ;;  %v2271_v13 = vsel %vm2229_vm2, %v2222_v42, %v10178_v54  ;;  %v2515_v21 = vsel %vm2474_vm7, %v2466_v55, %v1925_v34 }
 0x339   : > { %v2320_v41 = vsel %vm2278_vm3, %v2271_v13, %v1159_v14 }
 0x33a   : > { %v2369_v27 = vsel %vm2327_vm4, %v2320_v41, %v1351_v15 }
 0x33b   : > { %v1927_v18 = vpop.permute.xlu1 %1926  ;;  %v1353_v37 = vpop.permute.xlu0 %1352  ;;  %v2418_v43 = vsel %vm2376_vm5, %v2369_v27, %v1543_v7 }
 0x33c   : > { %v2467_v4 = vsel %vm2425_vm6, %v2418_v43, %v1735_v23 }
 0x33d   : > { %v2516_v11 = vsel %vm2474_vm7, %v2467_v4, %v1927_v18 }
 0x33f   : > { %v1355_v2 = vpop.permute.xlu1 %1354  ;;  %v2117_v28 = vpop.permute.xlu0 %2116 }
 0x340   : > { %v2564_v38 = vsel %vm2523_vm8, %v2515_v21, %v2117_v28 }
 0x341   : > { %v2706_v31 = vsel %vm2584_vm9, %v2564_v38, 0  ;;  %v238_v38 = vld [vmem:[%s7111_s19 + $0x150] sm:$0xff] }
 0x342   : > { %v9394_v61 = vand.u32 4294901760, %v2706_v31 }
 0x343   : > { %v2119_v54 = vpop.permute.xlu1 %2118  ;;  %v1545_v14 = vpop.permute.xlu0 %1544 }
 0x344   : > { %10179 = vst [vmem:[#allocation32_spill] sm:$0xff] %v9394_v61  ;;  %v9398_v34 = vsub.f32 %v2706_v31, %v9394_v61  ;;  %v2565_v0 = vsel %vm2523_vm8, %v2516_v11, %v2119_v54  ;;  %v10183_v11 = vld [vmem:[#allocation31_spill] sm:$0xff]  ;;  %v10186_v61 = vld [vmem:[#allocation72_spill] sm:$0xff] }
 0x345   : > { %v2709_v15 = vsel %vm2584_vm9, %v2565_v0, 0  ;;  %v2223_v54 = vsel %vm2180_vm1, %v238_v38, %v10183_v11  ;;  %v239_v0 = vld [vmem:[%s7111_s19 + $0x158] sm:$0xff] }
 0x346   : > { %10180 = vst [vmem:[#allocation33_spill] sm:$0xff] %v9398_v34  ;;  %v9402_v42 = vand.u32 4294901760, %v2709_v15  ;;  %v3205_v7 = vand.u32 4294901760, %v9398_v34 }
 0x347   : > { %v1737_v22 = vpop.permute.xlu1 %1736  ;;  %v1547_v23 = vpop.permute.xlu0 %1546 }
 0x348   : > { %10181 = vst [vmem:[#allocation19_spill] sm:$0xff] %v9402_v42  ;;  %v9406_v13 = vsub.f32 %v2709_v15, %v9402_v42  ;;  %6483 = vmatprep.mubr.f32.mxu0 %v3205_v7  ;;  %v3206_v18 = vsub.f32 %v9398_v34, %v3205_v7  ;;  %v10184_v15 = vld [vmem:[#allocation73_spill] sm:$0xff] }
 0x349   : > { %v2272_v7 = vsel %vm2229_vm2, %v2223_v54, %v10184_v15 }
 0x34a   : > { %10182 = vst [vmem:[#allocation61_spill] sm:$0xff] %v9406_v13  ;;  %v3207_v55 = vand.u32 4294901760, %v3206_v18  ;;  %v3215_v41 = vand.u32 4294901760, %v9406_v13  ;;  %v2321_v18 = vsel %vm2278_vm3, %v2272_v7, %v1161_v60 }
 0x34b   : > { %v1739_v21 = vpop.permute.xlu1 %1738  ;;  %v1165_v28 = vpop.permute.xlu0 %1164  ;;  %v2370_v42 = vsel %vm2327_vm4, %v2321_v18, %v1353_v37 }
 0x34c   : > { %6237 = vmatprep.mubr.f32.mxu1 %v3207_v55  ;;  %6484 = vmatmul.mubr.f32.gmra.mrb[40].mxu0 %v3215_v41  ;;  %v3216_v27 = vsub.f32 %v9406_v13, %v3215_v41  ;;  %v10185_v41 = vld [vmem:[#allocation30_spill] sm:$0xff]  ;;  %v2419_v13 = vsel %vm2376_vm5, %v2370_v42, %v1545_v14 }
 0x34d   : > { %v2468_v38 = vsel %vm2425_vm6, %v2419_v13, %v1737_v22 }
 0x34e   : > { %v3217_v43 = vand.u32 4294901760, %v3216_v27  ;;  %v2224_v27 = vsel %vm2180_vm1, %v239_v0, %v10185_v41 }
 0x34f   : > { %v9412_v31 = vpop.permute.xlu1 %1166 }
 0x350   : > { %v1929_v4 = vpop.permute.xlu0 %1928  ;;  %6238 = vmatmul.mubr.f32.gmra.mrb[40].mxu1 %v3217_v43  ;;  %v2273_v43 = vsel %vm2229_vm2, %v2224_v27, %v10186_v61 }
 0x351   : > { %v2322_v11 = vsel %vm2278_vm3, %v2273_v43, %v1163_v24  ;;  %v2517_v54 = vsel %vm2474_vm7, %v2468_v38, %v1929_v4 }
 0x352   : > { %v2371_v7 = vsel %vm2327_vm4, %v2322_v11, %v1355_v2 }
 0x353   : > { %v1931_v34 = vpop.permute.xlu1 %1930  ;;  %v2420_v18 = vsel %vm2376_vm5, %v2371_v7, %v1547_v23 }
 0x354   : > { %v1357_v55 = vpop.permute.xlu0 %1356  ;;  %v2469_v14 = vsel %vm2425_vm6, %v2420_v18, %v1739_v21 }
 0x355   : > { %v2518_v61 = vsel %vm2474_vm7, %v2469_v14, %v1931_v34 }
 0x357   : > { %v1359_v15 = vpop.permute.xlu1 %1358 }
 0x358   : > { %v2121_v60 = vpop.permute.xlu0 %2120 }
 0x359   : > { %v2566_v37 = vsel %vm2523_vm8, %v2517_v54, %v2121_v60 }
 0x35a   : > { %v2712_v0 = vsel %vm2584_vm9, %v2566_v37, 0  ;;  %v240_v37 = vld [vmem:[%s7111_s19 + $0x160] sm:$0xff] }
 0x35b   : > { %v9434_v42 = vand.u32 4294901760, %v2712_v0  ;;  %v2123_v22 = vpop.permute.xlu1 %2122 }
 0x35c   : > { %v1549_v24 = vpop.permute.xlu0 %1548  ;;  %v2567_v4 = vsel %vm2523_vm8, %v2518_v61, %v2123_v22  ;;  %v10191_v61 = vld [vmem:[#allocation35_spill] sm:$0xff] }
 0x35d   : > { %10187 = vst [vmem:[#allocation18_spill] sm:$0xff] %v9434_v42  ;;  %v9438_v13 = vsub.f32 %v2712_v0, %v9434_v42  ;;  %v2715_v2 = vsel %vm2584_vm9, %v2567_v4, 0  ;;  %v2225_v22 = vsel %vm2180_vm1, %v240_v37, %v10191_v61  ;;  %v10192_v4 = vld [vmem:[#allocation76_spill] sm:$0xff]  ;;  %v10193_v61 = vld [vmem:[#allocation34_spill] sm:$0xff] }
 0x35e   : > { %v9442_v41 = vand.u32 4294901760, %v2715_v2 }
 0x35f   : > { %10188 = vst [vmem:[#allocation60_spill] sm:$0xff] %v9438_v13  ;;  %v3225_v23 = vand.u32 4294901760, %v9438_v13  ;;  %v1741_v27 = vpop.permute.xlu1 %1740 }
 0x360   : > { %10189 = vst [vmem:[#allocation37_spill] sm:$0xff] %v9442_v41  ;;  %v1551_v21 = vpop.permute.xlu0 %1550  ;;  %v9446_v43 = vsub.f32 %v2715_v2, %v9442_v41  ;;  %v2274_v2 = vsel %vm2229_vm2, %v2225_v22, %v10192_v4  ;;  %v10194_v4 = vld [vmem:[#allocation75_spill] sm:$0xff] }
 0x361   : > { %6486 = vmatprep.mubr.f32.mxu0 %v3225_v23  ;;  %v3226_v34 = vsub.f32 %v9438_v13, %v3225_v23  ;;  %v2323_v23 = vsel %vm2278_vm3, %v2274_v2, %v1165_v28 }
 0x362   : > { %10190 = vst [vmem:[#allocation38_spill] sm:$0xff] %v9446_v43  ;;  %v3235_v11 = vand.u32 4294901760, %v9446_v43 }
 0x363   : > { %v3227_v38 = vand.u32 4294901760, %v3226_v34  ;;  %v1169_v54 = vpop.permute.xlu1 %1168 }
 0x364   : > { %v979_v60 = vpop.permute.xlu0 %978  ;;  %6487 = vmatmul.mubr.f32.gmra.mrb[42].mxu0 %v3235_v11  ;;  %v3236_v7 = vsub.f32 %v9446_v43, %v3235_v11  ;;  %v241_v11 = vld [vmem:[%s7111_s19 + $0x168] sm:$0xff] }
 0x365   : > { %6240 = vmatprep.mubr.f32.mxu1 %v3227_v38  ;;  %v2372_v38 = vsel %vm2327_vm4, %v2323_v23, %v1357_v55  ;;  %v2226_v22 = vsel %vm2180_vm1, %v241_v11, %v10193_v61 }
 0x366   : > { %v3237_v18 = vand.u32 4294901760, %v3236_v7  ;;  %v2421_v41 = vsel %vm2376_vm5, %v2372_v38, %v1549_v24  ;;  %v2275_v2 = vsel %vm2229_vm2, %v2226_v22, %v10194_v4  ;;  %v243_v22 = vld [vmem:[%s7111_s19 + $0x178] sm:$0xff] }
 0x367   : > { %v1933_v0 = vpop.permute.xlu1 %1932  ;;  %v2470_v7 = vsel %vm2425_vm6, %v2421_v41, %v1741_v27  ;;  %v2324_v24 = vsel %vm2278_vm3, %v2275_v2, %v9412_v31 }
 0x368   : > { %v1743_v14 = vpop.permute.xlu0 %1742  ;;  %6241 = vmatmul.mubr.f32.gmra.mrb[42].mxu1 %v3237_v18  ;;  %v2519_v43 = vsel %vm2474_vm7, %v2470_v7, %v1933_v0  ;;  %v2373_v0 = vsel %vm2327_vm4, %v2324_v24, %v1359_v15 }
 0x369   : > { %v2422_v23 = vsel %vm2376_vm5, %v2373_v0, %v1551_v21 }
 0x36a   : > { %v2471_v38 = vsel %vm2425_vm6, %v2422_v23, %v1743_v14  ;;  %v10198_v23 = vld [vmem:[#allocation40_spill] sm:$0xff] }
 0x36b   : > { %v1361_v34 = vpop.permute.xlu1 %1360 }
 0x36c   : > { %v1171_v13 = vpop.permute.xlu0 %1170 }
 0x36f   : > { %v2125_v18 = vpop.permute.xlu1 %2124 }
 0x370   : > { %v1935_v42 = vpop.permute.xlu0 %1934  ;;  %v2568_v37 = vsel %vm2523_vm8, %v2519_v43, %v2125_v18 }
 0x371   : > { %v2718_v28 = vsel %vm2584_vm9, %v2568_v37, 0  ;;  %v2520_v7 = vsel %vm2474_vm7, %v2471_v38, %v1935_v42  ;;  %v10197_v42 = vld [vmem:[#allocation39_spill] sm:$0xff] }
 0x372   : > { %v9468_v55 = vand.u32 4294901760, %v2718_v28  ;;  %v2228_v0 = vsel %vm2180_vm1, %v243_v22, %v10197_v42 }
 0x373   : > { %v1553_v41 = vpop.permute.xlu1 %1552 }
 0x374   : > { %v1363_v27 = vpop.permute.xlu0 %1362  ;;  %v9474_v43 = vsub.f32 %v2718_v28, %v9468_v55  ;;  %v242_v28 = vld [vmem:[%s7111_s19 + $0x170] sm:$0xff] }
 0x375   : > { %v2227_v38 = vsel %vm2180_vm1, %v242_v28, %v10198_v23 }
 0x376   : > { %10195 = vst [vmem:[#allocation21_spill] sm:$0xff] %v9474_v43  ;;  %v3245_v11 = vand.u32 4294901760, %v9474_v43 }
 0x377   : > { %v1555_v18 = vpop.permute.xlu1 %1554 }
 0x378   : > { %v2127_v37 = vpop.permute.xlu0 %2126  ;;  %6489 = vmatprep.mubr.f32.mxu0 %v3245_v11  ;;  %v3246_v61 = vsub.f32 %v9474_v43, %v3245_v11  ;;  %v10199_v11 = vld [vmem:[#allocation78_spill] sm:$0xff] }
 0x379   : > { %v2569_v31 = vsel %vm2523_vm8, %v2520_v7, %v2127_v37  ;;  %v2276_v7 = vsel %vm2229_vm2, %v2227_v38, %v10199_v11  ;;  %v2277_v37 = vsel %vm2229_vm2, %v2228_v0, %v979_v60 }
 0x37a   : > { %v2721_v15 = vsel %vm2584_vm9, %v2569_v31, 0  ;;  %v3247_v21 = vand.u32 4294901760, %v3246_v61  ;;  %v2325_v61 = vsel %vm2278_vm3, %v2276_v7, %v1169_v54  ;;  %v2326_v43 = vsel %vm2278_vm3, %v2277_v37, %v1171_v13 }
 0x37b   : > { %v9485_v4 = vand.u32 4294901760, %v2721_v15  ;;  %v1747_v2 = vpop.permute.xlu1 %1746  ;;  %v2375_v22 = vsel %vm2327_vm4, %v2326_v43, %v1363_v27 }
 0x37c   : > { %v1745_v14 = vpop.permute.xlu0 %1744  ;;  %6243 = vmatprep.mubr.f32.mxu1 %v3247_v21  ;;  %v2374_v21 = vsel %vm2327_vm4, %v2325_v61, %v1361_v34  ;;  %v2424_v23 = vsel %vm2376_vm5, %v2375_v22, %v1555_v18 }
 0x37d   : > { %10196 = vst [vmem:[#allocation63_spill] sm:$0xff] %v9485_v4  ;;  %v9488_v24 = vsub.f32 %v2721_v15, %v9485_v4  ;;  %v2423_v42 = vsel %vm2376_vm5, %v2374_v21, %v1553_v41  ;;  %v2473_v60 = vsel %vm2425_vm6, %v2424_v23, %v1747_v2  ;;  %v10207_v23 = vld [vmem:[#allocation17_spill] sm:$0xff] }
 0x37e   : > { %v2472_v0 = vsel %vm2425_vm6, %v2423_v42, %v1745_v14  ;;  %v10200_v42 = vld [vmem:[#allocation41_spill] sm:$0xff] }
 0x37f   : > { %v3255_v31 = vand.u32 4294901760, %v9488_v24  ;;  %v1939_v15 = vpop.permute.xlu1 %1938 }
 0x380   : > { %v1937_v4 = vpop.permute.xlu0 %1936  ;;  %v2522_v13 = vsel %vm2474_vm7, %v2473_v60, %v1939_v15  ;;  %v10208_v60 = vld [vmem:[#allocation16_spill] sm:$0xff] }
 0x381   : > { %6490 = vmatmul.mubr.f32.gmra.mrb[44].mxu0 %v3255_v31  ;;  %v3256_v28 = vsub.f32 %v9488_v24, %v3255_v31  ;;  %v2521_v38 = vsel %vm2474_vm7, %v2472_v0, %v1937_v4  ;;  %v10209_v0 = vld [vmem:[#allocation32_spill] sm:$0xff] }
 0x383   : > { %v3257_v54 = vand.u32 4294901760, %v3256_v28  ;;  %v2131_v11 = vpop.permute.xlu1 %2130  ;;  %v6679_v28 = vpack.c.bf16 %v9109_v44, %v9102_v20  ;;  %v10201_v20 = vld [vmem:[#allocation51_spill] sm:$0xff]  ;;  %v10202_v44 = vld [vmem:[#allocation50_spill] sm:$0xff] }
 0x384   : > { %v2129_v34 = vpop.permute.xlu0 %2128  ;;  %v2571_v27 = vsel %vm2523_vm8, %v2522_v13, %v2131_v11  ;;  %v10211_v13 = vld [vmem:[#allocation18_spill] sm:$0xff]  ;;  %v10213_v11 = vld [vmem:[#allocation63_spill] sm:$0xff] }
 0x385   : > { %v2570_v43 = vsel %vm2523_vm8, %v2521_v38, %v2129_v34  ;;  %6244 = vmatmul.mubr.f32.gmra.mrb[44].mxu1 %v3257_v54  ;;  %v2727_v41 = vsel %vm2584_vm9, %v2571_v27, 0  ;;  %v10210_v54 = vld [vmem:[#allocation19_spill] sm:$0xff]  ;;  %v10212_v38 = vld [vmem:[#allocation37_spill] sm:$0xff]  ;;  %v10215_v27 = vld [vmem:[#allocation80_spill] sm:$0xff] }
 0x386   : > { %v2724_v18 = vsel %vm2584_vm9, %v2570_v43, 0  ;;  %v9513_v7 = vand.u32 4294901760, %v2727_v41  ;;  %v10214_v34 = vld [vmem:[#allocation79_spill] sm:$0xff]  ;;  %v10216_v43 = vld [vmem:[#allocation81_spill] sm:$0xff] }
 0x387   : > { %v9515_v2 = vand.u32 4294901760, %v2724_v18 }
 0x388   : > { %v9518_v14 = vsub.f32 %v2727_v41, %v9513_v7  ;;  %v10217_v41 = vld [vmem:[#allocation82_spill] sm:$0xff] }
 0x389   : > { %v9521_v4 = vsub.f32 %v2724_v18, %v9515_v2  ;;  %v10247_v18 = vld [vmem:[#allocation13_spill] sm:$0xff] }
 0x38a   : > { %v3275_v31 = vand.u32 4294901760, %v9518_v14 }
 0x38b   : > { %v3265_v37 = vand.u32 4294901760, %v9521_v4 }
 0x38c   : > { %v3276_v15 = vsub.f32 %v9518_v14, %v3275_v31 }
 0x38d   : > { %6492 = vmatprep.mubr.f32.mxu0 %v3265_v37  ;;  %v3266_v61 = vsub.f32 %v9521_v4, %v3265_v37  ;;  %v10248_v37 = vld [vmem:[#allocation12_spill] sm:$0xff] }
 0x38e   : > { %6493 = vmatmul.mubr.f32.gmra.mrb[46].mxu0 %v3275_v31  ;;  %v3277_v22 = vand.u32 4294901760, %v3276_v15  ;;  %v10249_v31 = vld [vmem:[#allocation15_spill] sm:$0xff]  ;;  %v10253_v15 = vld [vmem:[#allocation58_spill] sm:$0xff] }
 0x38f   : > { %6505 = vmatprep.mubr.f32.mxu0 %v7844_v56  ;;  %v3267_v21 = vand.u32 4294901760, %v3266_v61  ;;  %v10252_v61 = vld [vmem:[#allocation59_spill] sm:$0xff] }
 0x391   : > { %6246 = vmatprep.mubr.f32.mxu1 %v3267_v21  ;;  %v10255_v21 = vld [vmem:[#allocation61_spill] sm:$0xff] }
 0x392   : > { %6247 = vmatmul.mubr.f32.gmra.mrb[46].mxu1 %v3277_v22  ;;  %6506 = vmatmul.mubr.f32.vlgmr.msra.gmra.mrb[0].mxu0 %v7855_v48  ;;  %v10256_v22 = vld [vmem:[#allocation60_spill] sm:$0xff] }
 0x393   : > { %6259 = vmatprep.mubr.f32.mxu1 %v7844_v56  ;;  %6508 = vmatprep.mubr.f32.mxu0 %v7926_v30 }
 0x394   : > { %6702 = vmatpush3.bf16.msra.mxu0 %v10156_v49  ;;  %v10205_v49 = vld [vmem:[#allocation54_spill] sm:$0xff] }
 0x395   : > { %6704 = vmatprep.subr.bf16.mxu0 %v10200_v42 }
 0x396   : > { %6260 = vmatmul.mubr.f32.vlgmr.msra.gmra.mrb[0].mxu1 %v7855_v48  ;;  %6509 = vmatmul.mubr.f32.gmra.mrb[2].mxu0 %v7937_v10 }
 0x397   : > { %6678 = vmatpush3.bf16.msra.mxu1 %v9315_v9  ;;  %6262 = vmatprep.mubr.f32.mxu1 %v7926_v30  ;;  %v10206_v9 = vld [vmem:[#allocation14_spill] sm:$0xff] }
 0x398   : > { %6511 = vmatprep.mubr.f32.mxu0 %v8006_v39  ;;  %6680 = vmatprep.subr.bf16.mxu1 %v6679_v28 }
 0x399   : > { %6706 = vmatpush3.bf16.msra.mxu0 %v10200_v42  ;;  %v10258_v42 = vld [vmem:[#allocation21_spill] sm:$0xff] }
 0x39a   : > { %6263 = vmatmul.mubr.f32.gmra.mrb[2].mxu1 %v7937_v10  ;;  %6512 = vmatmul.mubr.f32.gmra.mrb[4].mxu0 %v8017_v26 }
 0x39b   : > { %6265 = vmatprep.mubr.f32.mxu1 %v8006_v39  ;;  %6514 = vmatprep.mubr.f32.mxu0 %v8086_v63 }
 0x39c   : > { %6682 = vmatpush3.bf16.msra.mxu1 %v6679_v28  ;;  %6585 = vmatprep.subr.mxu0 %v10151_v62  ;;  %v10257_v28 = vld [vmem:[#allocation38_spill] sm:$0xff] }
 0x39d   : > { %6339 = vmatprep.subr.mxu1 %v9216_v5  ;;  %6586 = vmatpush3.msra.mxu0 %v10151_v62  ;;  %v10204_v62 = vld [vmem:[#allocation55_spill] sm:$0xff] }
 0x39e   : > { %6266 = vmatmul.mubr.f32.gmra.mrb[4].mxu1 %v8017_v26  ;;  %6515 = vmatmul.mubr.f32.gmra.mrb[6].mxu0 %v8097_v47 }
 0x39f   : > { %6268 = vmatprep.mubr.f32.mxu1 %v8086_v63  ;;  %6517 = vmatprep.mubr.f32.mxu0 %v8166_v8 }
 0x3a0   : > { %6340 = vmatpush3.msra.mxu1 %v9216_v5  ;;  %v10203_v5 = vld [vmem:[#allocation53_spill] sm:$0xff] }
 0x3a2   : > { %6269 = vmatmul.mubr.f32.gmra.mrb[6].mxu1 %v8097_v47  ;;  %6518 = vmatmul.mubr.f32.gmra.mrb[8].mxu0 %v8177_v1 }
 0x3a3   : > { %6271 = vmatprep.mubr.f32.mxu1 %v8166_v8  ;;  %6520 = vmatprep.mubr.f32.mxu0 %v8246_v46 }
 0x3a6   : > { %6272 = vmatmul.mubr.f32.gmra.mrb[8].mxu1 %v8177_v1  ;;  %6521 = vmatmul.mubr.f32.gmra.mrb[10].mxu0 %v8257_v12 }
 0x3a7   : > { %6274 = vmatprep.mubr.f32.mxu1 %v8246_v46  ;;  %6523 = vmatprep.mubr.f32.mxu0 %v8326_v17 }
 0x3aa   : > { %6275 = vmatmul.mubr.f32.gmra.mrb[10].mxu1 %v8257_v12  ;;  %6524 = vmatmul.mubr.f32.gmra.mrb[12].mxu0 %v8337_v59 }
 0x3ab   : > { %6277 = vmatprep.mubr.f32.mxu1 %v8326_v17  ;;  %6526 = vmatprep.mubr.f32.mxu0 %v8406_v16 }
 0x3ae   : > { %6278 = vmatmul.mubr.f32.gmra.mrb[12].mxu1 %v8337_v59  ;;  %6527 = vmatmul.mubr.f32.gmra.mrb[14].mxu0 %v8417_v3 }
 0x3af   : > { %6280 = vmatprep.mubr.f32.mxu1 %v8406_v16  ;;  %6529 = vmatprep.mubr.f32.mxu0 %v8486_v58 }
 0x3b2   : > { %6281 = vmatmul.mubr.f32.gmra.mrb[14].mxu1 %v8417_v3  ;;  %6530 = vmatmul.mubr.f32.gmra.mrb[16].mxu0 %v8497_v52 }
 0x3b3   : > { %6283 = vmatprep.mubr.f32.mxu1 %v8486_v58  ;;  %6532 = vmatprep.mubr.f32.mxu0 %v8566_v19 }
 0x3b6   : > { %6284 = vmatmul.mubr.f32.gmra.mrb[16].mxu1 %v8497_v52  ;;  %6533 = vmatmul.mubr.f32.gmra.mrb[18].mxu0 %v8577_v50 }
 0x3b7   : > { %6286 = vmatprep.mubr.f32.mxu1 %v8566_v19  ;;  %6535 = vmatprep.mubr.f32.mxu0 %v8646_v33 }
 0x3ba   : > { %6287 = vmatmul.mubr.f32.gmra.mrb[18].mxu1 %v8577_v50  ;;  %6536 = vmatmul.mubr.f32.gmra.mrb[20].mxu0 %v8657_v25 }
 0x3bb   : > { %6289 = vmatprep.mubr.f32.mxu1 %v8646_v33  ;;  %6538 = vmatprep.mubr.f32.mxu0 %v8726_v53 }
 0x3be   : > { %6290 = vmatmul.mubr.f32.gmra.mrb[20].mxu1 %v8657_v25  ;;  %6539 = vmatmul.mubr.f32.gmra.mrb[22].mxu0 %v8737_v29 }
 0x3bf   : > { %6292 = vmatprep.mubr.f32.mxu1 %v8726_v53  ;;  %6541 = vmatprep.mubr.f32.mxu0 %v8806_v51 }
 0x3c2   : > { %6293 = vmatmul.mubr.f32.gmra.mrb[22].mxu1 %v8737_v29  ;;  %6542 = vmatmul.mubr.f32.gmra.mrb[24].mxu0 %v8817_v45 }
 0x3c3   : > { %6295 = vmatprep.mubr.f32.mxu1 %v8806_v51  ;;  %6544 = vmatprep.mubr.f32.mxu0 %v8886_v35 }
 0x3c6   : > { %6296 = vmatmul.mubr.f32.gmra.mrb[24].mxu1 %v8817_v45  ;;  %6545 = vmatmul.mubr.f32.gmra.mrb[26].mxu0 %v8897_v32 }
 0x3c7   : > { %6298 = vmatprep.mubr.f32.mxu1 %v8886_v35  ;;  %6547 = vmatprep.mubr.f32.mxu0 %v8966_v6 }
 0x3ca   : > { %6299 = vmatmul.mubr.f32.gmra.mrb[26].mxu1 %v8897_v32  ;;  %6548 = vmatmul.mubr.f32.gmra.mrb[28].mxu0 %v10201_v20 }
 0x3cb   : > { %6301 = vmatprep.mubr.f32.mxu1 %v8966_v6  ;;  %6550 = vmatprep.mubr.f32.mxu0 %v10202_v44 }
 0x3ce   : > { %6302 = vmatmul.mubr.f32.gmra.mrb[28].mxu1 %v10201_v20  ;;  %6551 = vmatmul.mubr.f32.gmra.mrb[30].mxu0 %v10203_v5 }
 0x3cf   : > { %6304 = vmatprep.mubr.f32.mxu1 %v10202_v44  ;;  %6553 = vmatprep.mubr.f32.mxu0 %v9162_v40 }
 0x3d2   : > { %6305 = vmatmul.mubr.f32.gmra.mrb[30].mxu1 %v10203_v5  ;;  %6554 = vmatmul.mubr.f32.gmra.mrb[32].mxu0 %v9173_v57 }
 0x3d3   : > { %6307 = vmatprep.mubr.f32.mxu1 %v9162_v40  ;;  %6556 = vmatprep.mubr.f32.mxu0 %v10204_v62 }
 0x3d6   : > { %6308 = vmatmul.mubr.f32.gmra.mrb[32].mxu1 %v9173_v57  ;;  %6557 = vmatmul.mubr.f32.gmra.mrb[34].mxu0 %v10205_v49 }
 0x3d7   : > { %6310 = vmatprep.mubr.f32.mxu1 %v10204_v62  ;;  %6559 = vmatprep.mubr.f32.mxu0 %v9311_v36 }
 0x3da   : > { %6311 = vmatmul.mubr.f32.gmra.mrb[34].mxu1 %v10205_v49  ;;  %6560 = vmatmul.mubr.f32.gmra.mrb[36].mxu0 %v10206_v9 }
 0x3db   : > { %6313 = vmatprep.mubr.f32.mxu1 %v9311_v36  ;;  %6562 = vmatprep.mubr.f32.mxu0 %v10207_v23 }
 0x3de   : > { %6314 = vmatmul.mubr.f32.gmra.mrb[36].mxu1 %v10206_v9  ;;  %6563 = vmatmul.mubr.f32.gmra.mrb[38].mxu0 %v10208_v60 }
 0x3df   : > { %6316 = vmatprep.mubr.f32.mxu1 %v10207_v23  ;;  %6565 = vmatprep.mubr.f32.mxu0 %v10209_v0 }
 0x3e2   : > { %6317 = vmatmul.mubr.f32.gmra.mrb[38].mxu1 %v10208_v60  ;;  %6566 = vmatmul.mubr.f32.gmra.mrb[40].mxu0 %v10210_v54 }
 0x3e3   : > { %6319 = vmatprep.mubr.f32.mxu1 %v10209_v0  ;;  %6568 = vmatprep.mubr.f32.mxu0 %v10211_v13 }
 0x3e6   : > { %6320 = vmatmul.mubr.f32.gmra.mrb[40].mxu1 %v10210_v54  ;;  %6569 = vmatmul.mubr.f32.gmra.mrb[42].mxu0 %v10212_v38 }
 0x3e7   : > { %6322 = vmatprep.mubr.f32.mxu1 %v10211_v13  ;;  %6571 = vmatprep.mubr.f32.mxu0 %v9468_v55 }
 0x3ea   : > { %6323 = vmatmul.mubr.f32.gmra.mrb[42].mxu1 %v10212_v38  ;;  %6572 = vmatmul.mubr.f32.gmra.mrb[44].mxu0 %v10213_v11 }
 0x3eb   : > { %6325 = vmatprep.mubr.f32.mxu1 %v9468_v55  ;;  %6574 = vmatprep.mubr.f32.mxu0 %v9515_v2 }
 0x3ee   : > { %6326 = vmatmul.mubr.f32.gmra.mrb[44].mxu1 %v10213_v11  ;;  %6575 = vmatmul.mubr.f32.gmra.mrb[46].mxu0 %v9513_v7 }
 0x3ef   : > { %6328 = vmatprep.mubr.f32.mxu1 %v9515_v2  ;;  %6587 = vmatprep.mubr.f32.mxu0 %v7844_v56  ;;  %v10218_v56 = vld [vmem:[#allocation83_spill] sm:$0xff] }
 0x3f2   : > { %6329 = vmatmul.mubr.f32.gmra.mrb[46].mxu1 %v9513_v7  ;;  %6588 = vmatmul.mubr.f32.vlgmr.msra.gmra.mrb[0].mxu0 %v7855_v48  ;;  %v10219_v48 = vld [vmem:[#allocation84_spill] sm:$0xff] }
 0x3f3   : > { %6341 = vmatprep.mubr.f32.mxu1 %v10214_v34  ;;  %6590 = vmatprep.mubr.f32.mxu0 %v7926_v30  ;;  %v10220_v30 = vld [vmem:[#allocation85_spill] sm:$0xff] }
 0x3f6   : > { %6342 = vmatmul.mubr.f32.vlgmr.msra.gmra.mrb[0].mxu1 %v10215_v27  ;;  %6591 = vmatmul.mubr.f32.gmra.mrb[2].mxu0 %v7937_v10  ;;  %v10221_v10 = vld [vmem:[#allocation86_spill] sm:$0xff] }
 0x3f7   : > { %6344 = vmatprep.mubr.f32.mxu1 %v10216_v43  ;;  %6593 = vmatprep.mubr.f32.mxu0 %v8006_v39  ;;  %v10222_v39 = vld [vmem:[#allocation87_spill] sm:$0xff] }
 0x3fa   : > { %6345 = vmatmul.mubr.f32.gmra.mrb[2].mxu1 %v10217_v41  ;;  %6594 = vmatmul.mubr.f32.gmra.mrb[4].mxu0 %v8017_v26  ;;  %v10223_v26 = vld [vmem:[#allocation88_spill] sm:$0xff] }
 0x3fb   : > { %6347 = vmatprep.mubr.f32.mxu1 %v10218_v56  ;;  %6596 = vmatprep.mubr.f32.mxu0 %v8086_v63  ;;  %v10224_v63 = vld [vmem:[#allocation89_spill] sm:$0xff] }
 0x3fe   : > { %6348 = vmatmul.mubr.f32.gmra.mrb[4].mxu1 %v10219_v48  ;;  %6597 = vmatmul.mubr.f32.gmra.mrb[6].mxu0 %v8097_v47  ;;  %v10225_v47 = vld [vmem:[#allocation90_spill] sm:$0xff] }
 0x3ff   : > { %6350 = vmatprep.mubr.f32.mxu1 %v10220_v30  ;;  %6599 = vmatprep.mubr.f32.mxu0 %v8166_v8  ;;  %v10226_v8 = vld [vmem:[#allocation91_spill] sm:$0xff] }
 0x402   : > { %6351 = vmatmul.mubr.f32.gmra.mrb[6].mxu1 %v10221_v10  ;;  %6600 = vmatmul.mubr.f32.gmra.mrb[8].mxu0 %v8177_v1  ;;  %v10227_v1 = vld [vmem:[#allocation92_spill] sm:$0xff] }
 0x403   : > { %6353 = vmatprep.mubr.f32.mxu1 %v10222_v39  ;;  %6602 = vmatprep.mubr.f32.mxu0 %v8246_v46  ;;  %v10228_v46 = vld [vmem:[#allocation3_spill] sm:$0xff] }
 0x406   : > { %6354 = vmatmul.mubr.f32.gmra.mrb[8].mxu1 %v10223_v26  ;;  %6603 = vmatmul.mubr.f32.gmra.mrb[10].mxu0 %v8257_v12  ;;  %v10229_v12 = vld [vmem:[#allocation74_spill] sm:$0xff] }
 0x407   : > { %6356 = vmatprep.mubr.f32.mxu1 %v10224_v63  ;;  %6605 = vmatprep.mubr.f32.mxu0 %v8326_v17  ;;  %v10230_v17 = vld [vmem:[#allocation45_spill] sm:$0xff] }
 0x40a   : > { %6357 = vmatmul.mubr.f32.gmra.mrb[10].mxu1 %v10225_v47  ;;  %6606 = vmatmul.mubr.f32.gmra.mrb[12].mxu0 %v8337_v59  ;;  %v10231_v59 = vld [vmem:[#allocation2_spill] sm:$0xff] }
 0x40b   : > { %6359 = vmatprep.mubr.f32.mxu1 %v10226_v8  ;;  %6608 = vmatprep.mubr.f32.mxu0 %v8406_v16  ;;  %v10232_v16 = vld [vmem:[#allocation77_spill] sm:$0xff] }
 0x40e   : > { %6360 = vmatmul.mubr.f32.gmra.mrb[12].mxu1 %v10227_v1  ;;  %6609 = vmatmul.mubr.f32.gmra.mrb[14].mxu0 %v8417_v3  ;;  %v10233_v3 = vld [vmem:[#allocation44_spill] sm:$0xff] }
 0x40f   : > { %6362 = vmatprep.mubr.f32.mxu1 %v10228_v46  ;;  %6611 = vmatprep.mubr.f32.mxu0 %v8486_v58  ;;  %v10234_v58 = vld [vmem:[#allocation5_spill] sm:$0xff] }
 0x412   : > { %6363 = vmatmul.mubr.f32.gmra.mrb[14].mxu1 %v10229_v12  ;;  %6612 = vmatmul.mubr.f32.gmra.mrb[16].mxu0 %v8497_v52  ;;  %v10235_v52 = vld [vmem:[#allocation47_spill] sm:$0xff] }
 0x413   : > { %6365 = vmatprep.mubr.f32.mxu1 %v10230_v17  ;;  %6614 = vmatprep.mubr.f32.mxu0 %v8566_v19  ;;  %v10236_v19 = vld [vmem:[#allocation4_spill] sm:$0xff] }
 0x416   : > { %6366 = vmatmul.mubr.f32.gmra.mrb[16].mxu1 %v10231_v59  ;;  %6615 = vmatmul.mubr.f32.gmra.mrb[18].mxu0 %v8577_v50  ;;  %v10237_v50 = vld [vmem:[#allocation46_spill] sm:$0xff] }
 0x417   : > { %6368 = vmatprep.mubr.f32.mxu1 %v10232_v16  ;;  %6617 = vmatprep.mubr.f32.mxu0 %v8646_v33  ;;  %v10238_v33 = vld [vmem:[#allocation7_spill] sm:$0xff] }
 0x41a   : > { %6369 = vmatmul.mubr.f32.gmra.mrb[18].mxu1 %v10233_v3  ;;  %6618 = vmatmul.mubr.f32.gmra.mrb[20].mxu0 %v8657_v25  ;;  %v10239_v25 = vld [vmem:[#allocation49_spill] sm:$0xff] }
 0x41b   : > { %6371 = vmatprep.mubr.f32.mxu1 %v10234_v58  ;;  %6620 = vmatprep.mubr.f32.mxu0 %v8726_v53  ;;  %v10240_v53 = vld [vmem:[#allocation6_spill] sm:$0xff] }
 0x41e   : > { %6372 = vmatmul.mubr.f32.gmra.mrb[20].mxu1 %v10235_v52  ;;  %6621 = vmatmul.mubr.f32.gmra.mrb[22].mxu0 %v8737_v29  ;;  %v10241_v29 = vld [vmem:[#allocation48_spill] sm:$0xff] }
 0x41f   : > { %6374 = vmatprep.mubr.f32.mxu1 %v10236_v19  ;;  %6623 = vmatprep.mubr.f32.mxu0 %v8806_v51  ;;  %v10242_v51 = vld [vmem:[#allocation9_spill] sm:$0xff] }
 0x422   : > { %6375 = vmatmul.mubr.f32.gmra.mrb[22].mxu1 %v10237_v50  ;;  %6624 = vmatmul.mubr.f32.gmra.mrb[24].mxu0 %v8817_v45  ;;  %v10243_v45 = vld [vmem:[#allocation8_spill] sm:$0xff] }
 0x423   : > { %6377 = vmatprep.mubr.f32.mxu1 %v10238_v33  ;;  %6626 = vmatprep.mubr.f32.mxu0 %v8886_v35  ;;  %v10244_v35 = vld [vmem:[#allocation11_spill] sm:$0xff] }
 0x426   : > { %6378 = vmatmul.mubr.f32.gmra.mrb[24].mxu1 %v10239_v25  ;;  %6627 = vmatmul.mubr.f32.gmra.mrb[26].mxu0 %v8897_v32  ;;  %v10245_v32 = vld [vmem:[#allocation10_spill] sm:$0xff] }
 0x427   : > { %6380 = vmatprep.mubr.f32.mxu1 %v10240_v53  ;;  %6629 = vmatprep.mubr.f32.mxu0 %v8966_v6  ;;  %v10246_v6 = vld [vmem:[#allocation52_spill] sm:$0xff] }
 0x42a   : > { %6381 = vmatmul.mubr.f32.gmra.mrb[26].mxu1 %v10241_v29  ;;  %6630 = vmatmul.mubr.f32.gmra.mrb[28].mxu0 %v10201_v20 }
 0x42b   : > { %6383 = vmatprep.mubr.f32.mxu1 %v10242_v51  ;;  %6632 = vmatprep.mubr.f32.mxu0 %v10202_v44 }
 0x42e   : > { %6384 = vmatmul.mubr.f32.gmra.mrb[28].mxu1 %v10243_v45  ;;  %6633 = vmatmul.mubr.f32.gmra.mrb[30].mxu0 %v10203_v5 }
 0x42f   : > { %6386 = vmatprep.mubr.f32.mxu1 %v10244_v35  ;;  %6635 = vmatprep.mubr.f32.mxu0 %v9162_v40  ;;  %v10250_v40 = vld [vmem:[#allocation57_spill] sm:$0xff] }
 0x432   : > { %6387 = vmatmul.mubr.f32.gmra.mrb[30].mxu1 %v10245_v32  ;;  %6636 = vmatmul.mubr.f32.gmra.mrb[32].mxu0 %v9173_v57  ;;  %v10251_v57 = vld [vmem:[#allocation56_spill] sm:$0xff] }
 0x433   : > { %6389 = vmatprep.mubr.f32.mxu1 %v10246_v6  ;;  %6638 = vmatprep.mubr.f32.mxu0 %v10204_v62 }
 0x436   : > { %6390 = vmatmul.mubr.f32.gmra.mrb[32].mxu1 %v10247_v18  ;;  %6639 = vmatmul.mubr.f32.gmra.mrb[34].mxu0 %v10205_v49 }
 0x437   : > { %6392 = vmatprep.mubr.f32.mxu1 %v10248_v37  ;;  %6641 = vmatprep.mubr.f32.mxu0 %v9311_v36  ;;  %v10254_v36 = vld [vmem:[#allocation33_spill] sm:$0xff] }
 0x43a   : > { %6393 = vmatmul.mubr.f32.gmra.mrb[34].mxu1 %v10249_v31  ;;  %6642 = vmatmul.mubr.f32.gmra.mrb[36].mxu0 %v10206_v9 }
 0x43b   : > { %6395 = vmatprep.mubr.f32.mxu1 %v10250_v40  ;;  %6644 = vmatprep.mubr.f32.mxu0 %v10207_v23 }
 0x43e   : > { %6396 = vmatmul.mubr.f32.gmra.mrb[36].mxu1 %v10251_v57  ;;  %6645 = vmatmul.mubr.f32.gmra.mrb[38].mxu0 %v10208_v60 }
 0x43f   : > { %6398 = vmatprep.mubr.f32.mxu1 %v10252_v61  ;;  %6647 = vmatprep.mubr.f32.mxu0 %v10209_v0 }
 0x442   : > { %6399 = vmatmul.mubr.f32.gmra.mrb[38].mxu1 %v10253_v15  ;;  %6648 = vmatmul.mubr.f32.gmra.mrb[40].mxu0 %v10210_v54 }
 0x443   : > { %6401 = vmatprep.mubr.f32.mxu1 %v10254_v36  ;;  %6650 = vmatprep.mubr.f32.mxu0 %v10211_v13 }
 0x446   : > { %6402 = vmatmul.mubr.f32.gmra.mrb[40].mxu1 %v10255_v21  ;;  %6651 = vmatmul.mubr.f32.gmra.mrb[42].mxu0 %v10212_v38 }
 0x447   : > { %6404 = vmatprep.mubr.f32.mxu1 %v10256_v22  ;;  %6653 = vmatprep.mubr.f32.mxu0 %v9468_v55  ;;  %v9732_v55 = vld [vmem:[%s9895_s2] ss:$0 sm:$0xff] }
 0x44a   : > { %6405 = vmatmul.mubr.f32.gmra.mrb[42].mxu1 %v10257_v28  ;;  %6654 = vmatmul.mubr.f32.gmra.mrb[44].mxu0 %v10213_v11 }
 0x44b   : > { %6407 = vmatprep.mubr.f32.mxu1 %v10258_v42  ;;  %6656 = vmatprep.mubr.f32.mxu0 %v9515_v2 }
 0x44e   : > { %6408 = vmatmul.mubr.f32.gmra.mrb[44].mxu1 %v9488_v24  ;;  %6657 = vmatmul.mubr.f32.gmra.mrb[46].mxu0 %v9513_v7 }
 0x44f   : > { %6410 = vmatprep.mubr.f32.mxu1 %v9521_v4 }
 0x452   : > { %6411 = vmatmul.mubr.f32.gmra.mrb[46].mxu1 %v9518_v14 }
 0x4c5   : > { %v6589_v20 = vpop.f32.mrb[0].mxu0 }
 0x4c6   : > { %v4966_v44 = vpop.f32.mrb[1].mxu0 }
 0x4c9   : > { %v6343_v5 = vpop.f32.mrb[0].mxu1  ;;  %v6592_v62 = vpop.f32.mrb[2].mxu0 }
 0x4ca   : > { %v6707_v2 = vadd.f32 %v6343_v5, %v9732_v55  ;;  %v3739_v49 = vpop.f32.mrb[1].mxu1  ;;  %v4978_v24 = vpop.f32.mrb[3].mxu0 }
 0x4cb   : > { %v6709_v7 = vadd.f32 %v9732_v55, %v3739_v49 }
 0x4cc   : > { %v6708_v9 = vadd.f32 %v6707_v2, %v6589_v20 }
 0x4cd   : > { %v6710_v14 = vadd.f32 %v6709_v7, %v4966_v44  ;;  %v6346_v4 = vpop.f32.mrb[2].mxu1  ;;  %v6595_v23 = vpop.f32.mrb[4].mxu0 }
 0x4ce   : > { %v5253_v60 = vmax.f32 %v6708_v9, 0.0  ;;  %v6711_v0 = vadd.f32 %v6346_v4, %v9732_v55  ;;  %v3753_v54 = vpop.f32.mrb[3].mxu1  ;;  %v4990_v13 = vpop.f32.mrb[5].mxu0 }
 0x4cf   : > { %v5252_v38 = vmax.f32 %v6710_v14, 0.0  ;;  %v6713_v11 = vadd.f32 %v9732_v55, %v3753_v54 }
 0x4d0   : > { %5301 = vst.msk [vmem:[%s9740_s25 + $0x8] sm:$0xff] %vm2229_vm2, %v5253_v60  ;;  %v6712_v34 = vadd.f32 %v6711_v0, %v6592_v62 }
 0x4d1   : > { %5300 = vst.msk [vmem:[%s9740_s25] sm:$0xff] %vm2229_vm2, %v5252_v38  ;;  %v6714_v27 = vadd.f32 %v6713_v11, %v4978_v24  ;;  %v6349_v43 = vpop.f32.mrb[4].mxu1  ;;  %v6598_v41 = vpop.f32.mrb[6].mxu0 }
 0x4d2   : > { %v5255_v56 = vmax.f32 %v6712_v34, 0.0  ;;  %v6715_v48 = vadd.f32 %v6349_v43, %v9732_v55  ;;  %v3767_v30 = vpop.f32.mrb[5].mxu1  ;;  %v5002_v10 = vpop.f32.mrb[7].mxu0 }
 0x4d3   : > { %v5254_v39 = vmax.f32 %v6714_v27, 0.0  ;;  %v6717_v26 = vadd.f32 %v9732_v55, %v3767_v30 }
 0x4d4   : > { %5303 = vst.msk [vmem:[%s9740_s25 + $0x18] sm:$0xff] %vm2229_vm2, %v5255_v56  ;;  %v6716_v63 = vadd.f32 %v6715_v48, %v6595_v23 }
 0x4d5   : > { %5302 = vst.msk [vmem:[%s9740_s25 + $0x10] sm:$0xff] %vm2229_vm2, %v5254_v39  ;;  %v6718_v47 = vadd.f32 %v6717_v26, %v4990_v13  ;;  %v6352_v8 = vpop.f32.mrb[6].mxu1  ;;  %v6601_v1 = vpop.f32.mrb[8].mxu0 }
 0x4d6   : > { %v5257_v46 = vmax.f32 %v6716_v63, 0.0  ;;  %v6719_v12 = vadd.f32 %v6352_v8, %v9732_v55  ;;  %v3781_v17 = vpop.f32.mrb[7].mxu1  ;;  %v5014_v59 = vpop.f32.mrb[9].mxu0 }
 0x4d7   : > { %v5256_v16 = vmax.f32 %v6718_v47, 0.0  ;;  %v6721_v3 = vadd.f32 %v9732_v55, %v3781_v17 }
 0x4d8   : > { %5305 = vst.msk [vmem:[%s9740_s25 + $0x28] sm:$0xff] %vm2229_vm2, %v5257_v46  ;;  %v6720_v58 = vadd.f32 %v6719_v12, %v6598_v41 }
 0x4d9   : > { %5304 = vst.msk [vmem:[%s9740_s25 + $0x20] sm:$0xff] %vm2229_vm2, %v5256_v16  ;;  %v6722_v52 = vadd.f32 %v6721_v3, %v5002_v10  ;;  %v6355_v19 = vpop.f32.mrb[8].mxu1  ;;  %v6604_v50 = vpop.f32.mrb[10].mxu0 }
 0x4da   : > { %v5259_v33 = vmax.f32 %v6720_v58, 0.0  ;;  %v6723_v25 = vadd.f32 %v6355_v19, %v9732_v55  ;;  %v3795_v53 = vpop.f32.mrb[9].mxu1  ;;  %v5026_v29 = vpop.f32.mrb[11].mxu0 }
 0x4db   : > { %v5258_v51 = vmax.f32 %v6722_v52, 0.0  ;;  %v6725_v45 = vadd.f32 %v9732_v55, %v3795_v53 }
 0x4dc   : > { %5307 = vst.msk [vmem:[%s9740_s25 + $0x38] sm:$0xff] %vm2229_vm2, %v5259_v33  ;;  %v6724_v35 = vadd.f32 %v6723_v25, %v6601_v1 }
 0x4dd   : > { %5306 = vst.msk [vmem:[%s9740_s25 + $0x30] sm:$0xff] %vm2229_vm2, %v5258_v51  ;;  %v6726_v32 = vadd.f32 %v6725_v45, %v5014_v59  ;;  %v6358_v6 = vpop.f32.mrb[10].mxu1  ;;  %v6607_v18 = vpop.f32.mrb[12].mxu0 }
 0x4de   : > { %v5261_v37 = vmax.f32 %v6724_v35, 0.0  ;;  %v6727_v31 = vadd.f32 %v6358_v6, %v9732_v55  ;;  %v3809_v40 = vpop.f32.mrb[11].mxu1  ;;  %v5038_v57 = vpop.f32.mrb[13].mxu0 }
 0x4df   : > { %v5260_v61 = vmax.f32 %v6726_v32, 0.0  ;;  %v6729_v15 = vadd.f32 %v9732_v55, %v3809_v40 }
 0x4e0   : > { %5309 = vst.msk [vmem:[%s9740_s25 + $0x48] sm:$0xff] %vm2229_vm2, %v5261_v37  ;;  %v6728_v36 = vadd.f32 %v6727_v31, %v6604_v50 }
 0x4e1   : > { %5308 = vst.msk [vmem:[%s9740_s25 + $0x40] sm:$0xff] %vm2229_vm2, %v5260_v61  ;;  %v6730_v21 = vadd.f32 %v6729_v15, %v5026_v29  ;;  %v6361_v22 = vpop.f32.mrb[12].mxu1  ;;  %v6610_v28 = vpop.f32.mrb[14].mxu0 }
 0x4e2   : > { %v5263_v42 = vmax.f32 %v6728_v36, 0.0  ;;  %v6731_v20 = vadd.f32 %v6361_v22, %v9732_v55  ;;  %v3823_v44 = vpop.f32.mrb[13].mxu1  ;;  %v5050_v5 = vpop.f32.mrb[15].mxu0 }
 0x4e3   : > { %v5262_v62 = vmax.f32 %v6730_v21, 0.0  ;;  %v6733_v2 = vadd.f32 %v9732_v55, %v3823_v44 }
 0x4e4   : > { %5311 = vst.msk [vmem:[%s9740_s25 + $0x58] sm:$0xff] %vm2229_vm2, %v5263_v42  ;;  %v6732_v49 = vadd.f32 %v6731_v20, %v6607_v18 }
 0x4e5   : > { %5310 = vst.msk [vmem:[%s9740_s25 + $0x50] sm:$0xff] %vm2229_vm2, %v5262_v62  ;;  %v6734_v24 = vadd.f32 %v6733_v2, %v5038_v57  ;;  %v6364_v7 = vpop.f32.mrb[14].mxu1  ;;  %v6613_v9 = vpop.f32.mrb[16].mxu0 }
 0x4e6   : > { %v5265_v14 = vmax.f32 %v6732_v49, 0.0  ;;  %v6735_v4 = vadd.f32 %v6364_v7, %v9732_v55  ;;  %v3837_v23 = vpop.f32.mrb[15].mxu1  ;;  %v5062_v60 = vpop.f32.mrb[17].mxu0 }
 0x4e7   : > { %v5264_v0 = vmax.f32 %v6734_v24, 0.0  ;;  %v6737_v54 = vadd.f32 %v9732_v55, %v3837_v23 }
 0x4e8   : > { %5313 = vst.msk [vmem:[%s9740_s25 + $0x68] sm:$0xff] %vm2229_vm2, %v5265_v14  ;;  %v6736_v13 = vadd.f32 %v6735_v4, %v6610_v28 }
 0x4e9   : > { %5312 = vst.msk [vmem:[%s9740_s25 + $0x60] sm:$0xff] %vm2229_vm2, %v5264_v0  ;;  %v6738_v38 = vadd.f32 %v6737_v54, %v5050_v5  ;;  %v6367_v11 = vpop.f32.mrb[16].mxu1  ;;  %v6616_v34 = vpop.f32.mrb[18].mxu0 }
 0x4ea   : > { %v5267_v27 = vmax.f32 %v6736_v13, 0.0  ;;  %v6739_v43 = vadd.f32 %v6367_v11, %v9732_v55  ;;  %v3851_v41 = vpop.f32.mrb[17].mxu1  ;;  %v5074_v56 = vpop.f32.mrb[19].mxu0 }
 0x4eb   : > { %v5266_v48 = vmax.f32 %v6738_v38, 0.0  ;;  %v6741_v30 = vadd.f32 %v9732_v55, %v3851_v41 }
 0x4ec   : > { %5315 = vst.msk [vmem:[%s9740_s25 + $0x78] sm:$0xff] %vm2229_vm2, %v5267_v27  ;;  %v6740_v10 = vadd.f32 %v6739_v43, %v6613_v9 }
 0x4ed   : > { %5314 = vst.msk [vmem:[%s9740_s25 + $0x70] sm:$0xff] %vm2229_vm2, %v5266_v48  ;;  %v6742_v39 = vadd.f32 %v6741_v30, %v5062_v60  ;;  %v6370_v26 = vpop.f32.mrb[18].mxu1  ;;  %v6619_v63 = vpop.f32.mrb[20].mxu0 }
 0x4ee   : > { %v5269_v47 = vmax.f32 %v6740_v10, 0.0  ;;  %v6743_v8 = vadd.f32 %v6370_v26, %v9732_v55  ;;  %v3865_v1 = vpop.f32.mrb[19].mxu1  ;;  %v5086_v46 = vpop.f32.mrb[21].mxu0 }
 0x4ef   : > { %v5268_v12 = vmax.f32 %v6742_v39, 0.0  ;;  %v6745_v17 = vadd.f32 %v9732_v55, %v3865_v1 }
 0x4f0   : > { %5317 = vst.msk [vmem:[%s9740_s25 + $0x88] sm:$0xff] %vm2229_vm2, %v5269_v47  ;;  %v6744_v59 = vadd.f32 %v6743_v8, %v6616_v34 }
 0x4f1   : > { %5316 = vst.msk [vmem:[%s9740_s25 + $0x80] sm:$0xff] %vm2229_vm2, %v5268_v12  ;;  %v6746_v16 = vadd.f32 %v6745_v17, %v5074_v56  ;;  %v6373_v3 = vpop.f32.mrb[20].mxu1  ;;  %v6622_v58 = vpop.f32.mrb[22].mxu0 }
 0x4f2   : > { %v5271_v52 = vmax.f32 %v6744_v59, 0.0  ;;  %v6747_v19 = vadd.f32 %v6373_v3, %v9732_v55  ;;  %v3879_v50 = vpop.f32.mrb[21].mxu1  ;;  %v5098_v33 = vpop.f32.mrb[23].mxu0 }
 0x4f3   : > { %v5270_v25 = vmax.f32 %v6746_v16, 0.0  ;;  %v6749_v53 = vadd.f32 %v9732_v55, %v3879_v50 }
 0x4f4   : > { %5319 = vst.msk [vmem:[%s9740_s25 + $0x98] sm:$0xff] %vm2229_vm2, %v5271_v52  ;;  %v6748_v29 = vadd.f32 %v6747_v19, %v6619_v63 }
 0x4f5   : > { %5318 = vst.msk [vmem:[%s9740_s25 + $0x90] sm:$0xff] %vm2229_vm2, %v5270_v25  ;;  %v6750_v51 = vadd.f32 %v6749_v53, %v5086_v46  ;;  %v6376_v45 = vpop.f32.mrb[22].mxu1  ;;  %v6625_v35 = vpop.f32.mrb[24].mxu0 }
 0x4f6   : > { %v5273_v32 = vmax.f32 %v6748_v29, 0.0  ;;  %v6751_v6 = vadd.f32 %v6376_v45, %v9732_v55  ;;  %v3893_v18 = vpop.f32.mrb[23].mxu1  ;;  %v5110_v37 = vpop.f32.mrb[25].mxu0 }
 0x4f7   : > { %v5272_v31 = vmax.f32 %v6750_v51, 0.0  ;;  %v6753_v40 = vadd.f32 %v9732_v55, %v3893_v18 }
 0x4f8   : > { %5321 = vst.msk [vmem:[%s9740_s25 + $0xa8] sm:$0xff] %vm2229_vm2, %v5273_v32  ;;  %v6752_v57 = vadd.f32 %v6751_v6, %v6622_v58 }
 0x4f9   : > { %5320 = vst.msk [vmem:[%s9740_s25 + $0xa0] sm:$0xff] %vm2229_vm2, %v5272_v31  ;;  %v6754_v61 = vadd.f32 %v6753_v40, %v5098_v33  ;;  %v6379_v15 = vpop.f32.mrb[24].mxu1  ;;  %v6628_v36 = vpop.f32.mrb[26].mxu0 }
 0x4fa   : > { %v5275_v21 = vmax.f32 %v6752_v57, 0.0  ;;  %v6755_v22 = vadd.f32 %v6379_v15, %v9732_v55  ;;  %v3907_v28 = vpop.f32.mrb[25].mxu1  ;;  %v5122_v42 = vpop.f32.mrb[27].mxu0 }
 0x4fb   : > { %v5274_v20 = vmax.f32 %v6754_v61, 0.0  ;;  %v6757_v44 = vadd.f32 %v9732_v55, %v3907_v28 }
 0x4fc   : > { %5323 = vst.msk [vmem:[%s9740_s25 + $0xb8] sm:$0xff] %vm2229_vm2, %v5275_v21  ;;  %v6756_v5 = vadd.f32 %v6755_v22, %v6625_v35 }
 0x4fd   : > { %5322 = vst.msk [vmem:[%s9740_s25 + $0xb0] sm:$0xff] %vm2229_vm2, %v5274_v20  ;;  %v6758_v62 = vadd.f32 %v6757_v44, %v5110_v37  ;;  %v6382_v2 = vpop.f32.mrb[26].mxu1  ;;  %v6631_v49 = vpop.f32.mrb[28].mxu0 }
 0x4fe   : > { %v5277_v24 = vmax.f32 %v6756_v5, 0.0  ;;  %v6759_v7 = vadd.f32 %v6382_v2, %v9732_v55  ;;  %v3921_v9 = vpop.f32.mrb[27].mxu1  ;;  %v5134_v14 = vpop.f32.mrb[29].mxu0 }
 0x4ff   : > { %v5276_v4 = vmax.f32 %v6758_v62, 0.0  ;;  %v6761_v23 = vadd.f32 %v9732_v55, %v3921_v9 }
 0x500   : > { %5325 = vst.msk [vmem:[%s9740_s25 + $0xc8] sm:$0xff] %vm2229_vm2, %v5277_v24  ;;  %v6760_v60 = vadd.f32 %v6759_v7, %v6628_v36 }
 0x501   : > { %5324 = vst.msk [vmem:[%s9740_s25 + $0xc0] sm:$0xff] %vm2229_vm2, %v5276_v4  ;;  %v6762_v0 = vadd.f32 %v6761_v23, %v5122_v42  ;;  %v6385_v54 = vpop.f32.mrb[28].mxu1  ;;  %v6634_v13 = vpop.f32.mrb[30].mxu0 }
 0x502   : > { %v5279_v38 = vmax.f32 %v6760_v60, 0.0  ;;  %v6763_v11 = vadd.f32 %v6385_v54, %v9732_v55  ;;  %v3935_v34 = vpop.f32.mrb[29].mxu1  ;;  %v5146_v27 = vpop.f32.mrb[31].mxu0 }
 0x503   : > { %v5278_v43 = vmax.f32 %v6762_v0, 0.0  ;;  %v6765_v41 = vadd.f32 %v9732_v55, %v3935_v34 }
 0x504   : > { %5327 = vst.msk [vmem:[%s9740_s25 + $0xd8] sm:$0xff] %vm2229_vm2, %v5279_v38  ;;  %v6764_v56 = vadd.f32 %v6763_v11, %v6631_v49 }
 0x505   : > { %5326 = vst.msk [vmem:[%s9740_s25 + $0xd0] sm:$0xff] %vm2229_vm2, %v5278_v43  ;;  %v6766_v48 = vadd.f32 %v6765_v41, %v5134_v14  ;;  %v6388_v30 = vpop.f32.mrb[30].mxu1  ;;  %v6637_v10 = vpop.f32.mrb[32].mxu0 }
 0x506   : > { %v5281_v39 = vmax.f32 %v6764_v56, 0.0  ;;  %v6767_v26 = vadd.f32 %v6388_v30, %v9732_v55  ;;  %v3949_v63 = vpop.f32.mrb[31].mxu1  ;;  %v5158_v47 = vpop.f32.mrb[33].mxu0 }
 0x507   : > { %v5280_v8 = vmax.f32 %v6766_v48, 0.0  ;;  %v6769_v1 = vadd.f32 %v9732_v55, %v3949_v63 }
 0x508   : > { %5329 = vst.msk [vmem:[%s9740_s25 + $0xe8] sm:$0xff] %vm2229_vm2, %v5281_v39  ;;  %v6768_v46 = vadd.f32 %v6767_v26, %v6634_v13 }
 0x509   : > { %5328 = vst.msk [vmem:[%s9740_s25 + $0xe0] sm:$0xff] %vm2229_vm2, %v5280_v8  ;;  %v6770_v12 = vadd.f32 %v6769_v1, %v5146_v27  ;;  %v6391_v17 = vpop.f32.mrb[32].mxu1  ;;  %v6640_v59 = vpop.f32.mrb[34].mxu0 }
 0x50a   : > { %v5283_v16 = vmax.f32 %v6768_v46, 0.0  ;;  %v6771_v3 = vadd.f32 %v6391_v17, %v9732_v55  ;;  %v3963_v58 = vpop.f32.mrb[33].mxu1  ;;  %v5170_v52 = vpop.f32.mrb[35].mxu0 }
 0x50b   : > { %v5282_v19 = vmax.f32 %v6770_v12, 0.0  ;;  %v6773_v50 = vadd.f32 %v9732_v55, %v3963_v58 }
 0x50c   : > { %5331 = vst.msk [vmem:[%s9740_s25 + $0xf8] sm:$0xff] %vm2229_vm2, %v5283_v16  ;;  %v6772_v33 = vadd.f32 %v6771_v3, %v6637_v10 }
 0x50d   : > { %5330 = vst.msk [vmem:[%s9740_s25 + $0xf0] sm:$0xff] %vm2229_vm2, %v5282_v19  ;;  %v6774_v25 = vadd.f32 %v6773_v50, %v5158_v47  ;;  %v6394_v53 = vpop.f32.mrb[34].mxu1  ;;  %v6643_v29 = vpop.f32.mrb[36].mxu0 }
 0x50e   : > { %v5285_v51 = vmax.f32 %v6772_v33, 0.0  ;;  %v6775_v45 = vadd.f32 %v6394_v53, %v9732_v55  ;;  %v3977_v35 = vpop.f32.mrb[35].mxu1  ;;  %v5182_v32 = vpop.f32.mrb[37].mxu0 }
 0x50f   : > { %v5284_v6 = vmax.f32 %v6774_v25, 0.0  ;;  %v6777_v18 = vadd.f32 %v9732_v55, %v3977_v35 }
 0x510   : > { %5333 = vst.msk [vmem:[%s9740_s25 + $0x108] sm:$0xff] %vm2229_vm2, %v5285_v51  ;;  %v6776_v37 = vadd.f32 %v6775_v45, %v6640_v59 }
 0x511   : > { %5332 = vst.msk [vmem:[%s9740_s25 + $0x100] sm:$0xff] %vm2229_vm2, %v5284_v6  ;;  %v6778_v31 = vadd.f32 %v6777_v18, %v5170_v52  ;;  %v6397_v40 = vpop.f32.mrb[36].mxu1  ;;  %v6646_v57 = vpop.f32.mrb[38].mxu0 }
 0x512   : > { %v5287_v61 = vmax.f32 %v6776_v37, 0.0  ;;  %v6779_v15 = vadd.f32 %v6397_v40, %v9732_v55  ;;  %v3991_v36 = vpop.f32.mrb[37].mxu1  ;;  %v5194_v21 = vpop.f32.mrb[39].mxu0 }
 0x513   : > { %v5286_v22 = vmax.f32 %v6778_v31, 0.0  ;;  %v6781_v28 = vadd.f32 %v9732_v55, %v3991_v36 }
 0x514   : > { %5335 = vst.msk [vmem:[%s9740_s25 + $0x118] sm:$0xff] %vm2229_vm2, %v5287_v61  ;;  %v6780_v42 = vadd.f32 %v6779_v15, %v6643_v29 }
 0x515   : > { %5334 = vst.msk [vmem:[%s9740_s25 + $0x110] sm:$0xff] %vm2229_vm2, %v5286_v22  ;;  %v6782_v20 = vadd.f32 %v6781_v28, %v5182_v32  ;;  %v6400_v44 = vpop.f32.mrb[38].mxu1  ;;  %v6649_v5 = vpop.f32.mrb[40].mxu0 }
 0x516   : > { %v5289_v62 = vmax.f32 %v6780_v42, 0.0  ;;  %v6783_v2 = vadd.f32 %v6400_v44, %v9732_v55  ;;  %v4005_v49 = vpop.f32.mrb[39].mxu1  ;;  %v5206_v24 = vpop.f32.mrb[41].mxu0 }
 0x517   : > { %v5288_v7 = vmax.f32 %v6782_v20, 0.0  ;;  %v6785_v9 = vadd.f32 %v9732_v55, %v4005_v49 }
 0x518   : > { %5337 = vst.msk [vmem:[%s9740_s25 + $0x128] sm:$0xff] %vm2229_vm2, %v5289_v62  ;;  %v6784_v14 = vadd.f32 %v6783_v2, %v6646_v57 }
 0x519   : > { %5336 = vst.msk [vmem:[%s9740_s25 + $0x120] sm:$0xff] %vm2229_vm2, %v5288_v7  ;;  %v6786_v4 = vadd.f32 %v6785_v9, %v5194_v21  ;;  %v6403_v23 = vpop.f32.mrb[40].mxu1  ;;  %v6652_v60 = vpop.f32.mrb[42].mxu0 }
 0x51a   : > { %v5291_v0 = vmax.f32 %v6784_v14, 0.0  ;;  %v6787_v54 = vadd.f32 %v6403_v23, %v9732_v55  ;;  %v4019_v13 = vpop.f32.mrb[41].mxu1  ;;  %v5218_v38 = vpop.f32.mrb[43].mxu0 }
 0x51b   : > { %v5290_v11 = vmax.f32 %v6786_v4, 0.0  ;;  %v6789_v34 = vadd.f32 %v9732_v55, %v4019_v13 }
 0x51c   : > { %5339 = vst.msk [vmem:[%s9740_s25 + $0x138] sm:$0xff] %vm2229_vm2, %v5291_v0  ;;  %v6788_v27 = vadd.f32 %v6787_v54, %v6649_v5 }
 0x51d   : > { %5338 = vst.msk [vmem:[%s9740_s25 + $0x130] sm:$0xff] %vm2229_vm2, %v5290_v11  ;;  %v6790_v43 = vadd.f32 %v6789_v34, %v5206_v24  ;;  %v6406_v41 = vpop.f32.mrb[42].mxu1  ;;  %v6655_v56 = vpop.f32.mrb[44].mxu0 }
 0x51e   : > { %v5293_v48 = vmax.f32 %v6788_v27, 0.0  ;;  %v6791_v30 = vadd.f32 %v6406_v41, %v9732_v55  ;;  %v4033_v10 = vpop.f32.mrb[43].mxu1  ;;  %v5230_v39 = vpop.f32.mrb[45].mxu0 }
 0x51f   : > { %v5292_v26 = vmax.f32 %v6790_v43, 0.0  ;;  %v6793_v63 = vadd.f32 %v9732_v55, %v4033_v10 }
 0x520   : > { %5341 = vst.msk [vmem:[%s9740_s25 + $0x148] sm:$0xff] %vm2229_vm2, %v5293_v48  ;;  %v6792_v47 = vadd.f32 %v6791_v30, %v6652_v60 }
 0x521   : > { %5340 = vst.msk [vmem:[%s9740_s25 + $0x140] sm:$0xff] %vm2229_vm2, %v5292_v26  ;;  %v6794_v8 = vadd.f32 %v6793_v63, %v5218_v38  ;;  %v6409_v1 = vpop.f32.mrb[44].mxu1  ;;  %v6658_v46 = vpop.f32.mrb[46].mxu0 }
 0x522   : > { %v5295_v12 = vmax.f32 %v6792_v47, 0.0  ;;  %v6795_v17 = vadd.f32 %v6409_v1, %v9732_v55  ;;  %v4047_v59 = vpop.f32.mrb[45].mxu1  ;;  %v5242_v16 = vpop.f32.mrb[47].mxu0 }
 0x523   : > { %v5294_v3 = vmax.f32 %v6794_v8, 0.0  ;;  %v6797_v58 = vadd.f32 %v9732_v55, %v4047_v59 }
 0x524   : > { %5343 = vst.msk [vmem:[%s9740_s25 + $0x158] sm:$0xff] %vm2229_vm2, %v5295_v12  ;;  %v6796_v52 = vadd.f32 %v6795_v17, %v6655_v56 }
 0x525   : > { %5342 = vst.msk [vmem:[%s9740_s25 + $0x150] sm:$0xff] %vm2229_vm2, %v5294_v3  ;;  %v6798_v19 = vadd.f32 %v6797_v58, %v5230_v39  ;;  %v6412_v50 = vpop.f32.mrb[46].mxu1 }
 0x526   : > { %v5297_v33 = vmax.f32 %v6796_v52, 0.0  ;;  %v6799_v25 = vadd.f32 %v6412_v50, %v9732_v55  ;;  %v4061_v53 = vpop.f32.mrb[47].mxu1 }
 0x527   : > { %v5296_v29 = vmax.f32 %v6798_v19, 0.0  ;;  %v6801_v51 = vadd.f32 %v9732_v55, %v4061_v53 }
 0x528   : > { %5345 = vst.msk [vmem:[%s9740_s25 + $0x168] sm:$0xff] %vm2229_vm2, %v5297_v33  ;;  %v6800_v45 = vadd.f32 %v6799_v25, %v6658_v46 }
 0x529   : > { %5344 = vst.msk [vmem:[%s9740_s25 + $0x160] sm:$0xff] %vm2229_vm2, %v5296_v29  ;;  %v6802_v35 = vadd.f32 %v6801_v51, %v5242_v16 }
 0x52a   : > { %v5299_v32 = vmax.f32 %v6800_v45, 0.0 }
 0x52b   : > { %v5298_v6 = vmax.f32 %v6802_v35, 0.0 }
 0x52c   : > { %5347 = vst.msk [vmem:[%s9740_s25 + $0x178] sm:$0xff] %vm2229_vm2, %v5299_v32 }
 0x52d   : > { %5346 = vst.msk [vmem:[%s9740_s25 + $0x170] sm:$0xff] %vm2229_vm2, %v5298_v6 }
 0x52e PF: > { %s13_s14 = sadd.s32 1, %s7057_s14   ;;  %s10259_s12 = smov %s7053_s13 }
 0x52f   : > { %p10_p5 = scmp.ge.s32.totalorder %s13_s14, 4   ;;  %s10260_s13 = smov %s10262_s15 }
 0x531   :  { %12 = sbr.rel (!%p10_p5) target bundleno = 2 (0x2), region = 71 }

</bundles_post_ra>
